<compile_context>
chip_gen: v5e
topology: v5e:2x2
jax: 0.10.0
libtpu: 0.0.40
codegen_flags: <defaults>
</compile_context>

<pallas_src>
import jax
import jax.numpy as jnp
from jax.experimental import pallas as pl
from jax.experimental.pallas import tpu as pltpu

H = W = 14
PAD = 1
HP, WP = H + 2 * PAD, W + 2 * PAD          # 16, 16 (tile-friendly padded grid)
HW = H * W                                 # 196
HWP = HP * WP                              # 256
CIN, COUT, K = 128, 32, 3
EPS = 1e-5
MATMUL_DTYPE = jnp.bfloat16                # jnp.float32 for bit-tighter numerics


def bn_relu_conv_kernel(x_ref, par_ref, w_ref, o_ref, pad_ref):
    """One grid step == one independent (1, CIN, 14, 14) forward pass.

    Refs:
      x_ref:   (1, CIN, HW)     f32  raw CHW activation slab (no halo)
      par_ref: (CIN, 2)         f32  [:, 0] = gamma, [:, 1] = beta
      w_ref:   (K*K*COUT, CIN)  MATMUL_DTYPE, rows [32t:32t+32] = w[:, :, kh, kw]
      o_ref:   (1, COUT, HWP)   f32  valid outputs live at flat index h*WP + w
      pad_ref: (CIN, HWP)       f32  VMEM scratch: zero-padded conv input slab
    """
    x = x_ref[0]                                              # (128, 196)

    # ---- BatchNorm batch stats (training-mode, biased variance) ----------
    # One MXU dot on the stacked [x; x*x] slab replaces the two serial XLU
    # lane-reductions, keeping the prologue off the XLU.
    stacked = jnp.concatenate([x, x * x], axis=0)             # (256, 196)
    ones = jnp.ones((HW, 1), jnp.float32)
    sums = jnp.dot(stacked, ones,
                   preferred_element_type=jnp.float32)        # (256, 1)
    inv_n = 1.0 / float(HW)
    mean = sums[:CIN] * inv_n                                 # (128, 1)
    var = jnp.maximum(sums[CIN:] * inv_n - mean * mean, 0.0)  # clamp 1-pass var
    scale = par_ref[:, 0:1] * jax.lax.rsqrt(var + EPS)        # gamma * invstd
    shift = par_ref[:, 1:2] - mean * scale                    # beta - mean*scale

    # ---- affine + ReLU on the unpadded slab (no halo -> no mask needed) ---
    y = jnp.maximum(x * scale + shift, 0.0)                   # (128, 196)

    # ---- build zero-padded (128, 256) slab in VMEM (14 static lane copies) -
    pad_ref[...] = jnp.zeros_like(pad_ref)
    for h in range(H):
        pad_ref[:, pl.ds((h + PAD) * WP + PAD, W)] = y[:, h * W:(h + 1) * W]
    yp = pad_ref[...].astype(MATMUL_DTYPE)                    # (128, 256)

    # ---- 3x3 conv: one (288,128)@(128,256) MXU matmul, 9 XLU lane-rolls ----
    p = jnp.dot(w_ref[...], yp, preferred_element_type=jnp.float32)  # (288,256)
    parts = []
    for t in range(K * K):
        kh, kw = divmod(t, K)
        d = kh * WP + kw                                      # flat tap offset
        tap = p[t * COUT:(t + 1) * COUT, :]                   # (32, 256)
        # out[:, s] needs p_t[:, s + d]; roll by -d (== +256-d).  Wrapped
        # elements land only at s >= 222, never a valid output (max s = 221).
        parts.append(tap if d == 0 else pltpu.roll(tap, HWP - d, axis=1))
    # tree-accumulate: depth 4 instead of a serial depth-8 add chain
    while len(parts) > 1:
        nxt = [parts[i] + parts[i + 1] for i in range(0, len(parts) - 1, 2)]
        if len(parts) % 2:
            nxt.append(parts[-1])
        parts = nxt
    o_ref[0] = parts[0]                                       # (32, 256) f32


def prepare_conv_weight(conv_w_oihw):
    """(COUT, CIN, 3, 3) -> (K*K*COUT, CIN); rows [32t:32t+32] = w[:, :, kh, kw].
    Static: call once at module init, keeping the transpose off the hot path."""
    w = jnp.transpose(conv_w_oihw.astype(jnp.float32), (2, 3, 0, 1))
    return w.reshape(K * K * COUT, CIN).astype(MATMUL_DTYPE)


def prepare_bn_params(gamma, beta):
    """Pack gamma/beta into one (CIN, 2) slab (single small DMA descriptor)."""
    return jnp.stack([gamma.astype(jnp.float32),
                      beta.astype(jnp.float32)], axis=1)      # (128, 2)


@jax.jit
def bn_relu_conv(x_nchw, bn_par, w_all):
    """x_nchw: (B, CIN, 14, 14) -> (B, COUT, 14, 14).
    Each batch element is treated as an independent forward pass of the module
    (its own BatchNorm batch statistics) -- identical to the PyTorch module for
    the spec's B = 1; B > 1 is a throughput-batching interface."""
    B = x_nchw.shape[0]
    x_flat = x_nchw.astype(jnp.float32).reshape(B, CIN, HW)

    out_flat = pl.pallas_call(
        bn_relu_conv_kernel,
        out_shape=jax.ShapeDtypeStruct((B, COUT, HWP), jnp.float32),
        grid_spec=pltpu.PrefetchScalarGridSpec(
            num_scalar_prefetch=0,
            grid=(B,),
            in_specs=[
                pl.BlockSpec((1, CIN, HW), lambda b: (b, 0, 0)),
                pl.BlockSpec((CIN, 2), lambda b: (0, 0)),
                pl.BlockSpec((K * K * COUT, CIN), lambda b: (0, 0)),
            ],
            out_specs=pl.BlockSpec((1, COUT, HWP), lambda b: (b, 0, 0)),
            scratch_shapes=[pltpu.VMEM((CIN, HWP), jnp.float32)],
        ),
        compiler_params=pltpu.CompilerParams(
            dimension_semantics=("parallel",)),
    )(x_flat, bn_par, w_all)

    # (B, 32, 256) -> (B, 32, 16, 16) -> valid 14x14 interior; already NCHW.
    return out_flat.reshape(B, COUT, HP, WP)[:, :, :H, :W]


if __name__ == "__main__":
    key = jax.random.PRNGKey(0)
    k1, k2, k3, k4 = jax.random.split(key, 4)
    # shapes implied by the module's forward: x333 ~ (1, 128, 14, 14)
    x = jax.random.normal(k1, (1, CIN, H, W), jnp.float32)
    gamma = 1.0 + 0.1 * jax.random.normal(k2, (CIN,), jnp.float32)
    beta = 0.1 * jax.random.normal(k3, (CIN,), jnp.float32)
    conv_w = 0.05 * jax.random.normal(k4, (COUT, CIN, K, K), jnp.float32)

    # One-time (init-path) layout prep -- not part of the per-call jit.
    w_all = prepare_conv_weight(conv_w)
    bn_par = prepare_bn_params(gamma, beta)

    out = jax.block_until_ready(bn_relu_conv(x, bn_par, w_all))
    assert out.shape == (1, COUT, H, W) and out.dtype == jnp.float32

    # pure-JAX f32 reference (training-mode BatchNorm + ReLU + 3x3 conv)
    mean = jnp.mean(x, axis=(0, 2, 3))
    var = jnp.mean((x - mean[None, :, None, None]) ** 2, axis=(0, 2, 3))
    xh = (x - mean[None, :, None, None]) / jnp.sqrt(
        var[None, :, None, None] + EPS)
    yref = jnp.maximum(xh * gamma[None, :, None, None]
                       + beta[None, :, None, None], 0.0)
    ref = jax.lax.conv_general_dilated(
        yref, conv_w, window_strides=(1, 1), padding=((1, 1), (1, 1)),
        dimension_numbers=("NCHW", "OIHW", "NCHW"),
        precision=jax.lax.Precision.HIGHEST)

    tol = 3e-2 if MATMUL_DTYPE == jnp.bfloat16 else 2e-3
    max_err = float(jnp.max(jnp.abs(out - ref)))
    assert jnp.allclose(out, ref, atol=tol, rtol=tol), max_err
    print("KERNEL_OK")
</pallas_src>

<mosaic_0001>
module attributes {stable_mosaic.version = 11 : i64} {
  func.func @bn_relu_conv_kernel(%arg0: i32, %arg1: memref<1x128x196xf32, #tpu.memory_space<vmem>>, %arg2: memref<128x2xf32, #tpu.memory_space<vmem>>, %arg3: memref<288x128xbf16, #tpu.memory_space<vmem>>, %arg4: memref<1x32x256xf32, #tpu.memory_space<vmem>>, %arg5: memref<128x256xf32, #tpu.memory_space<vmem>>) attributes {dimension_semantics = [#tpu.dimension_semantics<parallel>], iteration_bounds = array<i64: 1>, scalar_prefetch = 0 : i64, scratch_operands = 1 : i64, tpu.core_type = #tpu.core_type<tc>, window_params = [{transform_indices = @transform_0, window_bounds = array<i64: 1, 128, 196>}, {pipeline_mode = #tpu.pipeline_mode<synchronous>, transform_indices = @transform_1, window_bounds = array<i64: 128, 2>}, {pipeline_mode = #tpu.pipeline_mode<synchronous>, transform_indices = @transform_2, window_bounds = array<i64: 288, 128>}, {transform_indices = @transform_3, window_bounds = array<i64: 1, 32, 256>}]} {
    %c0 = arith.constant 0 : index
    %c0_0 = arith.constant 0 : index
    %c0_1 = arith.constant 0 : index
    %0 = vector.load %arg1[%c0, %c0_0, %c0_1] : memref<1x128x196xf32, #tpu.memory_space<vmem>>, vector<1x128x196xf32>
    %1 = vector.shape_cast %0 : vector<1x128x196xf32> to vector<128x196xf32>
    %2 = arith.mulf %1, %1 : vector<128x196xf32>
    %3 = tpu.concatenate %1, %2 in 0 : vector<128x196xf32>, vector<128x196xf32> -> vector<256x196xf32>
    %cst = arith.constant 1.000000e+00 : f32
    %4 = vector.broadcast %cst : f32 to vector<196x1xf32>
    %cst_2 = arith.constant dense<0.000000e+00> : vector<256x1xf32>
    %5 = tpu.matmul %3, %4, %cst_2 {dimension_numbers = #tpu.dot_dimension_numbers<[1], [0], [0], [1], [0, 0, 1, 1], [], []>} : vector<256x196xf32>, vector<196x1xf32>, vector<256x1xf32> -> vector<256x1xf32>
    %6 = vector.extract_strided_slice %5 {offsets = [0, 0], sizes = [128, 1], strides = [1, 1]} : vector<256x1xf32> to vector<128x1xf32>
    %cst_3 = arith.constant 0.00510204071 : f32
    %7 = vector.broadcast %cst_3 : f32 to vector<128x1xf32>
    %8 = arith.mulf %6, %7 : vector<128x1xf32>
    %9 = vector.extract_strided_slice %5 {offsets = [128, 0], sizes = [128, 1], strides = [1, 1]} : vector<256x1xf32> to vector<128x1xf32>
    %cst_4 = arith.constant 0.00510204071 : f32
    %10 = vector.broadcast %cst_4 : f32 to vector<128x1xf32>
    %11 = arith.mulf %9, %10 : vector<128x1xf32>
    %12 = arith.mulf %8, %8 : vector<128x1xf32>
    %13 = arith.subf %11, %12 : vector<128x1xf32>
    %cst_5 = arith.constant 0.000000e+00 : f32
    %14 = vector.broadcast %cst_5 : f32 to vector<128x1xf32>
    %15 = arith.maximumf %13, %14 : vector<128x1xf32>
    %c0_6 = arith.constant 0 : index
    %c0_7 = arith.constant 0 : index
    %16 = vector.load %arg2[%c0_6, %c0_7] : memref<128x2xf32, #tpu.memory_space<vmem>>, vector<128x1xf32>
    %cst_8 = arith.constant 9.99999974E-6 : f32
    %17 = vector.broadcast %cst_8 : f32 to vector<128x1xf32>
    %18 = arith.addf %15, %17 : vector<128x1xf32>
    %19 = math.rsqrt %18 : vector<128x1xf32>
    %20 = arith.mulf %16, %19 : vector<128x1xf32>
    %c0_9 = arith.constant 0 : index
    %c1 = arith.constant 1 : index
    %21 = vector.load %arg2[%c0_9, %c1] : memref<128x2xf32, #tpu.memory_space<vmem>>, vector<128x1xf32>
    %22 = arith.mulf %8, %20 : vector<128x1xf32>
    %23 = arith.subf %21, %22 : vector<128x1xf32>
    %24 = vector.broadcast %20 : vector<128x1xf32> to vector<128x196xf32>
    %25 = arith.mulf %1, %24 : vector<128x196xf32>
    %26 = vector.broadcast %23 : vector<128x1xf32> to vector<128x196xf32>
    %27 = arith.addf %25, %26 : vector<128x196xf32>
    %cst_10 = arith.constant 0.000000e+00 : f32
    %28 = vector.broadcast %cst_10 : f32 to vector<128x196xf32>
    %29 = arith.maximumf %27, %28 : vector<128x196xf32>
    %cst_11 = arith.constant 0.000000e+00 : f32
    %30 = vector.broadcast %cst_11 : f32 to vector<128x256xf32>
    %c0_12 = arith.constant 0 : index
    %c0_13 = arith.constant 0 : index
    %31 = vector.load %arg5[%c0_12, %c0_13] : memref<128x256xf32, #tpu.memory_space<vmem>>, vector<128x256xf32>
    tpu.vector_store %arg5[%c0_12, %c0_13], %30 {strides = array<i32>} : memref<128x256xf32, #tpu.memory_space<vmem>>, vector<128x256xf32>,
    %32 = vector.extract_strided_slice %29 {offsets = [0, 0], sizes = [128, 14], strides = [1, 1]} : vector<128x196xf32> to vector<128x14xf32>
    %c0_14 = arith.constant 0 : index
    %c17 = arith.constant 17 : index
    %33 = vector.load %arg5[%c0_14, %c17] : memref<128x256xf32, #tpu.memory_space<vmem>>, vector<128x14xf32>
    tpu.vector_store %arg5[%c0_14, %c17], %32 {strides = array<i32>} : memref<128x256xf32, #tpu.memory_space<vmem>>, vector<128x14xf32>,
    %34 = vector.extract_strided_slice %29 {offsets = [0, 14], sizes = [128, 14], strides = [1, 1]} : vector<128x196xf32> to vector<128x14xf32>
    %c0_15 = arith.constant 0 : index
    %c33 = arith.constant 33 : index
    %35 = vector.load %arg5[%c0_15, %c33] : memref<128x256xf32, #tpu.memory_space<vmem>>, vector<128x14xf32>
    tpu.vector_store %arg5[%c0_15, %c33], %34 {strides = array<i32>} : memref<128x256xf32, #tpu.memory_space<vmem>>, vector<128x14xf32>,
    %36 = vector.extract_strided_slice %29 {offsets = [0, 28], sizes = [128, 14], strides = [1, 1]} : vector<128x196xf32> to vector<128x14xf32>
    %c0_16 = arith.constant 0 : index
    %c49 = arith.constant 49 : index
    %37 = vector.load %arg5[%c0_16, %c49] : memref<128x256xf32, #tpu.memory_space<vmem>>, vector<128x14xf32>
    tpu.vector_store %arg5[%c0_16, %c49], %36 {strides = array<i32>} : memref<128x256xf32, #tpu.memory_space<vmem>>, vector<128x14xf32>,
    %38 = vector.extract_strided_slice %29 {offsets = [0, 42], sizes = [128, 14], strides = [1, 1]} : vector<128x196xf32> to vector<128x14xf32>
    %c0_17 = arith.constant 0 : index
    %c65 = arith.constant 65 : index
    %39 = vector.load %arg5[%c0_17, %c65] : memref<128x256xf32, #tpu.memory_space<vmem>>, vector<128x14xf32>
    tpu.vector_store %arg5[%c0_17, %c65], %38 {strides = array<i32>} : memref<128x256xf32, #tpu.memory_space<vmem>>, vector<128x14xf32>,
    %40 = vector.extract_strided_slice %29 {offsets = [0, 56], sizes = [128, 14], strides = [1, 1]} : vector<128x196xf32> to vector<128x14xf32>
    %c0_18 = arith.constant 0 : index
    %c81 = arith.constant 81 : index
    %41 = vector.load %arg5[%c0_18, %c81] : memref<128x256xf32, #tpu.memory_space<vmem>>, vector<128x14xf32>
    tpu.vector_store %arg5[%c0_18, %c81], %40 {strides = array<i32>} : memref<128x256xf32, #tpu.memory_space<vmem>>, vector<128x14xf32>,
    %42 = vector.extract_strided_slice %29 {offsets = [0, 70], sizes = [128, 14], strides = [1, 1]} : vector<128x196xf32> to vector<128x14xf32>
    %c0_19 = arith.constant 0 : index
    %c97 = arith.constant 97 : index
    %43 = vector.load %arg5[%c0_19, %c97] : memref<128x256xf32, #tpu.memory_space<vmem>>, vector<128x14xf32>
    tpu.vector_store %arg5[%c0_19, %c97], %42 {strides = array<i32>} : memref<128x256xf32, #tpu.memory_space<vmem>>, vector<128x14xf32>,
    %44 = vector.extract_strided_slice %29 {offsets = [0, 84], sizes = [128, 14], strides = [1, 1]} : vector<128x196xf32> to vector<128x14xf32>
    %c0_20 = arith.constant 0 : index
    %c113 = arith.constant 113 : index
    %45 = vector.load %arg5[%c0_20, %c113] : memref<128x256xf32, #tpu.memory_space<vmem>>, vector<128x14xf32>
    tpu.vector_store %arg5[%c0_20, %c113], %44 {strides = array<i32>} : memref<128x256xf32, #tpu.memory_space<vmem>>, vector<128x14xf32>,
    %46 = vector.extract_strided_slice %29 {offsets = [0, 98], sizes = [128, 14], strides = [1, 1]} : vector<128x196xf32> to vector<128x14xf32>
    %c0_21 = arith.constant 0 : index
    %c129 = arith.constant 129 : index
    %47 = vector.load %arg5[%c0_21, %c129] : memref<128x256xf32, #tpu.memory_space<vmem>>, vector<128x14xf32>
    tpu.vector_store %arg5[%c0_21, %c129], %46 {strides = array<i32>} : memref<128x256xf32, #tpu.memory_space<vmem>>, vector<128x14xf32>,
    %48 = vector.extract_strided_slice %29 {offsets = [0, 112], sizes = [128, 14], strides = [1, 1]} : vector<128x196xf32> to vector<128x14xf32>
    %c0_22 = arith.constant 0 : index
    %c145 = arith.constant 145 : index
    %49 = vector.load %arg5[%c0_22, %c145] : memref<128x256xf32, #tpu.memory_space<vmem>>, vector<128x14xf32>
    tpu.vector_store %arg5[%c0_22, %c145], %48 {strides = array<i32>} : memref<128x256xf32, #tpu.memory_space<vmem>>, vector<128x14xf32>,
    %50 = vector.extract_strided_slice %29 {offsets = [0, 126], sizes = [128, 14], strides = [1, 1]} : vector<128x196xf32> to vector<128x14xf32>
    %c0_23 = arith.constant 0 : index
    %c161 = arith.constant 161 : index
    %51 = vector.load %arg5[%c0_23, %c161] : memref<128x256xf32, #tpu.memory_space<vmem>>, vector<128x14xf32>
    tpu.vector_store %arg5[%c0_23, %c161], %50 {strides = array<i32>} : memref<128x256xf32, #tpu.memory_space<vmem>>, vector<128x14xf32>,
    %52 = vector.extract_strided_slice %29 {offsets = [0, 140], sizes = [128, 14], strides = [1, 1]} : vector<128x196xf32> to vector<128x14xf32>
    %c0_24 = arith.constant 0 : index
    %c177 = arith.constant 177 : index
    %53 = vector.load %arg5[%c0_24, %c177] : memref<128x256xf32, #tpu.memory_space<vmem>>, vector<128x14xf32>
    tpu.vector_store %arg5[%c0_24, %c177], %52 {strides = array<i32>} : memref<128x256xf32, #tpu.memory_space<vmem>>, vector<128x14xf32>,
    %54 = vector.extract_strided_slice %29 {offsets = [0, 154], sizes = [128, 14], strides = [1, 1]} : vector<128x196xf32> to vector<128x14xf32>
    %c0_25 = arith.constant 0 : index
    %c193 = arith.constant 193 : index
    %55 = vector.load %arg5[%c0_25, %c193] : memref<128x256xf32, #tpu.memory_space<vmem>>, vector<128x14xf32>
    tpu.vector_store %arg5[%c0_25, %c193], %54 {strides = array<i32>} : memref<128x256xf32, #tpu.memory_space<vmem>>, vector<128x14xf32>,
    %56 = vector.extract_strided_slice %29 {offsets = [0, 168], sizes = [128, 14], strides = [1, 1]} : vector<128x196xf32> to vector<128x14xf32>
    %c0_26 = arith.constant 0 : index
    %c209 = arith.constant 209 : index
    %57 = vector.load %arg5[%c0_26, %c209] : memref<128x256xf32, #tpu.memory_space<vmem>>, vector<128x14xf32>
    tpu.vector_store %arg5[%c0_26, %c209], %56 {strides = array<i32>} : memref<128x256xf32, #tpu.memory_space<vmem>>, vector<128x14xf32>,
    %58 = vector.extract_strided_slice %29 {offsets = [0, 182], sizes = [128, 14], strides = [1, 1]} : vector<128x196xf32> to vector<128x14xf32>
    %c0_27 = arith.constant 0 : index
    %c225 = arith.constant 225 : index
    %59 = vector.load %arg5[%c0_27, %c225] : memref<128x256xf32, #tpu.memory_space<vmem>>, vector<128x14xf32>
    tpu.vector_store %arg5[%c0_27, %c225], %58 {strides = array<i32>} : memref<128x256xf32, #tpu.memory_space<vmem>>, vector<128x14xf32>,
    %c0_28 = arith.constant 0 : index
    %c0_29 = arith.constant 0 : index
    %60 = vector.load %arg5[%c0_28, %c0_29] : memref<128x256xf32, #tpu.memory_space<vmem>>, vector<128x256xf32>
    %61 = arith.truncf %60 : vector<128x256xf32> to vector<128x256xbf16>
    %c0_30 = arith.constant 0 : index
    %c0_31 = arith.constant 0 : index
    %62 = vector.load %arg3[%c0_30, %c0_31] : memref<288x128xbf16, #tpu.memory_space<vmem>>, vector<288x128xbf16>
    %cst_32 = arith.constant dense<0.000000e+00> : vector<288x256xf32>
    %63 = tpu.matmul %62, %61, %cst_32 {dimension_numbers = #tpu.dot_dimension_numbers<[1], [0], [0], [1], [0, 0, 1, 1], [], []>} : vector<288x128xbf16>, vector<128x256xbf16>, vector<288x256xf32> -> vector<288x256xf32>
    %64 = vector.extract_strided_slice %63 {offsets = [0, 0], sizes = [32, 256], strides = [1, 1]} : vector<288x256xf32> to vector<32x256xf32>
    %65 = vector.extract_strided_slice %63 {offsets = [32, 0], sizes = [32, 256], strides = [1, 1]} : vector<288x256xf32> to vector<32x256xf32>
    %c255_i32 = arith.constant 255 : i32
    %66 = tpu.dynamic_rotate %65 by %c255_i32 dim 1 : vector<32x256xf32>, i32 -> vector<32x256xf32>
    %67 = vector.extract_strided_slice %63 {offsets = [64, 0], sizes = [32, 256], strides = [1, 1]} : vector<288x256xf32> to vector<32x256xf32>
    %c254_i32 = arith.constant 254 : i32
    %68 = tpu.dynamic_rotate %67 by %c254_i32 dim 1 : vector<32x256xf32>, i32 -> vector<32x256xf32>
    %69 = vector.extract_strided_slice %63 {offsets = [96, 0], sizes = [32, 256], strides = [1, 1]} : vector<288x256xf32> to vector<32x256xf32>
    %c240_i32 = arith.constant 240 : i32
    %70 = tpu.dynamic_rotate %69 by %c240_i32 dim 1 : vector<32x256xf32>, i32 -> vector<32x256xf32>
    %71 = vector.extract_strided_slice %63 {offsets = [128, 0], sizes = [32, 256], strides = [1, 1]} : vector<288x256xf32> to vector<32x256xf32>
    %c239_i32 = arith.constant 239 : i32
    %72 = tpu.dynamic_rotate %71 by %c239_i32 dim 1 : vector<32x256xf32>, i32 -> vector<32x256xf32>
    %73 = vector.extract_strided_slice %63 {offsets = [160, 0], sizes = [32, 256], strides = [1, 1]} : vector<288x256xf32> to vector<32x256xf32>
    %c238_i32 = arith.constant 238 : i32
    %74 = tpu.dynamic_rotate %73 by %c238_i32 dim 1 : vector<32x256xf32>, i32 -> vector<32x256xf32>
    %75 = vector.extract_strided_slice %63 {offsets = [192, 0], sizes = [32, 256], strides = [1, 1]} : vector<288x256xf32> to vector<32x256xf32>
    %c224_i32 = arith.constant 224 : i32
    %76 = tpu.dynamic_rotate %75 by %c224_i32 dim 1 : vector<32x256xf32>, i32 -> vector<32x256xf32>
    %77 = vector.extract_strided_slice %63 {offsets = [224, 0], sizes = [32, 256], strides = [1, 1]} : vector<288x256xf32> to vector<32x256xf32>
    %c223_i32 = arith.constant 223 : i32
    %78 = tpu.dynamic_rotate %77 by %c223_i32 dim 1 : vector<32x256xf32>, i32 -> vector<32x256xf32>
    %79 = vector.extract_strided_slice %63 {offsets = [256, 0], sizes = [32, 256], strides = [1, 1]} : vector<288x256xf32> to vector<32x256xf32>
    %c222_i32 = arith.constant 222 : i32
    %80 = tpu.dynamic_rotate %79 by %c222_i32 dim 1 : vector<32x256xf32>, i32 -> vector<32x256xf32>
    %81 = arith.addf %64, %66 : vector<32x256xf32>
    %82 = arith.addf %68, %70 : vector<32x256xf32>
    %83 = arith.addf %72, %74 : vector<32x256xf32>
    %84 = arith.addf %76, %78 : vector<32x256xf32>
    %85 = arith.addf %81, %82 : vector<32x256xf32>
    %86 = arith.addf %83, %84 : vector<32x256xf32>
    %87 = arith.addf %85, %86 : vector<32x256xf32>
    %88 = arith.addf %87, %80 : vector<32x256xf32>
    %c0_33 = arith.constant 0 : index
    %c0_34 = arith.constant 0 : index
    %c0_35 = arith.constant 0 : index
    %89 = vector.load %arg4[%c0_33, %c0_34, %c0_35] : memref<1x32x256xf32, #tpu.memory_space<vmem>>, vector<1x32x256xf32>
    %90 = vector.shape_cast %89 : vector<1x32x256xf32> to vector<32x256xf32>
    %91 = vector.shape_cast %88 : vector<32x256xf32> to vector<1x32x256xf32>
    tpu.vector_store %arg4[%c0_33, %c0_34, %c0_35], %91 {strides = array<i32>} : memref<1x32x256xf32, #tpu.memory_space<vmem>>, vector<1x32x256xf32>,
    return
  }
  func.func @transform_0(%arg0: i32) -> (i32, i32, i32) {
    %c0_i32 = arith.constant 0 : i32
    %c0_i32_0 = arith.constant 0 : i32
    %c0_i32_1 = arith.constant 0 : i32
    return %arg0, %c0_i32, %c0_i32_0 : i32, i32, i32
  }
  func.func @transform_1(%arg0: i32) -> (i32, i32) {
    %c0_i32 = arith.constant 0 : i32
    %c0_i32_0 = arith.constant 0 : i32
    %c0_i32_1 = arith.constant 0 : i32
    return %c0_i32, %c0_i32_0 : i32, i32
  }
  func.func @transform_2(%arg0: i32) -> (i32, i32) {
    %c0_i32 = arith.constant 0 : i32
    %c0_i32_0 = arith.constant 0 : i32
    %c0_i32_1 = arith.constant 0 : i32
    return %c0_i32, %c0_i32_0 : i32, i32
  }
  func.func @transform_3(%arg0: i32) -> (i32, i32, i32) {
    %c0_i32 = arith.constant 0 : i32
    %c0_i32_0 = arith.constant 0 : i32
    %c0_i32_1 = arith.constant 0 : i32
    return %arg0, %c0_i32, %c0_i32_0 : i32, i32, i32
  }
}

</mosaic_0001>

<bundles_post_ra>
// kernel: bn_relu_conv.1
= control target key start
LH: loop header
LB: loop body
LE: loop exit
PB: predicated region body
PF: predicated region fallthrough
CT: control target
= control target key end

     0   :  { %vm175_vm0 = vcmask 1043456   ;;  %v2966_v0 = vmov 1.0   ;;  %vm78_vm1 = vcmask 556032   ;;  %s2968_s24 = smov 1   ;;  %s2970_s29 = smov 21   ;;  %s4698_s0 = inlined_call_operand.vmem [shape: f32[1,128,196], index: 0, kind: input, shape index: {}]   ;;  %s4699_s1 = inlined_call_operand.vmem [shape: f32[128,2], index: 1, kind: input, shape index: {}]   ;;  %s4700_s2 = inlined_call_operand.vmem [shape: bf16[288,128], index: 2, kind: input, shape index: {}]   ;;  %s4701_s3 = inlined_call_operand.vmem [shape: f32[1,32,256], index: 3, kind: output, shape index: {}]  }
   0x1   :  { %179 = vmatpush.msra.mxu0 %v2966_v0  ;;  %2730 = vmatpush.msk.msra.mxu1 %vm175_vm0, %v2966_v0  ;;  %v3016_v1 = vld [vmem:[%s4698_s0 + $0x8] sm:$0xff]  ;;  %v3023_v2 = vld [vmem:[%s4698_s0 + $0x18] sm:$0xff]  ;;  %v3030_v3 = vld [vmem:[%s4698_s0] sm:$0xff]  ;;  %s2971_s30 = smov 17   ;;  %s2972_s4 = smov 19  }
   0x2   :  { %v3035_v4 = vld [vmem:[%s4698_s0 + $0x28] sm:$0xff]  ;;  %v3043_v5 = vld [vmem:[%s4698_s0 + $0x10] sm:$0xff]  ;;  %v3048_v6 = vld [vmem:[%s4698_s0 + $0x38] sm:$0xff]  ;;  %v47_v32 = vmul.f32 %v3016_v1, %v3016_v1  ;;  %v49_v35 = vmul.f32 %v3023_v2, %v3023_v2  ;;  %v46_v37 = vmul.f32 %v3030_v3, %v3030_v3  ;;  %s2973_s5 = smov 27   ;;  %s2974_s6 = smov 23  }
   0x3   :  { %180 = vmatpush.msra.mxu0 %v2966_v0  ;;  %300 = vmatpush.msra.mxu1 %v2966_v0  ;;  %v3056_v7 = vld [vmem:[%s4698_s0 + $0x20] sm:$0xff]  ;;  %v3061_v8 = vld [vmem:[%s4698_s0 + $0x48] sm:$0xff]  ;;  %v3069_v9 = vld [vmem:[%s4698_s0 + $0x30] sm:$0xff]  ;;  %v51_v39 = vmul.f32 %v3035_v4, %v3035_v4  ;;  %v48_v41 = vmul.f32 %v3043_v5, %v3043_v5  ;;  %v53_v43 = vmul.f32 %v3048_v6, %v3048_v6  ;;  %s2975_s7 = smov 25   ;;  %s2976_s10 = smov 33  }
   0x4   :  { %v3074_v10 = vld [vmem:[%s4698_s0 + $0x58] sm:$0xff]  ;;  %v3082_v11 = vld [vmem:[%s4698_s0 + $0x40] sm:$0xff]  ;;  %v3087_v12 = vld [vmem:[%s4698_s0 + $0x68] sm:$0xff]  ;;  %v50_v45 = vmul.f32 %v3056_v7, %v3056_v7  ;;  %v55_v47 = vmul.f32 %v3061_v8, %v3061_v8  ;;  %v52_v49 = vmul.f32 %v3069_v9, %v3069_v9  ;;  %s2977_s11 = smov 29   ;;  %s2978_s12 = smov 31  }
   0x5   :  { %181 = vmatpush.msra.mxu0 %v2966_v0  ;;  %301 = vmatpush.msra.mxu1 %v2966_v0  ;;  %v3095_v13 = vld [vmem:[%s4698_s0 + $0x50] sm:$0xff]  ;;  %v3100_v14 = vld [vmem:[%s4698_s0 + $0x78] sm:$0xff]  ;;  %v3108_v15 = vld [vmem:[%s4698_s0 + $0x60] sm:$0xff]  ;;  %v57_v51 = vmul.f32 %v3074_v10, %v3074_v10  ;;  %v54_v53 = vmul.f32 %v3082_v11, %v3082_v11  ;;  %v59_v55 = vmul.f32 %v3087_v12, %v3087_v12  ;;  %s2980_s21 = smov 35   ;;  %s2981_s8 = smov 37  }
   0x6   :  { %v3113_v16 = vld [vmem:[%s4698_s0 + $0x88] sm:$0xff]  ;;  %v3121_v17 = vld [vmem:[%s4698_s0 + $0x70] sm:$0xff]  ;;  %v3126_v18 = vld [vmem:[%s4698_s0 + $0x98] sm:$0xff]  ;;  %v56_v57 = vmul.f32 %v3095_v13, %v3095_v13  ;;  %v61_v59 = vmul.f32 %v3100_v14, %v3100_v14  ;;  %v58_v61 = vmul.f32 %v3108_v15, %v3108_v15  ;;  %s2982_s14 = smov 41   ;;  %s2983_s15 = smov 43  }
   0x7   :  { %182 = vmatpush.msra.mxu0 %v2966_v0  ;;  %302 = vmatpush.msra.mxu1 %v2966_v0  ;;  %v3134_v19 = vld [vmem:[%s4698_s0 + $0x80] sm:$0xff]  ;;  %v3139_v20 = vld [vmem:[%s4698_s0 + $0xa8] sm:$0xff]  ;;  %v3147_v21 = vld [vmem:[%s4698_s0 + $0x90] sm:$0xff]  ;;  %v63_v63 = vmul.f32 %v3113_v16, %v3113_v16  ;;  %s2984_s16 = smov 39   ;;  %s2987_s27 = smov 112  }
   0x8   :  { %v3152_v22 = vld [vmem:[%s4698_s0 + $0xb8] sm:$0xff]  ;;  %v3160_v23 = vld [vmem:[%s4698_s0 + $0xa0] sm:$0xff]  ;;  %v3165_v24 = vld [vmem:[%s4698_s0 + $0xc8] sm:$0xff]  ;;  %s2989_s28 = smov 110   ;;  %s2992_s9 = smov 94  }
   0x9   :  { %183 = vmatpush.msra.mxu0 %v2966_v0  ;;  %303 = vmatpush.msra.mxu1 %v2966_v0  ;;  %v3173_v25 = vld [vmem:[%s4698_s0 + $0xb0] sm:$0xff]  ;;  %v3178_v26 = vld [vmem:[%s4698_s0 + $0xd8] sm:$0xff]  ;;  %v3186_v27 = vld [vmem:[%s4698_s0 + $0xc0] sm:$0xff] }
   0xa   :  { %v3191_v28 = vld [vmem:[%s4698_s0 + $0xe8] sm:$0xff]  ;;  %v3199_v29 = vld [vmem:[%s4698_s0 + $0xd0] sm:$0xff]  ;;  %v3204_v30 = vld [vmem:[%s4698_s0 + $0xf8] sm:$0xff] }
   0xb   :  { %184 = vmatpush.msra.mxu0 %v2966_v0  ;;  %304 = vmatpush.msra.mxu1 %v2966_v0  ;;  %v3212_v31 = vld [vmem:[%s4698_s0 + $0xe0] sm:$0xff]  ;;  %v3223_v34 = vld [vmem:[%s4698_s0 + $0xf0] sm:$0xff] }
   0xd   :  { %185 = vmatpush.msra.mxu0 %v2966_v0  ;;  %305 = vmatpush.msra.mxu1 %v2966_v0 }
   0xf   :  { %186 = vmatpush.msra.mxu0 %v2966_v0  ;;  %306 = vmatpush.msra.mxu1 %v2966_v0 }
  0x11   :  { %187 = vmatpush.msra.mxu0 %v2966_v0  ;;  %307 = vmatpush.msra.mxu1 %v2966_v0 }
  0x12   :  { %2731 = vmatmul.msk.f32.vlgmr.msra.gmra.mxu1 %vm78_vm1, %v3016_v1  ;;  %v60_v1 = vmul.f32 %v3121_v17, %v3121_v17 }
  0x13   :  { %188 = vmatpush.msra.mxu0 %v2966_v0 }
  0x15   :  { %189 = vmatpush.msra.mxu0 %v2966_v0 }
  0x17   :  { %190 = vmatpush.msra.mxu0 %v2966_v0 }
  0x19   :  { %191 = vmatpush.msra.mxu0 %v2966_v0 }
  0x1a   :  { %2732 = vmatmul.msk.f32.gmra.mxu1 %vm78_vm1, %v3023_v2 }
  0x1b   :  { %192 = vmatpush.msra.mxu0 %v2966_v0 }
  0x1d   :  { %193 = vmatpush.msra.mxu0 %v2966_v0 }
  0x1f   :  { %194 = vmatpush.msra.mxu0 %v2966_v0 }
  0x20   :  { %195 = vmatmul.f32.vlgmr.msra.gmra.mxu0 %v3030_v3  ;;  %v65_v3 = vmul.f32 %v3126_v18, %v3126_v18 }
  0x22   :  { %2733 = vmatmul.msk.f32.gmra.mxu1 %vm78_vm1, %v3035_v4 }
  0x28   :  { %198 = vmatmul.f32.gmra.mxu0 %v3043_v5  ;;  %v62_v5 = vmul.f32 %v3134_v19, %v3134_v19 }
  0x2a   :  { %2734 = vmatmul.msk.f32.gmra.mxu1 %vm78_vm1, %v3048_v6 }
  0x30   :  { %201 = vmatmul.f32.gmra.mxu0 %v3056_v7  ;;  %v67_v7 = vmul.f32 %v3139_v20, %v3139_v20 }
  0x32   :  { %2735 = vmatmul.msk.f32.gmra.mxu1 %vm78_vm1, %v3061_v8 }
  0x38   :  { %204 = vmatmul.f32.gmra.mxu0 %v3069_v9 }
  0x3a   :  { %2736 = vmatmul.msk.f32.gmra.mxu1 %vm78_vm1, %v3074_v10  ;;  %v64_v10 = vmul.f32 %v3147_v21, %v3147_v21 }
  0x40   :  { %207 = vmatmul.f32.gmra.mxu0 %v3082_v11 }
  0x42   :  { %2737 = vmatmul.msk.f32.gmra.mxu1 %vm78_vm1, %v3087_v12  ;;  %v69_v12 = vmul.f32 %v3152_v22, %v3152_v22 }
  0x48   :  { %210 = vmatmul.f32.gmra.mxu0 %v3095_v13 }
  0x4a   :  { %2738 = vmatmul.msk.f32.gmra.mxu1 %vm78_vm1, %v3100_v14  ;;  %v66_v14 = vmul.f32 %v3160_v23, %v3160_v23 }
  0x50   :  { %213 = vmatmul.f32.gmra.mxu0 %v3108_v15 }
  0x52   :  { %2739 = vmatmul.msk.f32.gmra.mxu1 %vm78_vm1, %v3113_v16  ;;  %v71_v16 = vmul.f32 %v3165_v24, %v3165_v24 }
  0x58   :  { %216 = vmatmul.f32.gmra.mxu0 %v3121_v17 }
  0x5a   :  { %2740 = vmatmul.msk.f32.gmra.mxu1 %vm78_vm1, %v3126_v18 }
  0x60   :  { %219 = vmatmul.f32.gmra.mxu0 %v3134_v19  ;;  %v68_v19 = vmul.f32 %v3173_v25, %v3173_v25 }
  0x62   :  { %2741 = vmatmul.msk.f32.gmra.mxu1 %vm78_vm1, %v3139_v20 }
  0x68   :  { %222 = vmatmul.f32.gmra.mxu0 %v3147_v21  ;;  %v73_v21 = vmul.f32 %v3178_v26, %v3178_v26 }
  0x6a   :  { %2742 = vmatmul.msk.f32.gmra.mxu1 %vm78_vm1, %v3152_v22 }
  0x70   :  { %225 = vmatmul.f32.gmra.mxu0 %v3160_v23 }
  0x72   :  { %2743 = vmatmul.msk.f32.gmra.mxu1 %vm78_vm1, %v3165_v24  ;;  %v70_v24 = vmul.f32 %v3186_v27, %v3186_v27 }
  0x78   :  { %228 = vmatmul.f32.gmra.mxu0 %v3173_v25 }
  0x7a   :  { %2744 = vmatmul.msk.f32.gmra.mxu1 %vm78_vm1, %v3178_v26  ;;  %v72_v26 = vmul.f32 %v3199_v29, %v3199_v29 }
  0x80   :  { %231 = vmatmul.f32.gmra.mxu0 %v3186_v27 }
  0x82   :  { %2745 = vmatmul.msk.f32.gmra.mxu1 %vm78_vm1, %v3191_v28 }
  0x88   :  { %234 = vmatmul.f32.gmra.mxu0 %v3199_v29  ;;  %v76_v29 = vmul.f32 %v3223_v34, %v3223_v34 }
  0x8a   :  { %2746 = vmatmul.msk.f32.gmra.mxu1 %vm78_vm1, %v3204_v30 }
  0x8f   :  { %v3216_v33 = vpop.f32.mrf.mxu1 }
  0x90   :  { %237 = vmatmul.f32.gmra.mxu0 %v3212_v31 }
  0x92   :  { %2747 = vmatmul.msk.f32.gmra.mxu1 %vm78_vm1, %v47_v32 }
  0x97   :  { %v3227_v36 = vpop.f32.mrf.mxu1 }
  0x98   :  { %240 = vmatmul.f32.gmra.mxu0 %v3223_v34 }
  0x9a   :  { %2748 = vmatmul.msk.f32.gmra.mxu1 %vm78_vm1, %v49_v35  ;;  %v75_v35 = vmul.f32 %v3191_v28, %v3191_v28  ;;  %v74_v28 = vmul.f32 %v3212_v31, %v3212_v31 }
  0x9d   :  { %v3233_v38 = vpop.f32.mrf.mxu0 }
  0x9f   :  { %v3237_v40 = vpop.f32.mrf.mxu1 }
  0xa0   :  { %243 = vmatmul.f32.gmra.mxu0 %v46_v37 }
  0xa2   :  { %2749 = vmatmul.msk.f32.gmra.mxu1 %vm78_vm1, %v51_v39 }
  0xa5   :  { %v3242_v42 = vpop.f32.mrf.mxu0 }
  0xa6   :  { %v313_v34 = vadd.f32 %v3227_v36, %v3242_v42 }
  0xa7   :  { %v3246_v44 = vpop.f32.mrf.mxu1 }
  0xa8   :  { %246 = vmatmul.f32.gmra.mxu0 %v48_v41  ;;  %v77_v41 = vmul.f32 %v3204_v30, %v3204_v30 }
  0xaa   :  { %2750 = vmatmul.msk.f32.gmra.mxu1 %vm78_vm1, %v53_v43 }
  0xad   :  { %v3251_v46 = vpop.f32.mrf.mxu0 }
  0xaf   :  { %v3255_v48 = vpop.f32.mrf.mxu1 }
  0xb0   :  { %249 = vmatmul.f32.gmra.mxu0 %v50_v45 }
  0xb2   :  { %2751 = vmatmul.msk.f32.gmra.mxu1 %vm78_vm1, %v55_v47 }
  0xb5   :  { %v3260_v50 = vpop.f32.mrf.mxu0 }
  0xb7   :  { %v3264_v52 = vpop.f32.mrf.mxu1 }
  0xb8   :  { %252 = vmatmul.f32.gmra.mxu0 %v52_v49 }
  0xba   :  { %2752 = vmatmul.msk.f32.gmra.mxu1 %vm78_vm1, %v57_v51 }
  0xbd   :  { %v3269_v54 = vpop.f32.mrf.mxu0 }
  0xbf   :  { %v3273_v56 = vpop.f32.mrf.mxu1 }
  0xc0   :  { %255 = vmatmul.f32.gmra.mxu0 %v54_v53 }
  0xc2   :  { %2753 = vmatmul.msk.f32.gmra.mxu1 %vm78_vm1, %v59_v55  ;;  %v310_v55 = vadd.f32 %v3216_v33, %v3233_v38 }
  0xc4   :  { %v405_v31 = vmul.f32 0.0051020407, %v310_v55 }
  0xc5   :  { %v3278_v58 = vpop.f32.mrf.mxu0 }
  0xc7   :  { %v3282_v60 = vpop.f32.mrf.mxu1 }
  0xc8   :  { %258 = vmatmul.f32.gmra.mxu0 %v56_v57  ;;  %v2967_v57 = vmov 0  }
  0xc9   :  { %2896 = vset.pattern.permute.xlu1 %v2967_v57  ;;  %2897 = vset.pattern.permute.xlu2 %v2967_v57 }
  0xca   :  { %2754 = vmatmul.msk.f32.gmra.mxu1 %vm78_vm1, %v61_v59  ;;  %2898 = vset.pattern.permute.xlu0 %v2967_v57 }
  0xcd   :  { %v3287_v62 = vpop.f32.mrf.mxu0 }
  0xcf   :  { %v333_v0 = vpop.f32.mrf.mxu1 }
  0xd0   :  { %261 = vmatmul.f32.gmra.mxu0 %v58_v61 }
  0xd2   :  { %2755 = vmatmul.msk.f32.gmra.mxu1 %vm78_vm1, %v63_v63 }
  0xd5   :  { %v3294_v2 = vpop.f32.mrf.mxu0 }
  0xd7   :  { %v3298_v4 = vpop.f32.mrf.mxu1 }
  0xd8   :  { %264 = vmatmul.f32.gmra.mxu0 %v60_v1 }
  0xda   :  { %2756 = vmatmul.msk.f32.gmra.mxu1 %vm78_vm1, %v65_v3 }
  0xdd   :  { %v220_v6 = vpop.f32.mrf.mxu0 }
  0xde   :  { %v3305_v8 = vadd.f32 %v333_v0, %v220_v6  ;;  %v437_v0 = vmul.f32 %v405_v31, %v405_v31 }
  0xdf   :  { %v339_v9 = vpop.f32.mrf.mxu1 }
  0xe0   :  { %267 = vmatmul.f32.gmra.mxu0 %v62_v5  ;;  %v3355_v5 = vmul.f32 0.0051020407, %v313_v34 }
  0xe2   :  { %2757 = vmatmul.msk.f32.gmra.mxu1 %vm78_vm1, %v67_v7 }
  0xe5   :  { %v3310_v11 = vpop.f32.mrf.mxu0 }
  0xe7   :  { %v342_v13 = vpop.f32.mrf.mxu1 }
  0xe8   :  { %270 = vmatmul.f32.gmra.mxu0 %v64_v10  ;;  %v438_v10 = vmul.f32 %v3355_v5, %v3355_v5 }
  0xea   :  { %2758 = vmatmul.msk.f32.gmra.mxu1 %vm78_vm1, %v69_v12  ;;  %v316_v12 = vadd.f32 %v3237_v40, %v3251_v46 }
  0xed   :  { %v226_v15 = vpop.f32.mrf.mxu0 }
  0xee   :  { %v3319_v17 = vadd.f32 %v339_v9, %v226_v15  ;;  %v3361_v15 = vmul.f32 0.0051020407, %v316_v12 }
  0xef   :  { %v345_v18 = vpop.f32.mrf.mxu1 }
  0xf0   :  { %273 = vmatmul.f32.gmra.mxu0 %v66_v14 }
  0xf2   :  { %2759 = vmatmul.msk.f32.gmra.mxu1 %vm78_vm1, %v71_v16 }
  0xf5   :  { %v229_v20 = vpop.f32.mrf.mxu0 }
  0xf6   :  { %v3326_v22 = vadd.f32 %v342_v13, %v229_v20 }
  0xf7   :  { %v348_v23 = vpop.f32.mrf.mxu1 }
  0xf8   :  { %276 = vmatmul.f32.gmra.mxu0 %v68_v19 }
  0xfa   :  { %2760 = vmatmul.msk.f32.gmra.mxu1 %vm78_vm1, %v73_v21 }
  0xfd   :  { %v232_v32 = vpop.f32.mrf.mxu0 }
  0xfe   :  { %v3333_v37 = vadd.f32 %v345_v18, %v232_v32 }
  0xff   :  { %v351_v25 = vpop.f32.mrf.mxu1 }
 0x100   :  { %279 = vmatmul.f32.gmra.mxu0 %v70_v24  ;;  %v319_v24 = vadd.f32 %v3246_v44, %v3260_v50  ;;  %v3374_v44 = vld [vmem:[%s4699_s1] sm:$0xff] }
 0x102   :  { %2761 = vmatmul.msk.f32.gmra.mxu1 %vm78_vm1, %v75_v35 }
 0x105   :  { %v235_v39 = vpop.f32.mrf.mxu0 }
 0x106   :  { %v3340_v43 = vadd.f32 %v348_v23, %v235_v39  ;;  %v439_v23 = vmul.f32 %v3361_v15, %v3361_v15 }
 0x107   :  { %v354_v27 = vpop.f32.mrf.mxu1 }
 0x108   :  { %282 = vmatmul.f32.gmra.mxu0 %v72_v26 }
 0x10a   :  { %2762 = vmatmul.msk.f32.gmra.mxu1 %vm78_vm1, %v77_v41 }
 0x10d   :  { %v238_v45 = vpop.f32.mrf.mxu0 }
 0x10e   :  { %v3345_v47 = vadd.f32 %v351_v25, %v238_v45  ;;  %v3367_v25 = vmul.f32 0.0051020407, %v319_v24 }
 0x10f   :  { %v357_v49 = vpop.f32.mrf.mxu1 }
 0x110   :  { %285 = vmatmul.f32.gmra.mxu0 %v74_v28 }
 0x115   :  { %v241_v51 = vpop.f32.mrf.mxu0 }
 0x116   :  { %v3349_v53 = vadd.f32 %v354_v27, %v241_v51  ;;  %v440_v51 = vmul.f32 %v3367_v25, %v3367_v25 }
 0x117   :  { %v360_v30 = vpop.f32.mrf.mxu1 }
 0x118   :  { %288 = vmatmul.f32.gmra.mxu0 %v76_v29 }
 0x11d   :  { %v244_v59 = vpop.f32.mrf.mxu0 }
 0x11e   :  { %v358_v61 = vadd.f32 %v357_v49, %v244_v59 }
 0x11f   :  { %v363_v63 = vpop.f32.mrf.mxu1 }
 0x120   :  { %v421_v1 = vmul.f32 0.0051020407, %v358_v61 }
 0x122   :  { %v453_v3 = vsub.f32 %v421_v1, %v437_v0 }
 0x124   :  { %v469_v6 = vmax.f32 %v453_v3, 0.0 }
 0x125   :  { %v247_v7 = vpop.f32.mrf.mxu0 }
 0x126   :  { %v501_v33 = vadd.f32 1e-05, %v469_v6  ;;  %v361_v38 = vadd.f32 %v360_v30, %v247_v7  ;;  %v322_v30 = vadd.f32 %v3255_v48, %v3269_v54 }
 0x127   :  { %v366_v9 = vpop.f32.mrf.mxu1 }
 0x128   :  { %2902 = vrsqrt.f32 %v501_v33  ;;  %v422_v13 = vmul.f32 0.0051020407, %v361_v38  ;;  %vm523_vm3 = vweird.f32 %v501_v33  ;;  %v3382_v34 = vmul.f32 0.0051020407, %v322_v30 }
 0x12a   :  { %v454_v14 = vsub.f32 %v422_v13, %v438_v10  ;;  %v441_v12 = vmul.f32 %v3382_v34, %v3382_v34  ;;  %v325_v13 = vadd.f32 %v3264_v52, %v3278_v58 }
 0x12c   :  { %v470_v36 = vmax.f32 %v454_v14, 0.0 }
 0x12d   :  { %v250_v42 = vpop.f32.mrf.mxu0 }
 0x12e   :  { %v2903_v16 = vpop.eup %2902  ;;  %v502_v18 = vadd.f32 1e-05, %v470_v36  ;;  %v364_v19 = vadd.f32 %v363_v63, %v250_v42 }
 0x12f   :  { %v518_v20 = vmul.f32 %v2903_v16, %v501_v33  ;;  %v369_v21 = vpop.f32.mrf.mxu1  ;;  %vm524_vm2 = vweird.f32 %v2903_v16 }
 0x130   :  { %2904 = vrsqrt.f32 %v502_v18  ;;  %v423_v40 = vmul.f32 0.0051020407, %v364_v19  ;;  %vm525_vm4 = vmor %vm523_vm3, %vm524_vm2  ;;  %vm533_vm6 = vweird.f32 %v502_v18 }
 0x131   :  { %v519_v46 = vmul.f32 %v2903_v16, %v518_v20 }
 0x132   :  { %v455_v32 = vsub.f32 %v423_v40, %v439_v23 }
 0x133   :  { %v520_v35 = vmul.f32 0.5, %v519_v46 }
 0x134   :  { %v471_v26 = vmax.f32 %v455_v32, 0.0 }
 0x135   :  { %v253_v39 = vpop.f32.mrf.mxu0  ;;  %v521_v41 = vsub.f32 1.5, %v520_v35  ;;  %v3408_v35 = vld [vmem:[%s4699_s1 + $0x10] sm:$0xff] }
 0x136   :  { %v2905_v27 = vpop.eup %2904  ;;  %v3369_v28 = vadd.f32 1e-05, %v471_v26  ;;  %v367_v45 = vadd.f32 %v366_v9, %v253_v39  ;;  %v3391_v9 = vld [vmem:[%s4699_s1 + $0x8] sm:$0xff] }
 0x137   :  { %v528_v49 = vmul.f32 %v2905_v27, %v502_v18  ;;  %v522_v50 = vmul.f32 %v2903_v16, %v521_v41  ;;  %v372_v29 = vpop.f32.mrf.mxu1  ;;  %vm534_vm5 = vweird.f32 %v2905_v27  ;;  %v328_v41 = vadd.f32 %v3273_v56, %v3287_v62 }
 0x138   :  { %2906 = vrsqrt.f32 %v3369_v28  ;;  %v424_v55 = vmul.f32 0.0051020407, %v367_v45  ;;  %vm535_vm7 = vmor %vm533_vm6, %vm534_vm5  ;;  %vm543_vm9 = vweird.f32 %v3369_v28 }
 0x139   :  { %v526_v57 = vsel %vm525_vm4, %v2903_v16, %v522_v50  ;;  %v529_v59 = vmul.f32 %v2905_v27, %v528_v49  ;;  %v3416_v30 = vmul.f32 0.0051020407, %v328_v41 }
 0x13a   :  { %v456_v61 = vsub.f32 %v424_v55, %v440_v51  ;;  %v677_v63 = vmul.f32 %v526_v57, %v3374_v44 }
 0x13b   :  { %v530_v0 = vmul.f32 0.5, %v529_v59 }
 0x13c   :  { %v472_v1 = vmax.f32 %v456_v61, 0.0  ;;  %791 = vperm.xlu1 %2896, %v677_v63   ;;  %v693_v3 = vmul.f32 %v677_v63, %v405_v31 }
 0x13d   :  { %v256_v6 = vpop.f32.mrf.mxu0  ;;  %v531_v7 = vsub.f32 1.5, %v530_v0 }
 0x13e   :  { %v2907_v33 = vpop.eup %2906  ;;  %v3384_v48 = vadd.f32 1e-05, %v472_v1  ;;  %v370_v54 = vadd.f32 %v369_v21, %v256_v6  ;;  %725 = vrot.lane.b32.xlu0 %v693_v3, %s2968_s24  ;;  %v3400_v21 = vmul.f32 0.0051020407, %v325_v13  ;;  %v443_v3 = vmul.f32 %v3416_v30, %v3416_v30 }
 0x13f   :  { %v538_v38 = vmul.f32 %v2907_v33, %v3369_v28  ;;  %v532_v10 = vmul.f32 %v2905_v27, %v531_v7  ;;  %v375_v31 = vpop.f32.mrf.mxu1  ;;  %vm544_vm8 = vweird.f32 %v2907_v33 }
 0x140   :  { %2908 = vrsqrt.f32 %v3384_v48  ;;  %v425_v14 = vmul.f32 0.0051020407, %v370_v54  ;;  %vm545_vm10 = vmor %vm543_vm9, %vm544_vm8  ;;  %vm553_vm12 = vweird.f32 %v3384_v48 }
 0x141   :  { %v539_v36 = vmul.f32 %v2907_v33, %v538_v38  ;;  %v536_v42 = vsel %vm535_vm7, %v2905_v27, %v532_v10 }
 0x142   :  { %v457_v16 = vsub.f32 %v425_v14, %v441_v12  ;;  %v678_v19 = vmul.f32 %v536_v42, %v3391_v9 }
 0x143   :  { %v540_v20 = vmul.f32 0.5, %v539_v36 }
 0x144   :  { %v473_v18 = vmax.f32 %v457_v16, 0.0  ;;  %796 = vperm.xlu2 %2897, %v678_v19   ;;  %v694_v23 = vmul.f32 %v678_v19, %v3355_v5  ;;  %v442_v5 = vmul.f32 %v3400_v21, %v3400_v21  ;;  %v3436_v16 = vld [vmem:[%s4699_s1 + $0x20] sm:$0xff] }
 0x145   :  { %v259_v24 = vpop.f32.mrf.mxu0  ;;  %v541_v40 = vsub.f32 1.5, %v540_v20 }
 0x146   :  { %v2909_v52 = vpop.eup %2908  ;;  %v505_v58 = vadd.f32 1e-05, %v473_v18  ;;  %v373_v46 = vadd.f32 %v372_v29, %v259_v24  ;;  %727 = vrot.lane.b32.xlu0 %v694_v23, %s2968_s24 }
 0x147   :  { %v548_v32 = vmul.f32 %v2909_v52, %v3384_v48  ;;  %v542_v26 = vmul.f32 %v2907_v33, %v541_v40  ;;  %v378_v39 = vpop.f32.mrf.mxu1  ;;  %vm554_vm11 = vweird.f32 %v2909_v52 }
 0x148   :  { %2910 = vrsqrt.f32 %v505_v58  ;;  %v426_v27 = vmul.f32 0.0051020407, %v373_v46  ;;  %vm555_vm13 = vmor %vm553_vm12, %vm554_vm11  ;;  %vm563_vm15 = vweird.f32 %v505_v58 }
 0x149   :  { %v549_v45 = vmul.f32 %v2909_v52, %v548_v32  ;;  %v546_v49 = vsel %vm545_vm10, %v2907_v33, %v542_v26  ;;  %v3428_v33 = vld [vmem:[%s4699_s1 + $0x18] sm:$0xff]  ;;  %v3442_v26 = vmul.f32 0.0051020407, %v3305_v8  ;;  %v337_v8 = vadd.f32 %v3298_v4, %v3310_v11 }
 0x14a   :  { %v458_v50 = vsub.f32 %v426_v27, %v442_v5  ;;  %v679_v29 = vmul.f32 %v546_v49, %v3408_v35 }
 0x14b   :  { %v550_v51 = vmul.f32 0.5, %v549_v45 }
 0x14c   :  { %v474_v55 = vmax.f32 %v458_v50, 0.0  ;;  %v695_v28 = vmul.f32 %v679_v29, %v3361_v15  ;;  %v331_v15 = vadd.f32 %v3282_v60, %v3294_v2 }
 0x14d   :  { %v262_v57 = vpop.f32.mrf.mxu0  ;;  %v551_v59 = vsub.f32 1.5, %v550_v51  ;;  %v445_v51 = vmul.f32 %v3442_v26, %v3442_v26 }
 0x14e   :  { %v2911_v61 = vpop.eup %2910  ;;  %v506_v63 = vadd.f32 1e-05, %v474_v55  ;;  %v376_v56 = vadd.f32 %v375_v31, %v262_v57  ;;  %801 = vperm.xlu0 %2898, %v679_v29   ;;  %729 = vrot.lane.b32.xlu1 %v695_v28, %s2968_s24  ;;  %v3430_v48 = vmul.f32 0.0051020407, %v331_v15  ;;  %v3453_v28 = vld [vmem:[%s4699_s1 + $0x28] sm:$0xff] }
 0x14f   :  { %v558_v62 = vmul.f32 %v2911_v61, %v505_v58  ;;  %v552_v0 = vmul.f32 %v2909_v52, %v551_v59  ;;  %v381_v1 = vpop.f32.mrf.mxu1  ;;  %vm564_vm14 = vweird.f32 %v2911_v61 }
 0x150   :  { %2912 = vrsqrt.f32 %v506_v63  ;;  %v427_v6 = vmul.f32 0.0051020407, %v376_v56  ;;  %v444_v18 = vmul.f32 %v3430_v48, %v3430_v48  ;;  %vm565_vm0 = vmor %vm563_vm15, %vm564_vm14  ;;  %vm573_vm2 = vweird.f32 %v506_v63 }
 0x151   :  { %v559_v7 = vmul.f32 %v2911_v61, %v558_v62  ;;  %v556_v54 = vsel %vm555_vm13, %v2909_v52, %v552_v0  ;;  %v3456_v62 = vmul.f32 0.0051020407, %v337_v8 }
 0x152   :  { %v459_v38 = vsub.f32 %v427_v6, %v443_v3  ;;  %v680_v12 = vmul.f32 %v556_v54, %v3428_v33 }
 0x153   :  { %v560_v10 = vmul.f32 0.5, %v559_v7 }
 0x154   :  { %v475_v31 = vmax.f32 %v459_v38, 0.0  ;;  %v696_v58 = vmul.f32 %v680_v12, %v3367_v25  ;;  %v446_v38 = vmul.f32 %v3456_v62, %v3456_v62 }
 0x155   :  { %v265_v13 = vpop.f32.mrf.mxu0  ;;  %v561_v14 = vsub.f32 1.5, %v560_v10 }
 0x156   :  { %v2913_v60 = vpop.eup %2912  ;;  %v507_v2 = vadd.f32 1e-05, %v475_v31  ;;  %v379_v36 = vadd.f32 %v378_v39, %v265_v13  ;;  %806 = vperm.xlu1 %2896, %v680_v12  }
 0x157   :  { %v568_v42 = vmul.f32 %v2913_v60, %v506_v63  ;;  %v562_v19 = vmul.f32 %v2911_v61, %v561_v14  ;;  %v384_v20 = vpop.f32.mrf.mxu1  ;;  %vm574_vm1 = vweird.f32 %v2913_v60 }
 0x158   :  { %2914 = vrsqrt.f32 %v507_v2  ;;  %v428_v23 = vmul.f32 0.0051020407, %v379_v36  ;;  %vm575_vm3 = vmor %vm573_vm2, %vm574_vm1  ;;  %vm583_vm5 = vweird.f32 %v507_v2 }
 0x159   :  { %v569_v24 = vmul.f32 %v2913_v60, %v568_v42  ;;  %v566_v40 = vsel %vm565_vm0, %v2911_v61, %v562_v19  ;;  %v3470_v42 = vmul.f32 0.0051020407, %v3319_v17 }
 0x15a   :  { %v460_v52 = vsub.f32 %v428_v23, %v444_v18  ;;  %v681_v46 = vmul.f32 %v566_v40, %v3436_v16 }
 0x15b   :  { %v570_v32 = vmul.f32 0.5, %v569_v24 }
 0x15c   :  { %v476_v39 = vmax.f32 %v460_v52, 0.0  ;;  %811 = vperm.xlu2 %2897, %v681_v46   ;;  %v697_v63 = vmul.f32 %v681_v46, %v3382_v34  ;;  %v3463_v34 = vld [vmem:[%s4699_s1 + $0x30] sm:$0xff]  ;;  %v3478_v46 = vld [vmem:[%s4699_s1 + $0x38] sm:$0xff] }
 0x15d   :  { %v268_v5 = vpop.f32.mrf.mxu0  ;;  %v571_v41 = vsub.f32 1.5, %v570_v32  ;;  %v447_v32 = vmul.f32 %v3470_v42, %v3470_v42 }
 0x15e   :  { %v2915_v27 = vpop.eup %2914  ;;  %v508_v45 = vadd.f32 1e-05, %v476_v39  ;;  %v382_v49 = vadd.f32 %v381_v1, %v268_v5  ;;  %731 = vrot.lane.b32.xlu1 %v696_v58, %s2968_s24 }
 0x15f   :  { %v578_v50 = vmul.f32 %v2915_v27, %v507_v2  ;;  %v572_v29 = vmul.f32 %v2913_v60, %v571_v41  ;;  %v387_v59 = vpop.f32.mrf.mxu1  ;;  %vm584_vm4 = vweird.f32 %v2915_v27 }
 0x160   :  { %2916 = vrsqrt.f32 %v508_v45  ;;  %v429_v55 = vmul.f32 0.0051020407, %v382_v49  ;;  %vm585_vm6 = vmor %vm583_vm5, %vm584_vm4  ;;  %vm593_vm8 = vweird.f32 %v508_v45  ;;  %v3484_v49 = vmul.f32 0.0051020407, %v3326_v22  ;;  %v3491_v22 = vld [vmem:[%s4699_s1 + $0x40] sm:$0xff] }
 0x161   :  { %v579_v25 = vmul.f32 %v2915_v27, %v578_v50  ;;  %v576_v57 = vsel %vm575_vm3, %v2913_v60, %v572_v29 }
 0x162   :  { %v461_v61 = vsub.f32 %v429_v55, %v445_v51  ;;  %v682_v4 = vmul.f32 %v576_v57, %v3453_v28 }
 0x163   :  { %v580_v56 = vmul.f32 0.5, %v579_v25 }
 0x164   :  { %v477_v0 = vmax.f32 %v461_v61, 0.0  ;;  %733 = vrot.lane.b32.xlu2 %v697_v63, %s2968_s24  ;;  %v698_v14 = vmul.f32 %v682_v4, %v3400_v21 }
 0x165   :  { %v581_v11 = vsub.f32 1.5, %v580_v56  ;;  %v271_v1 = vpop.f32.mrf.mxu0 }
 0x166   :  { %v2917_v3 = vpop.eup %2916  ;;  %v509_v15 = vadd.f32 1e-05, %v477_v0  ;;  %v385_v6 = vadd.f32 %v384_v20, %v271_v1  ;;  %816 = vperm.xlu1 %2896, %v682_v4  }
 0x167   :  { %v588_v7 = vmul.f32 %v2917_v3, %v508_v45  ;;  %v582_v54 = vmul.f32 %v2915_v27, %v581_v11  ;;  %v390_v36 = vpop.f32.mrf.mxu1  ;;  %vm594_vm7 = vweird.f32 %v2917_v3 }
 0x168   :  { %2918 = vrsqrt.f32 %v509_v15  ;;  %v430_v10 = vmul.f32 0.0051020407, %v385_v6  ;;  %vm595_vm9 = vmor %vm593_vm8, %vm594_vm7  ;;  %vm603_vm11 = vweird.f32 %v509_v15 }
 0x169   :  { %v589_v31 = vmul.f32 %v2917_v3, %v588_v7  ;;  %v586_v12 = vsel %vm585_vm6, %v2915_v27, %v582_v54 }
 0x16a   :  { %v462_v13 = vsub.f32 %v430_v10, %v446_v38  ;;  %v683_v60 = vmul.f32 %v586_v12, %v3463_v34 }
 0x16b   :  { %v590_v2 = vmul.f32 0.5, %v589_v31 }
 0x16c   :  { %v478_v19 = vmax.f32 %v462_v13, 0.0  ;;  %735 = vrot.lane.b32.xlu2 %v698_v14, %s2968_s24  ;;  %v699_v20 = vmul.f32 %v683_v60, %v3416_v30  ;;  %v3504_v14 = vld [vmem:[%s4699_s1 + $0x48] sm:$0xff] }
 0x16d   :  { %v274_v18 = vpop.f32.mrf.mxu0  ;;  %v591_v23 = vsub.f32 1.5, %v590_v2 }
 0x16e   :  { %v2919_v24 = vpop.eup %2918  ;;  %v510_v40 = vadd.f32 1e-05, %v478_v19  ;;  %v388_v52 = vadd.f32 %v387_v59, %v274_v18  ;;  %737 = vrot.lane.b32.xlu0 %v699_v20, %s2968_s24 }
 0x16f   :  { %v598_v21 = vmul.f32 %v2919_v24, %v509_v15  ;;  %v592_v17 = vmul.f32 %v2917_v3, %v591_v23  ;;  %v393_v51 = vpop.f32.mrf.mxu1  ;;  %vm604_vm10 = vweird.f32 %v2919_v24  ;;  %v3510_v23 = vmul.f32 0.0051020407, %v3340_v43 }
 0x170   :  { %2920 = vrsqrt.f32 %v510_v40  ;;  %v431_v30 = vmul.f32 0.0051020407, %v388_v52  ;;  %vm605_vm12 = vmor %vm603_vm11, %vm604_vm10  ;;  %vm613_vm14 = vweird.f32 %v510_v40 }
 0x171   :  { %v599_v39 = vmul.f32 %v2919_v24, %v598_v21  ;;  %v596_v58 = vsel %vm595_vm9, %v2917_v3, %v592_v17  ;;  %v3497_v3 = vmul.f32 0.0051020407, %v3333_v37 }
 0x172   :  { %v463_v5 = vsub.f32 %v431_v30, %v447_v32  ;;  %v684_v41 = vmul.f32 %v596_v58, %v3478_v46  ;;  %v3517_v58 = vld [vmem:[%s4699_s1 + $0x50] sm:$0xff] }
 0x173   :  { %v600_v27 = vmul.f32 0.5, %v599_v39 }
 0x174   :  { %v479_v50 = vmax.f32 %v463_v5, 0.0  ;;  %821 = vperm.xlu2 %2897, %v683_v60   ;;  %v700_v29 = vmul.f32 %v684_v41, %v3430_v48  ;;  %v448_v48 = vmul.f32 %v3484_v49, %v3484_v49 }
 0x175   :  { %v277_v45 = vpop.f32.mrf.mxu0  ;;  %v601_v8 = vsub.f32 1.5, %v600_v27 }
 0x176   :  { %v2921_v55 = vpop.eup %2920  ;;  %v511_v25 = vadd.f32 1e-05, %v479_v50  ;;  %v391_v57 = vadd.f32 %v390_v36, %v277_v45  ;;  %826 = vperm.xlu0 %2898, %v684_v41   ;;  %739 = vrot.lane.b32.xlu1 %v700_v29, %s2968_s24 }
 0x177   :  { %v608_v59 = vmul.f32 %v2921_v55, %v510_v40  ;;  %v602_v61 = vmul.f32 %v2919_v24, %v601_v8  ;;  %vm614_vm13 = vweird.f32 %v2921_v55  ;;  %v396_v13 = vpop.f32.mrf.mxu1  ;;  %v3523_v8 = vmul.f32 0.0051020407, %v3345_v47 }
 0x178   :  { %2922 = vrsqrt.f32 %v511_v25  ;;  %v432_v63 = vmul.f32 0.0051020407, %v391_v57  ;;  %vm615_vm15 = vmor %vm613_vm14, %vm614_vm13  ;;  %vm623_vm1 = vweird.f32 %v511_v25 }
 0x179   :  { %v609_v56 = vmul.f32 %v2921_v55, %v608_v59  ;;  %v606_v0 = vsel %vm605_vm12, %v2919_v24, %v602_v61 }
 0x17a   :  { %v464_v4 = vsub.f32 %v432_v63, %v448_v48  ;;  %v685_v11 = vmul.f32 %v606_v0, %v3491_v22  ;;  %v3530_v0 = vld [vmem:[%s4699_s1 + $0x58] sm:$0xff] }
 0x17b   :  { %v610_v1 = vmul.f32 0.5, %v609_v56 }
 0x17c   :  { %v480_v6 = vmax.f32 %v464_v4, 0.0  ;;  %v701_v7 = vmul.f32 %v685_v11, %v3442_v26  ;;  %v449_v26 = vmul.f32 %v3497_v3, %v3497_v3 }
 0x17d   :  { %v280_v54 = vpop.f32.mrf.mxu0  ;;  %v611_v15 = vsub.f32 1.5, %v610_v1 }
 0x17e   :  { %v2923_v38 = vpop.eup %2922  ;;  %v512_v10 = vadd.f32 1e-05, %v480_v6  ;;  %v394_v31 = vadd.f32 %v393_v51, %v280_v54  ;;  %831 = vperm.xlu1 %2896, %v685_v11   ;;  %741 = vrot.lane.b32.xlu2 %v701_v7, %s2968_s24 }
 0x17f   :  { %v618_v12 = vmul.f32 %v2923_v38, %v511_v25  ;;  %v612_v37 = vmul.f32 %v2921_v55, %v611_v15  ;;  %vm624_vm0 = vweird.f32 %v2923_v38  ;;  %v399_v27 = vpop.f32.mrf.mxu1 }
 0x180   :  { %2924 = vrsqrt.f32 %v512_v10  ;;  %v433_v60 = vmul.f32 0.0051020407, %v394_v31  ;;  %vm625_vm2 = vmor %vm623_vm1, %vm624_vm0  ;;  %vm633_vm4 = vweird.f32 %v512_v10 }
 0x181   :  { %v619_v2 = vmul.f32 %v2923_v38, %v618_v12  ;;  %v616_v36 = vsel %vm615_vm15, %v2921_v55, %v612_v37 }
 0x182   :  { %v465_v19 = vsub.f32 %v433_v60, %v449_v26  ;;  %v686_v20 = vmul.f32 %v616_v36, %v3504_v14  ;;  %v3543_v36 = vld [vmem:[%s4699_s1 + $0x60] sm:$0xff] }
 0x183   :  { %v620_v18 = vmul.f32 0.5, %v619_v2 }
 0x184   :  { %v481_v24 = vmax.f32 %v465_v19, 0.0  ;;  %v702_v52 = vmul.f32 %v686_v20, %v3456_v62  ;;  %v450_v62 = vmul.f32 %v3510_v23, %v3510_v23 }
 0x185   :  { %v283_v21 = vpop.f32.mrf.mxu0  ;;  %v621_v40 = vsub.f32 1.5, %v620_v18 }
 0x186   :  { %v2925_v17 = vpop.eup %2924  ;;  %v513_v32 = vadd.f32 1e-05, %v481_v24  ;;  %v397_v30 = vadd.f32 %v396_v13, %v283_v21  ;;  %836 = vperm.xlu2 %2897, %v686_v20   ;;  %743 = vrot.lane.b32.xlu0 %v702_v52, %s2968_s24 }
 0x187   :  { %v628_v39 = vmul.f32 %v2925_v17, %v512_v10  ;;  %v622_v43 = vmul.f32 %v2923_v38, %v621_v40  ;;  %vm634_vm3 = vweird.f32 %v2925_v17  ;;  %v402_v15 = vpop.f32.mrf.mxu1 }
 0x188   :  { %2926 = vrsqrt.f32 %v513_v32  ;;  %v434_v5 = vmul.f32 0.0051020407, %v397_v30  ;;  %vm635_vm5 = vmor %vm633_vm4, %vm634_vm3  ;;  %vm643_vm7 = vweird.f32 %v513_v32  ;;  %vm1206_vm3 = vcmask 384264  }
 0x189   :  { %v629_v41 = vmul.f32 %v2925_v17, %v628_v39  ;;  %v626_v50 = vsel %vm625_vm2, %v2923_v38, %v622_v43  ;;  %v3536_v38 = vmul.f32 0.0051020407, %v3349_v53  ;;  %vm1141_vm2 = vcmask 253064  }
 0x18a   :  { %v466_v29 = vsub.f32 %v434_v5, %v450_v62  ;;  %v687_v45 = vmul.f32 %v626_v50, %v3517_v58  ;;  %v3553_v62 = vld [vmem:[%s4699_s1 + $0x68] sm:$0xff]  ;;  %vm1271_vm4 = vcmask 515464  }
 0x18b   :  { %v630_v51 = vmul.f32 0.5, %v629_v41 }
 0x18c   :  { %v482_v55 = vmax.f32 %v466_v29, 0.0  ;;  %v703_v57 = vmul.f32 %v687_v45, %v3470_v42  ;;  %v451_v42 = vmul.f32 %v3523_v8, %v3523_v8 }
 0x18d   :  { %v286_v25 = vpop.f32.mrf.mxu0  ;;  %v631_v59 = vsub.f32 1.5, %v630_v51 }
 0x18e   :  { %v2927_v61 = vpop.eup %2926  ;;  %v514_v48 = vadd.f32 1e-05, %v482_v55  ;;  %v400_v63 = vadd.f32 %v399_v27, %v286_v25  ;;  %841 = vperm.xlu0 %2898, %v687_v45   ;;  %745 = vrot.lane.b32.xlu1 %v703_v57, %s2968_s24  ;;  %v3561_v57 = vld [vmem:[%s4699_s1 + $0x70] sm:$0xff] }
 0x18f   :  { %v638_v56 = vmul.f32 %v2927_v61, %v513_v32  ;;  %v632_v47 = vmul.f32 %v2925_v17, %v631_v59  ;;  %vm644_vm6 = vweird.f32 %v2927_v61 }
 0x190   :  { %2928 = vrsqrt.f32 %v514_v48  ;;  %v435_v4 = vmul.f32 0.0051020407, %v400_v63  ;;  %vm645_vm8 = vmor %vm643_vm7, %vm644_vm6  ;;  %vm653_vm10 = vweird.f32 %v514_v48  ;;  %vm1401_vm6 = vcmask 777864  }
 0x191   :  { %v639_v11 = vmul.f32 %v2927_v61, %v638_v56  ;;  %v636_v1 = vsel %vm635_vm5, %v2925_v17, %v632_v47  ;;  %vm1336_vm5 = vcmask 646664   ;;  %vm1466_vm7 = vcmask 909064  }
 0x192   :  { %v467_v6 = vsub.f32 %v435_v4, %v451_v42  ;;  %v688_v7 = vmul.f32 %v636_v1, %v3530_v0  ;;  %v2969_v42 = vmov 1  }
 0x193   :  { %v640_v54 = vmul.f32 0.5, %v639_v11 }
 0x194   :  { %v483_v31 = vmax.f32 %v467_v6, 0.0  ;;  %v704_v12 = vmul.f32 %v688_v7, %v3484_v49  ;;  %v452_v49 = vmul.f32 %v3536_v38, %v3536_v38  ;;  %v3572_v6 = vld [vmem:[%s4699_s1 + $0x78] sm:$0xff]  ;;  %s2990_s1 = smov 96  }
 0x195   :  { %v289_v10 = vpop.f32.mrf.mxu0  ;;  %v641_v13 = vsub.f32 1.5, %v640_v54 }
 0x196   :  { %v2929_v37 = vpop.eup %2928  ;;  %v515_v26 = vadd.f32 1e-05, %v483_v31  ;;  %v403_v60 = vadd.f32 %v402_v15, %v289_v10  ;;  %846 = vperm.xlu1 %2896, %v688_v7   ;;  %747 = vrot.lane.b32.xlu2 %v704_v12, %s2968_s24 }
 0x197   :  { %v648_v2 = vmul.f32 %v2929_v37, %v514_v48  ;;  %v642_v53 = vmul.f32 %v2927_v61, %v641_v13  ;;  %vm654_vm9 = vweird.f32 %v2929_v37 }
 0x198   :  { %2930 = vrsqrt.f32 %v515_v26  ;;  %v436_v19 = vmul.f32 0.0051020407, %v403_v60  ;;  %vm655_vm11 = vmor %vm653_vm10, %vm654_vm9  ;;  %vm663_vm13 = vweird.f32 %v515_v26  ;;  %vm1596_vm9 = vcmask 121864  }
 0x199   :  { %v649_v20 = vmul.f32 %v2929_v37, %v648_v2  ;;  %v646_v18 = vsel %vm645_vm8, %v2927_v61, %v642_v53  ;;  %vm1531_vm8 = vcmask 1040264   ;;  %vm1757_vm10 = vcmask 285696  }
 0x19a   :  { %v468_v24 = vsub.f32 %v436_v19, %v452_v49  ;;  %v689_v52 = vmul.f32 %v646_v18, %v3543_v36 }
 0x19b   :  { %v650_v21 = vmul.f32 0.5, %v649_v20 }
 0x19c   :  { %v484_v40 = vmax.f32 %v468_v24, 0.0  ;;  %v705_v17 = vmul.f32 %v689_v52, %v3497_v3 }
 0x19d   :  { %v651_v30 = vsub.f32 1.5, %v650_v21 }
 0x19e   :  { %v2931_v39 = vpop.eup %2930  ;;  %v516_v43 = vadd.f32 1e-05, %v484_v40  ;;  %851 = vperm.xlu2 %2897, %v689_v52   ;;  %749 = vrot.lane.b32.xlu0 %v705_v17, %s2968_s24  ;;  %v3565_v47 = vpop.permute.xlu2 %796 }
 0x19f   :  { %v658_v32 = vmul.f32 %v2931_v39, %v515_v26  ;;  %v652_v5 = vmul.f32 %v2929_v37, %v651_v30  ;;  %vm664_vm12 = vweird.f32 %v2931_v39 }
 0x1a0   :  { %2932 = vrsqrt.f32 %v516_v43  ;;  %vm665_vm14 = vmor %vm663_vm13, %vm664_vm12  ;;  %vm673_vm0 = vweird.f32 %v516_v43 }
 0x1a1   :  { %v659_v41 = vmul.f32 %v2931_v39, %v658_v32  ;;  %v656_v27 = vsel %vm655_vm11, %v2929_v37, %v652_v5 }
 0x1a2   :  { %v690_v3 = vmul.f32 %v656_v27, %v3553_v62 }
 0x1a3   :  { %v660_v50 = vmul.f32 0.5, %v659_v41 }
 0x1a4   :  { %v706_v29 = vmul.f32 %v690_v3, %v3510_v23 }
 0x1a5   :  { %v661_v45 = vsub.f32 1.5, %v660_v50 }
 0x1a6   :  { %v2933_v51 = vpop.eup %2932  ;;  %856 = vperm.xlu0 %2898, %v690_v3   ;;  %751 = vrot.lane.b32.xlu1 %v706_v29, %s2968_s24 }
 0x1a7   :  { %v668_v55 = vmul.f32 %v2933_v51, %v516_v43  ;;  %v662_v25 = vmul.f32 %v2931_v39, %v661_v45  ;;  %vm674_vm15 = vweird.f32 %v2933_v51 }
 0x1a8   :  { %vm675_vm1 = vmor %vm673_vm0, %vm674_vm15 }
 0x1a9   :  { %v669_v59 = vmul.f32 %v2933_v51, %v668_v55  ;;  %v666_v61 = vsel %vm665_vm14, %v2931_v39, %v662_v25  ;;  %v2935_v25 = vld [vmem:[%s4698_s0 + $0x10] sm:$0xff] }
 0x1aa   :  { %v691_v48 = vmul.f32 %v666_v61, %v3561_v57 }
 0x1ab   :  { %v670_v23 = vmul.f32 0.5, %v669_v59  ;;  %v871_v59 = vmul.f32 %v2935_v25, %v3565_v47 }
 0x1ac   :  { %v707_v63 = vmul.f32 %v691_v48, %v3523_v8 }
 0x1ad   :  { %v671_v56 = vsub.f32 1.5, %v670_v23 }
 0x1ae   :  { %861 = vperm.xlu1 %2896, %v691_v48   ;;  %753 = vrot.lane.b32.xlu2 %v707_v63, %s2968_s24  ;;  %v3577_v15 = vpop.permute.xlu1 %791 }
 0x1af   :  { %2899 = vset.pattern.permute.xlu0 %v2969_v42  ;;  %v672_v4 = vmul.f32 %v2933_v51, %v671_v56 }
 0x1b0   :  { %v726_v11 = vpop.permute.xlu0 %725 }
 0x1b1   :  { %v773_v1 = vsub.f32 %v3374_v44, %v726_v11  ;;  %v676_v8 = vsel %vm675_vm1, %v2933_v51, %v672_v4  ;;  %v2936_v4 = vld [vmem:[%s4698_s0 + $0x20] sm:$0xff] }
 0x1b2   :  { %v692_v7 = vmul.f32 %v676_v8, %v3572_v6 }
 0x1b3   :  { %903 = vperm.xlu0 %2899, %v773_v1  }
 0x1b4   :  { %v708_v44 = vmul.f32 %v692_v7, %v3536_v38 }
 0x1b6   :  { %v3575_v54 = vpop.permute.xlu2 %811  ;;  %866 = vperm.xlu2 %2897, %v692_v7   ;;  %2900 = vset.pattern.permute.xlu1 %v2969_v42  ;;  %v2937_v7 = vld [vmem:[%s4698_s0 + $0x30] sm:$0xff] }
 0x1b8   :  { %v728_v31 = vpop.permute.xlu0 %727 }
 0x1b9   :  { %v774_v12 = vsub.f32 %v3391_v9, %v728_v31 }
 0x1bb   :  { %908 = vperm.xlu1 %2900, %v774_v12   ;;  %755 = vrot.lane.b32.xlu0 %v708_v44, %s2968_s24  ;;  %v2979_v44 = vmov 0.0   ;;  %s2991_s24 = smov 95  }
 0x1bc   :  { %1045 = vst [vmem:[#allocation2] sm:$0xff] %v2979_v44 }
 0x1bd   :  { %1046 = vst [vmem:[#allocation2 + $0x8] sm:$0xff] %v2979_v44 }
 0x1be   :  { %v734_v10 = vpop.permute.xlu2 %733  ;;  %2901 = vset.pattern.permute.xlu2 %v2969_v42  ;;  %1047 = vst [vmem:[#allocation2 + $0x10] sm:$0xff] %v2979_v44 }
 0x1bf   :  { %v777_v53 = vsub.f32 %v3436_v16, %v734_v10  ;;  %1048 = vst [vmem:[#allocation2 + $0x18] sm:$0xff] %v2979_v44 }
 0x1c0   :  { %v730_v13 = vpop.permute.xlu1 %729  ;;  %v3590_v19 = vpop.permute.xlu0 %801  ;;  %1049 = vst [vmem:[#allocation2 + $0x20] sm:$0xff] %v2979_v44 }
 0x1c1   :  { %v775_v37 = vsub.f32 %v3408_v35, %v730_v13  ;;  %v873_v11 = vmul.f32 %v2936_v4, %v3590_v19  ;;  %1050 = vst [vmem:[#allocation2 + $0x28] sm:$0xff] %v2979_v44 }
 0x1c2   :  { %1051 = vst [vmem:[#allocation2 + $0x30] sm:$0xff] %v2979_v44 }
 0x1c3   :  { %913 = vperm.xlu2 %2901, %v775_v37   ;;  %1052 = vst [vmem:[#allocation2 + $0x38] sm:$0xff] %v2979_v44 }
 0x1c4   :  { %1053 = vst [vmem:[#allocation2 + $0x40] sm:$0xff] %v2979_v44 }
 0x1c5   :  { %1054 = vst [vmem:[#allocation2 + $0x48] sm:$0xff] %v2979_v44 }
 0x1c6   :  { %v736_v26 = vpop.permute.xlu2 %735  ;;  %1055 = vst [vmem:[#allocation2 + $0x50] sm:$0xff] %v2979_v44 }
 0x1c7   :  { %v778_v60 = vsub.f32 %v3453_v28, %v736_v26  ;;  %1056 = vst [vmem:[#allocation2 + $0x58] sm:$0xff] %v2979_v44 }
 0x1c8   :  { %v3584_v2 = vpop.permute.xlu1 %806  ;;  %1057 = vst [vmem:[#allocation2 + $0x60] sm:$0xff] %v2979_v44 }
 0x1c9   :  { %928 = vperm.xlu0 %2899, %v778_v60   ;;  %v875_v31 = vmul.f32 %v2937_v7, %v3584_v2  ;;  %1058 = vst [vmem:[#allocation2 + $0x68] sm:$0xff] %v2979_v44  ;;  %v2938_v60 = vld [vmem:[%s4698_s0 + $0x40] sm:$0xff] }
 0x1ca   :  { %1059 = vst [vmem:[#allocation2 + $0x70] sm:$0xff] %v2979_v44  ;;  %v2942_v7 = vld [vmem:[%s4698_s0 + $0x60] sm:$0xff] }
 0x1cb   :  { %923 = vperm.xlu2 %2901, %v777_v53   ;;  %1060 = vst [vmem:[#allocation2 + $0x78] sm:$0xff] %v2979_v44  ;;  %v877_v53 = vmul.f32 %v2938_v60, %v3575_v54 }
 0x1cc   :  { %1061 = vst [vmem:[#allocation2 + $0x80] sm:$0xff] %v2979_v44 }
 0x1cd   :  { %1062 = vst [vmem:[#allocation2 + $0x88] sm:$0xff] %v2979_v44 }
 0x1ce   :  { %v3587_v9 = vpop.permute.xlu2 %821  ;;  %1063 = vst [vmem:[#allocation2 + $0x90] sm:$0xff] %v2979_v44 }
 0x1cf   :  { %1064 = vst [vmem:[#allocation2 + $0x98] sm:$0xff] %v2979_v44 }
 0x1d0   :  { %v732_v38 = vpop.permute.xlu1 %731  ;;  %1065 = vst [vmem:[#allocation2 + $0xa0] sm:$0xff] %v2979_v44 }
 0x1d1   :  { %v776_v49 = vsub.f32 %v3428_v33, %v732_v38  ;;  %1066 = vst [vmem:[#allocation2 + $0xa8] sm:$0xff] %v2979_v44 }
 0x1d2   :  { %1067 = vst [vmem:[#allocation2 + $0xb0] sm:$0xff] %v2979_v44 }
 0x1d3   :  { %918 = vperm.xlu1 %2900, %v776_v49   ;;  %1068 = vst [vmem:[#allocation2 + $0xb8] sm:$0xff] %v2979_v44 }
 0x1d4   :  { %1069 = vst [vmem:[#allocation2 + $0xc0] sm:$0xff] %v2979_v44 }
 0x1d5   :  { %1070 = vst [vmem:[#allocation2 + $0xc8] sm:$0xff] %v2979_v44 }
 0x1d6   :  { %1071 = vst [vmem:[#allocation2 + $0xd0] sm:$0xff] %v2979_v44 }
 0x1d7   :  { %1072 = vst [vmem:[#allocation2 + $0xd8] sm:$0xff] %v2979_v44 }
 0x1d8   :  { %v742_v20 = vpop.permute.xlu2 %741  ;;  %v3593_v18 = vpop.permute.xlu1 %816  ;;  %1073 = vst [vmem:[#allocation2 + $0xe0] sm:$0xff] %v2979_v44 }
 0x1d9   :  { %v781_v35 = vsub.f32 %v3491_v22, %v742_v20  ;;  %1074 = vst [vmem:[#allocation2 + $0xe8] sm:$0xff] %v2979_v44 }
 0x1da   :  { %1075 = vst [vmem:[#allocation2 + $0xf0] sm:$0xff] %v2979_v44 }
 0x1db   :  { %943 = vperm.xlu0 %2899, %v781_v35   ;;  %1076 = vst [vmem:[#allocation2 + $0xf8] sm:$0xff] %v2979_v44 }
 0x1e0   :  { %v738_v28 = vpop.permute.xlu0 %737  ;;  %v3596_v16 = vpop.permute.xlu2 %836 }
 0x1e1   :  { %v779_v24 = vsub.f32 %v3463_v34, %v738_v28 }
 0x1e3   :  { %933 = vperm.xlu1 %2900, %v779_v24  }
 0x1e8   :  { %v740_v52 = vpop.permute.xlu1 %739  ;;  %v3599_v33 = vpop.permute.xlu0 %826 }
 0x1e9   :  { %v780_v21 = vsub.f32 %v3478_v46, %v740_v52 }
 0x1eb   :  { %938 = vperm.xlu2 %2901, %v780_v21  }
 0x1f0   :  { %v748_v40 = vpop.permute.xlu2 %747  ;;  %v3602_v22 = vpop.permute.xlu1 %831 }
 0x1f1   :  { %v784_v17 = vsub.f32 %v3530_v0, %v748_v40 }
 0x1f3   :  { %958 = vperm.xlu0 %2899, %v784_v17  }
 0x1f8   :  { %v744_v30 = vpop.permute.xlu0 %743  ;;  %v3605_v34 = vpop.permute.xlu2 %851 }
 0x1f9   :  { %v782_v39 = vsub.f32 %v3504_v14, %v744_v30 }
 0x1fb   :  { %948 = vperm.xlu1 %2900, %v782_v39  }
 0x200   :  { %v746_v43 = vpop.permute.xlu1 %745  ;;  %v3608_v46 = vpop.permute.xlu0 %841 }
 0x201   :  { %v783_v32 = vsub.f32 %v3517_v58, %v746_v43  ;;  %v2934_v58 = vld [vmem:[%s4698_s0] sm:$0xff] }
 0x202   :  { %v869_v45 = vmul.f32 %v2934_v58, %v3577_v15 }
 0x203   :  { %953 = vperm.xlu2 %2901, %v783_v32   ;;  %v2939_v32 = vld [vmem:[%s4698_s0 + $0x50] sm:$0xff] }
 0x208   :  { %v754_v5 = vpop.permute.xlu2 %753  ;;  %v3611_v0 = vpop.permute.xlu1 %846 }
 0x209   :  { %v787_v41 = vsub.f32 %v3561_v57, %v754_v5  ;;  %v879_v5 = vmul.f32 %v2939_v32, %v3593_v18 }
 0x20b   :  { %973 = vperm.xlu0 %2899, %v787_v41   ;;  %v2940_v41 = vld [vmem:[%s4698_s0 + $0x48] sm:$0xff] }
 0x210   :  { %v750_v27 = vpop.permute.xlu0 %749  ;;  %v3660_v56 = vpop.permute.xlu2 %866 }
 0x211   :  { %v785_v3 = vsub.f32 %v3543_v36, %v750_v27  ;;  %v878_v27 = vmul.f32 %v2940_v41, %v3575_v54 }
 0x213   :  { %963 = vperm.xlu1 %2900, %v785_v3  }
 0x218   :  { %v752_v14 = vpop.permute.xlu1 %751  ;;  %v3615_v29 = vpop.permute.xlu0 %856 }
 0x219   :  { %v786_v50 = vsub.f32 %v3553_v62, %v752_v14 }
 0x21b   :  { %968 = vperm.xlu2 %2901, %v786_v50  }
 0x21d   :  { %v3668_v42 = vpop.permute.xlu2 %913 }
 0x21e   :  { %v985_v1 = vadd.f32 %v3668_v42, %v873_v11  ;;  %v2941_v11 = vld [vmem:[%s4698_s0 + $0x58] sm:$0xff] }
 0x220   :  { %v3632_v36 = vpop.permute.xlu1 %861 }
 0x225   :  { %v3621_v51 = vpop.permute.xlu0 %903  ;;  %v3701_v12 = vpop.permute.xlu2 %923 }
 0x226   :  { %v981_v55 = vadd.f32 %v3621_v51, %v869_v45  ;;  %v989_v49 = vadd.f32 %v3701_v12, %v877_v53  ;;  %v990_v58 = vadd.f32 %v3701_v12, %v878_v27 }
 0x228   :  { %v3624_v57 = vmax.f32 %v981_v55, 0.0  ;;  %v1021_v35 = vmax.f32 %v989_v49, 0.0  ;;  %v3777_v54 = vmax.f32 %v990_v58, 0.0 }
 0x22a   :  { %1223 = vrot.lane.b32.xlu1 %v3624_v57, %s2970_s29  ;;  %1093 = vrot.lane.b32.xlu2 %v3624_v57, %s2971_s30 }
 0x22b   :  { %1158 = vrot.lane.b32.xlu0 %v3624_v57, %s2972_s4 }
 0x22d   :  { %v3640_v62 = vpop.permute.xlu1 %908  ;;  %v756_v48 = vpop.permute.xlu0 %755 }
 0x22e   :  { %v983_v61 = vadd.f32 %v3640_v62, %v871_v59  ;;  %v788_v63 = vsub.f32 %v3572_v6, %v756_v48  ;;  %v3681_v6 = vmax.f32 %v985_v1, 0.0  ;;  %v880_v1 = vmul.f32 %v2941_v11, %v3593_v18 }
 0x230   :  { %v3653_v23 = vmax.f32 %v983_v61, 0.0 }
 0x232   :  { %1418 = vrot.lane.b32.xlu1 %v3624_v57, %s2973_s5  ;;  %1288 = vrot.lane.b32.xlu2 %v3624_v57, %s2974_s6 }
 0x233   :  { %1353 = vrot.lane.b32.xlu0 %v3624_v57, %s2975_s7 }
 0x23a   :  { %1613 = vrot.lane.b32.xlu1 %v3624_v57, %s2976_s10  ;;  %1483 = vrot.lane.b32.xlu2 %v3624_v57, %s2977_s11 }
 0x23b   :  { %1548 = vrot.lane.b32.xlu0 %v3624_v57, %s2978_s12  ;;  %v3735_v20 = vpop.permute.xlu0 %928 }
 0x23c   :  { %v991_v3 = vadd.f32 %v3735_v20, %v879_v5  ;;  %v992_v12 = vadd.f32 %v3735_v20, %v880_v1 }
 0x23e   :  { %v1023_v55 = vmax.f32 %v991_v3, 0.0  ;;  %v3807_v53 = vmax.f32 %v992_v12, 0.0  ;;  %v2943_v3 = vld [vmem:[%s4698_s0 + $0x68] sm:$0xff] }
 0x242   :  { %1225 = vrot.lane.b32.xlu2 %v3653_v23, %s2970_s29  ;;  %978 = vperm.xlu1 %2900, %v788_v63  }
 0x243   :  { %1095 = vrot.lane.b32.xlu0 %v3653_v23, %s2971_s30 }
 0x245   :  { %v3689_v8 = vpop.permute.xlu1 %918  ;;  %v3712_v37 = vpop.permute.xlu2 %938 }
 0x246   :  { %v987_v10 = vadd.f32 %v3689_v8, %v875_v31  ;;  %v881_v31 = vmul.f32 %v2942_v7, %v3587_v9 }
 0x248   :  { %v3704_v13 = vmax.f32 %v987_v10, 0.0 }
 0x24a   :  { %1420 = vrot.lane.b32.xlu2 %v3653_v23, %s2973_s5  ;;  %1160 = vrot.lane.b32.xlu1 %v3653_v23, %s2972_s4 }
 0x24b   :  { %1290 = vrot.lane.b32.xlu0 %v3653_v23, %s2974_s6 }
 0x24d   :  { %v3744_v52 = vpop.permute.xlu0 %943 }
 0x252   :  { %1615 = vrot.lane.b32.xlu2 %v3653_v23, %s2976_s10  ;;  %1355 = vrot.lane.b32.xlu1 %v3653_v23, %s2975_s7 }
 0x253   :  { %1485 = vrot.lane.b32.xlu0 %v3653_v23, %s2977_s11 }
 0x255   :  { %v3742_v28 = vpop.permute.xlu1 %933 }
 0x256   :  { %v993_v60 = vadd.f32 %v3742_v28, %v881_v31 }
 0x258   :  { %v1025_v49 = vmax.f32 %v993_v60, 0.0  ;;  %v2945_v60 = vld [vmem:[%s4698_s0 + $0x78] sm:$0xff] }
 0x25a   :  { %1162 = vrot.lane.b32.xlu2 %v3681_v6, %s2972_s4  ;;  %1550 = vrot.lane.b32.xlu1 %v3653_v23, %s2978_s12 }
 0x25b   :  { %1227 = vrot.lane.b32.xlu0 %v3681_v6, %s2970_s29 }
 0x25d   :  { %v3720_v26 = vpop.permute.xlu2 %953 }
 0x262   :  { %1357 = vrot.lane.b32.xlu2 %v3681_v6, %s2975_s7  ;;  %1097 = vrot.lane.b32.xlu1 %v3681_v6, %s2971_s30 }
 0x263   :  { %1422 = vrot.lane.b32.xlu0 %v3681_v6, %s2973_s5 }
 0x265   :  { %v3752_v17 = vpop.permute.xlu0 %958 }
 0x26a   :  { %1552 = vrot.lane.b32.xlu2 %v3681_v6, %s2978_s12  ;;  %1292 = vrot.lane.b32.xlu1 %v3681_v6, %s2974_s6 }
 0x26b   :  { %1164 = vrot.lane.b32.xlu0 %v3704_v13, %s2972_s4 }
 0x26d   :  { %v3750_v21 = vpop.permute.xlu1 %948 }
 0x272   :  { %1099 = vrot.lane.b32.xlu2 %v3704_v13, %s2971_s30  ;;  %1487 = vrot.lane.b32.xlu1 %v3681_v6, %s2977_s11 }
 0x273   :  { %1359 = vrot.lane.b32.xlu0 %v3704_v13, %s2975_s7 }
 0x275   :  { %v3732_v38 = vpop.permute.xlu2 %968 }
 0x27a   :  { %1294 = vrot.lane.b32.xlu2 %v3704_v13, %s2974_s6  ;;  %1229 = vrot.lane.b32.xlu1 %v3704_v13, %s2970_s29 }
 0x27b   :  { %1554 = vrot.lane.b32.xlu0 %v3704_v13, %s2978_s12 }
 0x27d   :  { %v3759_v43 = vpop.permute.xlu0 %973 }
 0x282   :  { %1489 = vrot.lane.b32.xlu2 %v3704_v13, %s2977_s11  ;;  %1424 = vrot.lane.b32.xlu1 %v3704_v13, %s2973_s5 }
 0x283   :  { %1101 = vrot.lane.b32.xlu0 %v1021_v35, %s2971_s30 }
 0x284   :  { %v1094_v24 = vpop.permute.xlu2 %1093 }
 0x285   :  { %1142 = vst.msk [vmem:[#allocation2] sm:$0xff] %vm1141_vm2, %v1094_v24  ;;  %v3757_v30 = vpop.permute.xlu1 %963 }
 0x28a   :  { %1231 = vrot.lane.b32.xlu2 %v1021_v35, %s2970_s29  ;;  %1166 = vrot.lane.b32.xlu1 %v1021_v35, %s2972_s4 }
 0x28b   :  { %1296 = vrot.lane.b32.xlu0 %v1021_v35, %s2974_s6 }
 0x28c   :  { %v1289_v40 = vpop.permute.xlu2 %1288 }
 0x292   :  { %1426 = vrot.lane.b32.xlu2 %v1021_v35, %s2973_s5  ;;  %1361 = vrot.lane.b32.xlu1 %v1021_v35, %s2975_s7 }
 0x293   :  { %1491 = vrot.lane.b32.xlu0 %v1021_v35, %s2977_s11 }
 0x294   :  { %v1484_v39 = vpop.permute.xlu2 %1483 }
 0x29a   :  { %1709 = vrot.lane.b32.xlu2 %v1021_v35, %s2980_s21  ;;  %1556 = vrot.lane.b32.xlu1 %v1021_v35, %s2978_s12 }
 0x29b   :  { %1621 = vrot.lane.b32.xlu0 %v1021_v35, %s2976_s10 }
 0x29c   :  { %v1224_v14 = vpop.permute.xlu1 %1223  ;;  %v1226_v50 = vpop.permute.xlu2 %1225 }
 0x29d   :  { %v1159_v45 = vpop.permute.xlu0 %1158 }
 0x29e   :  { %1207 = vst.msk [vmem:[#allocation2] sm:$0xff] %vm1206_vm3, %v1159_v45 }
 0x29f   :  { %1272 = vst.msk [vmem:[#allocation2] sm:$0xff] %vm1271_vm4, %v1224_v14  ;;  %v882_v14 = vmul.f32 %v2943_v3, %v3587_v9  ;;  %v2944_v9 = vld [vmem:[%s4698_s0 + $0x70] sm:$0xff] }
 0x2a0   :  { %1337 = vst.msk [vmem:[#allocation2] sm:$0xff] %vm1336_vm5, %v1289_v40 }
 0x2a2   :  { %1168 = vrot.lane.b32.xlu2 %v1023_v55, %s2972_s4  ;;  %1103 = vrot.lane.b32.xlu1 %v1023_v55, %s2971_s30 }
 0x2a3   :  { %1711 = vrot.lane.b32.xlu0 %v3777_v54, %s2980_s21 }
 0x2a4   :  { %v1419_v25 = vpop.permute.xlu1 %1418  ;;  %v1421_v59 = vpop.permute.xlu2 %1420 }
 0x2a5   :  { %v1354_v61 = vpop.permute.xlu0 %1353 }
 0x2a6   :  { %1402 = vst.msk [vmem:[#allocation2] sm:$0xff] %vm1401_vm6, %v1354_v61 }
 0x2a7   :  { %1467 = vst.msk [vmem:[#allocation2] sm:$0xff] %vm1466_vm7, %v1419_v25 }
 0x2a8   :  { %1532 = vst.msk [vmem:[#allocation2] sm:$0xff] %vm1531_vm8, %v1484_v39 }
 0x2aa   :  { %1363 = vrot.lane.b32.xlu2 %v1023_v55, %s2975_s7  ;;  %1298 = vrot.lane.b32.xlu1 %v1023_v55, %s2974_s6 }
 0x2ab   :  { %1233 = vrot.lane.b32.xlu0 %v1023_v55, %s2970_s29 }
 0x2ac   :  { %v1614_v48 = vpop.permute.xlu1 %1613  ;;  %v1616_v63 = vpop.permute.xlu2 %1615 }
 0x2ad   :  { %v1549_v4 = vpop.permute.xlu0 %1548 }
 0x2ae   :  { %1597 = vst.msk [vmem:[#allocation2 + $0x8] sm:$0xff] %vm1596_vm9, %v1549_v4 }
 0x2af   :  { %1661 = vst.msk [vmem:[#allocation2 + $0x8] sm:$0xff] %vm1141_vm2, %v1614_v48 }
 0x2b2   :  { %1558 = vrot.lane.b32.xlu2 %v1023_v55, %s2978_s12  ;;  %1493 = vrot.lane.b32.xlu1 %v1023_v55, %s2977_s11 }
 0x2b3   :  { %1428 = vrot.lane.b32.xlu0 %v1023_v55, %s2973_s5 }
 0x2b4   :  { %v1163_v44 = vpop.permute.xlu2 %1162  ;;  %v3803_v10 = vpop.permute.xlu1 %978 }
 0x2b5   :  { %v1096_v18 = vpop.permute.xlu0 %1095 }
 0x2b6   :  { %1143 = vst.msk [vmem:[#allocation2 + $0x10] sm:$0xff] %vm1141_vm2, %v1096_v18  ;;  %v884_v18 = vmul.f32 %v2945_v60, %v3599_v33 }
 0x2ba   :  { %1715 = vrot.lane.b32.xlu2 %v3807_v53, %s2980_s21  ;;  %1623 = vrot.lane.b32.xlu1 %v1023_v55, %s2976_s10 }
 0x2bb   :  { %1170 = vrot.lane.b32.xlu0 %v1025_v49, %s2972_s4 }
 0x2bc   :  { %v1358_v35 = vpop.permute.xlu2 %1357  ;;  %v1161_v20 = vpop.permute.xlu1 %1160 }
 0x2bd   :  { %1208 = vst.msk [vmem:[#allocation2 + $0x10] sm:$0xff] %vm1206_vm3, %v1161_v20  ;;  %v1291_v24 = vpop.permute.xlu0 %1290  ;;  %v996_v20 = vadd.f32 %v3712_v37, %v884_v18 }
 0x2be   :  { %1273 = vst.msk [vmem:[#allocation2 + $0x10] sm:$0xff] %vm1271_vm4, %v1226_v50  ;;  %v994_v50 = vadd.f32 %v3742_v28, %v882_v14  ;;  %v883_v28 = vmul.f32 %v2944_v9, %v3599_v33 }
 0x2bf   :  { %1338 = vst.msk [vmem:[#allocation2 + $0x10] sm:$0xff] %vm1336_vm5, %v1291_v24 }
 0x2c0   :  { %v1026_v25 = vmax.f32 %v994_v50, 0.0  ;;  %v995_v48 = vadd.f32 %v3712_v37, %v883_v28 }
 0x2c2   :  { %1105 = vrot.lane.b32.xlu2 %v1025_v49, %s2971_s30  ;;  %1713 = vrot.lane.b32.xlu1 %v1023_v55, %s2980_s21  ;;  %v1027_v4 = vmax.f32 %v995_v48, 0.0 }
 0x2c3   :  { %1365 = vrot.lane.b32.xlu0 %v1025_v49, %s2975_s7 }
 0x2c4   :  { %v1553_v40 = vpop.permute.xlu2 %1552  ;;  %v1356_v39 = vpop.permute.xlu1 %1355 }
 0x2c5   :  { %1599 = vst.msk [vmem:[#allocation2 + $0x28] sm:$0xff] %vm1596_vm9, %v1553_v40  ;;  %v1486_v32 = vpop.permute.xlu0 %1485  ;;  %v3874_v40 = vmax.f32 %v996_v20, 0.0 }
 0x2c6   :  { %1403 = vst.msk [vmem:[#allocation2 + $0x10] sm:$0xff] %vm1401_vm6, %v1356_v39 }
 0x2c7   :  { %1468 = vst.msk [vmem:[#allocation2 + $0x10] sm:$0xff] %vm1466_vm7, %v1421_v59 }
 0x2c8   :  { %1533 = vst.msk [vmem:[#allocation2 + $0x10] sm:$0xff] %vm1531_vm8, %v1486_v32  ;;  %v2946_v32 = vld [vmem:[%s4698_s0 + $0x80] sm:$0xff] }
 0x2ca   :  { %1300 = vrot.lane.b32.xlu2 %v1025_v49, %s2974_s6  ;;  %1235 = vrot.lane.b32.xlu1 %v1025_v49, %s2970_s29 }
 0x2cb   :  { %1560 = vrot.lane.b32.xlu0 %v1025_v49, %s2978_s12 }
 0x2cc   :  { %v1100_v5 = vpop.permute.xlu2 %1099  ;;  %v1551_v41 = vpop.permute.xlu1 %1550 }
 0x2cd   :  { %1145 = vst.msk [vmem:[#allocation2 + $0x30] sm:$0xff] %vm1141_vm2, %v1100_v5  ;;  %v1228_v27 = vpop.permute.xlu0 %1227  ;;  %v885_v5 = vmul.f32 %v2946_v32, %v3602_v22 }
 0x2ce   :  { %1598 = vst.msk [vmem:[#allocation2 + $0x18] sm:$0xff] %vm1596_vm9, %v1551_v41 }
 0x2cf   :  { %1662 = vst.msk [vmem:[#allocation2 + $0x18] sm:$0xff] %vm1141_vm2, %v1616_v63  ;;  %v997_v3 = vadd.f32 %v3744_v52, %v885_v5 }
 0x2d1   :  { %v1029_v50 = vmax.f32 %v997_v3, 0.0 }
 0x2d2   :  { %1495 = vrot.lane.b32.xlu2 %v1025_v49, %s2977_s11  ;;  %1430 = vrot.lane.b32.xlu1 %v1025_v49, %s2973_s5 }
 0x2d3   :  { %1717 = vrot.lane.b32.xlu0 %v1025_v49, %s2980_s21 }
 0x2d4   :  { %v1295_v58 = vpop.permute.xlu2 %1294  ;;  %v1098_v45 = vpop.permute.xlu1 %1097 }
 0x2d5   :  { %1144 = vst.msk [vmem:[#allocation2 + $0x20] sm:$0xff] %vm1141_vm2, %v1098_v45  ;;  %v1423_v55 = vpop.permute.xlu0 %1422 }
 0x2d6   :  { %1209 = vst.msk [vmem:[#allocation2 + $0x20] sm:$0xff] %vm1206_vm3, %v1163_v44 }
 0x2d7   :  { %1274 = vst.msk [vmem:[#allocation2 + $0x20] sm:$0xff] %vm1271_vm4, %v1228_v27 }
 0x2da   :  { %1818 = vrot.lane.b32.xlu2 %v1026_v25, %s2981_s8  ;;  %1625 = vrot.lane.b32.xlu1 %v1025_v49, %s2976_s10 }
 0x2db   :  { %1946 = vrot.lane.b32.xlu0 %v1026_v25, %s2982_s14 }
 0x2dc   :  { %v1490_v59 = vpop.permute.xlu2 %1489  ;;  %v1293_v61 = vpop.permute.xlu1 %1292 }
 0x2dd   :  { %1339 = vst.msk [vmem:[#allocation2 + $0x20] sm:$0xff] %vm1336_vm5, %v1293_v61  ;;  %v1165_v63 = vpop.permute.xlu0 %1164 }
 0x2de   :  { %1404 = vst.msk [vmem:[#allocation2 + $0x20] sm:$0xff] %vm1401_vm6, %v1358_v35 }
 0x2df   :  { %1469 = vst.msk [vmem:[#allocation2 + $0x20] sm:$0xff] %vm1466_vm7, %v1423_v55 }
 0x2e0   :  { %1210 = vst.msk [vmem:[#allocation2 + $0x30] sm:$0xff] %vm1206_vm3, %v1165_v63 }
 0x2e2   :  { %2010 = vrot.lane.b32.xlu2 %v1026_v25, %s2983_s15  ;;  %1719 = vrot.lane.b32.xlu1 %v1026_v25, %s2980_s21 }
 0x2e3   :  { %1107 = vrot.lane.b32.xlu0 %v1027_v4, %s2971_s30 }
 0x2e4   :  { %v1232_v11 = vpop.permute.xlu2 %1231  ;;  %v1488_v1 = vpop.permute.xlu1 %1487 }
 0x2e5   :  { %1534 = vst.msk [vmem:[#allocation2 + $0x20] sm:$0xff] %vm1531_vm8, %v1488_v1  ;;  %v1360_v7 = vpop.permute.xlu0 %1359  ;;  %v2948_v1 = vld [vmem:[%s4698_s0 + $0x90] sm:$0xff] }
 0x2ea   :  { %1237 = vrot.lane.b32.xlu2 %v1027_v4, %s2970_s29  ;;  %1882 = vrot.lane.b32.xlu1 %v1026_v25, %s2984_s16  ;;  %v2947_v25 = vld [vmem:[%s4698_s0 + $0x88] sm:$0xff] }
 0x2eb   :  { %1302 = vrot.lane.b32.xlu0 %v1027_v4, %s2974_s6  ;;  %v886_v9 = vmul.f32 %v2947_v25, %v3602_v22 }
 0x2ec   :  { %v1427_v31 = vpop.permute.xlu2 %1426  ;;  %v1230_v12 = vpop.permute.xlu1 %1229 }
 0x2ed   :  { %1275 = vst.msk [vmem:[#allocation2 + $0x30] sm:$0xff] %vm1271_vm4, %v1230_v12  ;;  %v1555_v44 = vpop.permute.xlu0 %1554  ;;  %v998_v61 = vadd.f32 %v3744_v52, %v886_v9 }
 0x2ee   :  { %1340 = vst.msk [vmem:[#allocation2 + $0x30] sm:$0xff] %vm1336_vm5, %v1295_v58 }
 0x2ef   :  { %1405 = vst.msk [vmem:[#allocation2 + $0x30] sm:$0xff] %vm1401_vm6, %v1360_v7  ;;  %v887_v7 = vmul.f32 %v2948_v1, %v3596_v16 }
 0x2f0   :  { %1600 = vst.msk [vmem:[#allocation2 + $0x38] sm:$0xff] %vm1596_vm9, %v1555_v44 }
 0x2f1   :  { %v999_v44 = vadd.f32 %v3750_v21, %v887_v7 }
 0x2f2   :  { %1432 = vrot.lane.b32.xlu2 %v1027_v4, %s2973_s5  ;;  %1172 = vrot.lane.b32.xlu1 %v1027_v4, %s2972_s4 }
 0x2f3   :  { %1497 = vrot.lane.b32.xlu0 %v1027_v4, %s2977_s11  ;;  %v1031_v18 = vmax.f32 %v999_v44, 0.0 }
 0x2f4   :  { %v1710_v49 = vpop.permute.xlu2 %1709  ;;  %v1425_v35 = vpop.permute.xlu1 %1424 }
 0x2f5   :  { %1470 = vst.msk [vmem:[#allocation2 + $0x30] sm:$0xff] %vm1466_vm7, %v1425_v35  ;;  %v1102_v24 = vpop.permute.xlu0 %1101 }
 0x2f6   :  { %1535 = vst.msk [vmem:[#allocation2 + $0x30] sm:$0xff] %vm1531_vm8, %v1490_v59 }
 0x2f7   :  { %1146 = vst.msk [vmem:[#allocation2 + $0x40] sm:$0xff] %vm1141_vm2, %v1102_v24 }
 0x2fa   :  { %1627 = vrot.lane.b32.xlu2 %v1027_v4, %s2976_s10  ;;  %1367 = vrot.lane.b32.xlu1 %v1027_v4, %s2975_s7 }
 0x2fb   :  { %1723 = vrot.lane.b32.xlu0 %v3874_v40, %s2980_s21 }
 0x2fc   :  { %v1167_v33 = vpop.permute.xlu1 %1166  ;;  %v1169_v39 = vpop.permute.xlu2 %1168 }
 0x2fd   :  { %1211 = vst.msk [vmem:[#allocation2 + $0x40] sm:$0xff] %vm1206_vm3, %v1167_v33  ;;  %v1297_v37 = vpop.permute.xlu0 %1296 }
 0x2fe   :  { %1276 = vst.msk [vmem:[#allocation2 + $0x40] sm:$0xff] %vm1271_vm4, %v1232_v11 }
 0x2ff   :  { %1341 = vst.msk [vmem:[#allocation2 + $0x40] sm:$0xff] %vm1336_vm5, %v1297_v37 }
 0x302   :  { %1721 = vrot.lane.b32.xlu2 %v1027_v4, %s2980_s21  ;;  %1562 = vrot.lane.b32.xlu1 %v1027_v4, %s2978_s12  ;;  %v1030_v4 = vmax.f32 %v998_v61, 0.0 }
 0x303   :  { %1820 = vrot.lane.b32.xlu0 %v3874_v40, %s2981_s8 }
 0x304   :  { %v1362_v41 = vpop.permute.xlu1 %1361  ;;  %v1364_v27 = vpop.permute.xlu2 %1363 }
 0x305   :  { %1406 = vst.msk [vmem:[#allocation2 + $0x40] sm:$0xff] %vm1401_vm6, %v1362_v41  ;;  %v1492_v14 = vpop.permute.xlu0 %1491 }
 0x306   :  { %1471 = vst.msk [vmem:[#allocation2 + $0x40] sm:$0xff] %vm1466_vm7, %v1427_v31 }
 0x307   :  { %1536 = vst.msk [vmem:[#allocation2 + $0x40] sm:$0xff] %vm1531_vm8, %v1492_v14 }
 0x30a   :  { %1884 = vrot.lane.b32.xlu2 %v3874_v40, %s2984_s16  ;;  %1948 = vrot.lane.b32.xlu1 %v3874_v40, %s2982_s14 }
 0x30b   :  { %1239 = vrot.lane.b32.xlu0 %v1029_v50, %s2970_s29 }
 0x30c   :  { %v1557_v58 = vpop.permute.xlu1 %1556  ;;  %v1559_v45 = vpop.permute.xlu2 %1558 }
 0x30d   :  { %1601 = vst.msk [vmem:[#allocation2 + $0x48] sm:$0xff] %vm1596_vm9, %v1557_v58  ;;  %v1622_v55 = vpop.permute.xlu0 %1621 }
 0x30e   :  { %1602 = vst.msk [vmem:[#allocation2 + $0x58] sm:$0xff] %vm1596_vm9, %v1559_v45 }
 0x30f   :  { %1665 = vst.msk [vmem:[#allocation2 + $0x48] sm:$0xff] %vm1141_vm2, %v1622_v55 }
 0x312   :  { %1174 = vrot.lane.b32.xlu2 %v1029_v50, %s2972_s4  ;;  %1109 = vrot.lane.b32.xlu1 %v1029_v50, %s2971_s30 }
 0x313   :  { %1434 = vrot.lane.b32.xlu0 %v1029_v50, %s2973_s5 }
 0x314   :  { %v1716_v28 = vpop.permute.xlu2 %1715  ;;  %v1104_v59 = vpop.permute.xlu1 %1103 }
 0x315   :  { %1147 = vst.msk [vmem:[#allocation2 + $0x50] sm:$0xff] %vm1141_vm2, %v1104_v59  ;;  %v1712_v48 = vpop.permute.xlu0 %1711 }
 0x316   :  { %1212 = vst.msk [vmem:[#allocation2 + $0x50] sm:$0xff] %vm1206_vm3, %v1169_v39  ;;  %v1762_v63 = vsel %vm1757_vm10, %v1710_v49, %v1712_v48 }
 0x317   :  { %1794 = vst.msk [vmem:[#allocation2 + $0x48] sm:$0xff] %vm1206_vm3, %v1762_v63 }
 0x31a   :  { %1369 = vrot.lane.b32.xlu2 %v1029_v50, %s2975_s7  ;;  %1304 = vrot.lane.b32.xlu1 %v1029_v50, %s2974_s6 }
 0x31b   :  { %1822 = vrot.lane.b32.xlu0 %v1030_v4, %s2981_s8 }
 0x31c   :  { %v1106_v22 = vpop.permute.xlu2 %1105  ;;  %v1299_v11 = vpop.permute.xlu1 %1298 }
 0x31d   :  { %1148 = vst.msk [vmem:[#allocation2 + $0x60] sm:$0xff] %vm1141_vm2, %v1106_v22  ;;  %v1234_v52 = vpop.permute.xlu0 %1233 }
 0x31e   :  { %1277 = vst.msk [vmem:[#allocation2 + $0x50] sm:$0xff] %vm1271_vm4, %v1234_v52 }
 0x31f   :  { %1342 = vst.msk [vmem:[#allocation2 + $0x50] sm:$0xff] %vm1336_vm5, %v1299_v11 }
 0x320   :  { %1407 = vst.msk [vmem:[#allocation2 + $0x50] sm:$0xff] %vm1401_vm6, %v1364_v27  ;;  %v2949_v27 = vld [vmem:[%s4698_s0 + $0x98] sm:$0xff] }
 0x321   :  { %v888_v3 = vmul.f32 %v2949_v27, %v3596_v16 }
 0x322   :  { %1564 = vrot.lane.b32.xlu2 %v1029_v50, %s2978_s12  ;;  %1499 = vrot.lane.b32.xlu1 %v1029_v50, %s2977_s11 }
 0x323   :  { %2014 = vrot.lane.b32.xlu0 %v1030_v4, %s2983_s15  ;;  %v1000_v14 = vadd.f32 %v3750_v21, %v888_v3  ;;  %v2950_v21 = vld [vmem:[%s4698_s0 + $0xa0] sm:$0xff] }
 0x324   :  { %v1301_v31 = vpop.permute.xlu2 %1300  ;;  %v1494_v12 = vpop.permute.xlu1 %1493 }
 0x325   :  { %v1429_v60 = vpop.permute.xlu0 %1428  ;;  %v1032_v55 = vmax.f32 %v1000_v14, 0.0 }
 0x326   :  { %1472 = vst.msk [vmem:[#allocation2 + $0x50] sm:$0xff] %vm1466_vm7, %v1429_v60 }
 0x327   :  { %1537 = vst.msk [vmem:[#allocation2 + $0x50] sm:$0xff] %vm1531_vm8, %v1494_v12 }
 0x32a   :  { %1629 = vrot.lane.b32.xlu2 %v1029_v50, %s2976_s10  ;;  %1725 = vrot.lane.b32.xlu1 %v1029_v50, %s2980_s21 }
 0x32b   :  { %1176 = vrot.lane.b32.xlu0 %v1031_v18, %s2972_s4 }
 0x32c   :  { %v1496_v49 = vpop.permute.xlu2 %1495  ;;  %v1624_v35 = vpop.permute.xlu1 %1623 }
 0x32d   :  { %1666 = vst.msk [vmem:[#allocation2 + $0x58] sm:$0xff] %vm1141_vm2, %v1624_v35  ;;  %v1171_v20 = vpop.permute.xlu0 %1170 }
 0x32e   :  { %1213 = vst.msk [vmem:[#allocation2 + $0x60] sm:$0xff] %vm1206_vm3, %v1171_v20 }
 0x332   :  { %1727 = vrot.lane.b32.xlu2 %v1030_v4, %s2980_s21  ;;  %1950 = vrot.lane.b32.xlu1 %v1030_v4, %s2982_s14 }
 0x333   :  { %1371 = vrot.lane.b32.xlu0 %v1031_v18, %s2975_s7 }
 0x334   :  { %v1819_v24 = vpop.permute.xlu2 %1818  ;;  %v1714_v33 = vpop.permute.xlu1 %1713 }
 0x335   :  { %v1763_v39 = vsel %vm1757_vm10, %v1714_v33, %v1716_v28  ;;  %v1366_v37 = vpop.permute.xlu0 %1365  ;;  %v889_v28 = vmul.f32 %v2950_v21, %v3608_v46 }
 0x336   :  { %1795 = vst.msk [vmem:[#allocation2 + $0x58] sm:$0xff] %vm1206_vm3, %v1763_v39 }
 0x337   :  { %v1001_v48 = vadd.f32 %v3720_v26, %v889_v28 }
 0x339   :  { %v1033_v22 = vmax.f32 %v1001_v48, 0.0 }
 0x33a   :  { %1886 = vrot.lane.b32.xlu2 %v1030_v4, %s2984_s16  ;;  %1241 = vrot.lane.b32.xlu1 %v1031_v18, %s2970_s29 }
 0x33b   :  { %1566 = vrot.lane.b32.xlu0 %v1031_v18, %s2978_s12 }
 0x33c   :  { %v2011_v32 = vpop.permute.xlu2 %2010  ;;  %v1236_v5 = vpop.permute.xlu1 %1235 }
 0x33d   :  { %1278 = vst.msk [vmem:[#allocation2 + $0x60] sm:$0xff] %vm1271_vm4, %v1236_v5  ;;  %v1561_v41 = vpop.permute.xlu0 %1560 }
 0x33e   :  { %1343 = vst.msk [vmem:[#allocation2 + $0x60] sm:$0xff] %vm1336_vm5, %v1301_v31 }
 0x33f   :  { %1408 = vst.msk [vmem:[#allocation2 + $0x60] sm:$0xff] %vm1401_vm6, %v1366_v37 }
 0x340   :  { %1603 = vst.msk [vmem:[#allocation2 + $0x68] sm:$0xff] %vm1596_vm9, %v1561_v41 }
 0x342   :  { %1111 = vrot.lane.b32.xlu2 %v1031_v18, %s2971_s30  ;;  %1436 = vrot.lane.b32.xlu1 %v1031_v18, %s2973_s5 }
 0x343   :  { %1631 = vrot.lane.b32.xlu0 %v1031_v18, %s2976_s10 }
 0x344   :  { %v1238_v50 = vpop.permute.xlu2 %1237  ;;  %v1431_v58 = vpop.permute.xlu1 %1430 }
 0x345   :  { %1473 = vst.msk [vmem:[#allocation2 + $0x60] sm:$0xff] %vm1466_vm7, %v1431_v58  ;;  %v1718_v45 = vpop.permute.xlu0 %1717 }
 0x346   :  { %1538 = vst.msk [vmem:[#allocation2 + $0x60] sm:$0xff] %vm1531_vm8, %v1496_v49  ;;  %v2951_v49 = vld [vmem:[%s4698_s0 + $0xa8] sm:$0xff] }
 0x347   :  { %v890_v35 = vmul.f32 %v2951_v49, %v3608_v46 }
 0x349   :  { %v1002_v20 = vadd.f32 %v3720_v26, %v890_v35  ;;  %v2952_v26 = vld [vmem:[%s4698_s0 + $0xb0] sm:$0xff] }
 0x34a   :  { %1306 = vrot.lane.b32.xlu2 %v1031_v18, %s2974_s6  ;;  %1731 = vrot.lane.b32.xlu1 %v1032_v55, %s2980_s21 }
 0x34b   :  { %1729 = vrot.lane.b32.xlu0 %v1031_v18, %s2980_s21  ;;  %v1034_v46 = vmax.f32 %v1002_v20, 0.0 }
 0x34c   :  { %v1433_v16 = vpop.permute.xlu2 %1432  ;;  %v1626_v25 = vpop.permute.xlu1 %1625 }
 0x34d   :  { %1667 = vst.msk [vmem:[#allocation2 + $0x68] sm:$0xff] %vm1141_vm2, %v1626_v25  ;;  %v1947_v9 = vpop.permute.xlu0 %1946 }
 0x352   :  { %1501 = vrot.lane.b32.xlu2 %v1031_v18, %s2977_s11  ;;  %1824 = vrot.lane.b32.xlu1 %v1032_v55, %s2981_s8 }
 0x353   :  { %1888 = vrot.lane.b32.xlu0 %v1032_v55, %s2984_s16 }
 0x354   :  { %v1628_v59 = vpop.permute.xlu2 %1627  ;;  %v1720_v61 = vpop.permute.xlu1 %1719 }
 0x355   :  { %v1764_v63 = vsel %vm1757_vm10, %v1718_v45, %v1720_v61  ;;  %v1108_v4 = vpop.permute.xlu0 %1107 }
 0x356   :  { %1796 = vst.msk [vmem:[#allocation2 + $0x68] sm:$0xff] %vm1206_vm3, %v1764_v63 }
 0x357   :  { %1860 = vst.msk [vmem:[#allocation2 + $0x68] sm:$0xff] %vm1271_vm4, %v1819_v24 }
 0x358   :  { %1149 = vst.msk [vmem:[#allocation2 + $0x70] sm:$0xff] %vm1141_vm2, %v1108_v4 }
 0x35a   :  { %1952 = vrot.lane.b32.xlu2 %v1032_v55, %s2982_s14  ;;  %2016 = vrot.lane.b32.xlu1 %v1032_v55, %s2983_s15 }
 0x35b   :  { %1113 = vrot.lane.b32.xlu0 %v1033_v22, %s2971_s30 }
 0x35c   :  { %v1722_v11 = vpop.permute.xlu2 %1721  ;;  %v1883_v52 = vpop.permute.xlu1 %1882 }
 0x35d   :  { %1924 = vst.msk [vmem:[#allocation2 + $0x68] sm:$0xff] %vm1336_vm5, %v1883_v52  ;;  %v1303_v1 = vpop.permute.xlu0 %1302 }
 0x35e   :  { %1988 = vst.msk [vmem:[#allocation2 + $0x68] sm:$0xff] %vm1401_vm6, %v1947_v9  ;;  %v2953_v9 = vld [vmem:[%s4698_s0 + $0xb8] sm:$0xff] }
 0x35f   :  { %2052 = vst.msk [vmem:[#allocation2 + $0x68] sm:$0xff] %vm1466_vm7, %v2011_v32  ;;  %v891_v32 = vmul.f32 %v2952_v26, %v3611_v0  ;;  %v892_v21 = vmul.f32 %v2953_v9, %v3611_v0  ;;  %v2954_v0 = vld [vmem:[%s4698_s0 + $0xc0] sm:$0xff] }
 0x360   :  { %v893_v4 = vmul.f32 %v2954_v0, %v3605_v34 }
 0x361   :  { %v1003_v5 = vadd.f32 %v3752_v17, %v891_v32  ;;  %v1004_v28 = vadd.f32 %v3752_v17, %v892_v21 }
 0x362   :  { %1243 = vrot.lane.b32.xlu2 %v1033_v22, %s2970_s29  ;;  %1178 = vrot.lane.b32.xlu1 %v1033_v22, %s2972_s4 }
 0x363   :  { %1308 = vrot.lane.b32.xlu0 %v1033_v22, %s2974_s6  ;;  %v1035_v14 = vmax.f32 %v1003_v5, 0.0  ;;  %v1036_v63 = vmax.f32 %v1004_v28, 0.0  ;;  %v2957_v28 = vld [vmem:[%s4698_s0 + $0xd8] sm:$0xff] }
 0x364   :  { %v1885_v7 = vpop.permute.xlu2 %1884  ;;  %v1173_v31 = vpop.permute.xlu1 %1172 }
 0x365   :  { %1214 = vst.msk [vmem:[#allocation2 + $0x70] sm:$0xff] %vm1206_vm3, %v1173_v31  ;;  %v1498_v12 = vpop.permute.xlu0 %1497 }
 0x366   :  { %1279 = vst.msk [vmem:[#allocation2 + $0x70] sm:$0xff] %vm1271_vm4, %v1238_v50 }
 0x367   :  { %1344 = vst.msk [vmem:[#allocation2 + $0x70] sm:$0xff] %vm1336_vm5, %v1303_v1 }
 0x36a   :  { %1438 = vrot.lane.b32.xlu2 %v1033_v22, %s2973_s5  ;;  %1373 = vrot.lane.b32.xlu1 %v1033_v22, %s2975_s7 }
 0x36b   :  { %1503 = vrot.lane.b32.xlu0 %v1033_v22, %s2977_s11 }
 0x36c   :  { %v1368_v44 = vpop.permute.xlu1 %1367  ;;  %v1175_v60 = vpop.permute.xlu2 %1174 }
 0x36d   :  { %1409 = vst.msk [vmem:[#allocation2 + $0x70] sm:$0xff] %vm1401_vm6, %v1368_v44  ;;  %v1724_v18 = vpop.permute.xlu0 %1723 }
 0x36e   :  { %1474 = vst.msk [vmem:[#allocation2 + $0x70] sm:$0xff] %vm1466_vm7, %v1433_v16  ;;  %v1765_v37 = vsel %vm1757_vm10, %v1722_v11, %v1724_v18  ;;  %v1005_v11 = vadd.f32 %v3757_v30, %v893_v4 }
 0x36f   :  { %1539 = vst.msk [vmem:[#allocation2 + $0x70] sm:$0xff] %vm1531_vm8, %v1498_v12 }
 0x372   :  { %1733 = vrot.lane.b32.xlu2 %v1033_v22, %s2980_s21  ;;  %1568 = vrot.lane.b32.xlu1 %v1033_v22, %s2978_s12 }
 0x373   :  { %1633 = vrot.lane.b32.xlu0 %v1033_v22, %s2976_s10 }
 0x374   :  { %v1563_v24 = vpop.permute.xlu1 %1562  ;;  %v1370_v33 = vpop.permute.xlu2 %1369 }
 0x375   :  { %1604 = vst.msk [vmem:[#allocation2 + $0x78] sm:$0xff] %vm1596_vm9, %v1563_v24  ;;  %v1821_v39 = vpop.permute.xlu0 %1820 }
 0x376   :  { %1668 = vst.msk [vmem:[#allocation2 + $0x78] sm:$0xff] %vm1141_vm2, %v1628_v59 }
 0x377   :  { %1797 = vst.msk [vmem:[#allocation2 + $0x78] sm:$0xff] %vm1206_vm3, %v1765_v37 }
 0x378   :  { %1861 = vst.msk [vmem:[#allocation2 + $0x78] sm:$0xff] %vm1271_vm4, %v1821_v39 }
 0x379   :  { %1925 = vst.msk [vmem:[#allocation2 + $0x78] sm:$0xff] %vm1336_vm5, %v1885_v7  ;;  %v1037_v7 = vmax.f32 %v1005_v11, 0.0 }
 0x37a   :  { %1954 = vrot.lane.b32.xlu2 %v1034_v46, %s2982_s14  ;;  %1826 = vrot.lane.b32.xlu1 %v1034_v46, %s2981_s8 }
 0x37b   :  { %1735 = vrot.lane.b32.xlu0 %v1034_v46, %s2980_s21 }
 0x37c   :  { %v1949_v41 = vpop.permute.xlu1 %1948  ;;  %v1565_v27 = vpop.permute.xlu2 %1564 }
 0x37d   :  { %1989 = vst.msk [vmem:[#allocation2 + $0x78] sm:$0xff] %vm1401_vm6, %v1949_v41  ;;  %v1240_v3 = vpop.permute.xlu0 %1239 }
 0x37e   :  { %1605 = vst.msk [vmem:[#allocation2 + $0x88] sm:$0xff] %vm1596_vm9, %v1565_v27 }
 0x382   :  { %2018 = vrot.lane.b32.xlu1 %v1034_v46, %s2983_s15  ;;  %1180 = vrot.lane.b32.xlu2 %v1035_v14, %s2972_s4 }
 0x383   :  { %1890 = vrot.lane.b32.xlu0 %v1034_v46, %s2984_s16 }
 0x384   :  { %v1630_v50 = vpop.permute.xlu2 %1629  ;;  %v1110_v58 = vpop.permute.xlu1 %1109 }
 0x385   :  { %1669 = vst.msk [vmem:[#allocation2 + $0x88] sm:$0xff] %vm1141_vm2, %v1630_v50  ;;  %v1435_v45 = vpop.permute.xlu0 %1434 }
 0x386   :  { %1150 = vst.msk [vmem:[#allocation2 + $0x80] sm:$0xff] %vm1141_vm2, %v1110_v58 }
 0x387   :  { %1215 = vst.msk [vmem:[#allocation2 + $0x80] sm:$0xff] %vm1206_vm3, %v1175_v60 }
 0x388   :  { %1280 = vst.msk [vmem:[#allocation2 + $0x80] sm:$0xff] %vm1271_vm4, %v1240_v3 }
 0x38a   :  { %1375 = vrot.lane.b32.xlu2 %v1035_v14, %s2975_s7  ;;  %1115 = vrot.lane.b32.xlu1 %v1035_v14, %s2971_s30 }
 0x38b   :  { %1245 = vrot.lane.b32.xlu0 %v1035_v14, %s2970_s29 }
 0x38c   :  { %v1728_v55 = vpop.permute.xlu2 %1727  ;;  %v1305_v16 = vpop.permute.xlu1 %1304 }
 0x38d   :  { %1345 = vst.msk [vmem:[#allocation2 + $0x80] sm:$0xff] %vm1336_vm5, %v1305_v16  ;;  %v1823_v25 = vpop.permute.xlu0 %1822 }
 0x38e   :  { %1410 = vst.msk [vmem:[#allocation2 + $0x80] sm:$0xff] %vm1401_vm6, %v1370_v33  ;;  %v2955_v33 = vld [vmem:[%s4698_s0 + $0xc8] sm:$0xff] }
 0x38f   :  { %1475 = vst.msk [vmem:[#allocation2 + $0x80] sm:$0xff] %vm1466_vm7, %v1435_v45  ;;  %v894_v39 = vmul.f32 %v2955_v33, %v3605_v34  ;;  %v2956_v34 = vld [vmem:[%s4698_s0 + $0xd0] sm:$0xff] }
 0x390   :  { %v895_v27 = vmul.f32 %v2956_v34, %v3615_v29 }
 0x391   :  { %v1006_v26 = vadd.f32 %v3757_v30, %v894_v39 }
 0x392   :  { %1570 = vrot.lane.b32.xlu2 %v1035_v14, %s2978_s12  ;;  %1310 = vrot.lane.b32.xlu1 %v1035_v14, %s2974_s6 }
 0x393   :  { %1440 = vrot.lane.b32.xlu0 %v1035_v14, %s2973_s5  ;;  %v1038_v41 = vmax.f32 %v1006_v26, 0.0 }
 0x394   :  { %v1887_v59 = vpop.permute.xlu2 %1886  ;;  %v1500_v61 = vpop.permute.xlu1 %1499 }
 0x395   :  { %1540 = vst.msk [vmem:[#allocation2 + $0x80] sm:$0xff] %vm1531_vm8, %v1500_v61  ;;  %v2015_v48 = vpop.permute.xlu0 %2014 }
 0x39a   :  { %1739 = vrot.lane.b32.xlu2 %v1036_v63, %s2980_s21  ;;  %1505 = vrot.lane.b32.xlu1 %v1035_v14, %s2977_s11 }
 0x39b   :  { %1956 = vrot.lane.b32.xlu0 %v1036_v63, %s2982_s14 }
 0x39c   :  { %v1112_v22 = vpop.permute.xlu2 %1111  ;;  %v1726_v17 = vpop.permute.xlu1 %1725 }
 0x39d   :  { %1151 = vst.msk [vmem:[#allocation2 + $0x90] sm:$0xff] %vm1141_vm2, %v1112_v22  ;;  %v1766_v52 = vsel %vm1757_vm10, %v1726_v17, %v1728_v55  ;;  %v1177_v1 = vpop.permute.xlu0 %1176 }
 0x39e   :  { %1798 = vst.msk [vmem:[#allocation2 + $0x88] sm:$0xff] %vm1206_vm3, %v1766_v52 }
 0x39f   :  { %1862 = vst.msk [vmem:[#allocation2 + $0x88] sm:$0xff] %vm1271_vm4, %v1823_v25 }
 0x3a0   :  { %1216 = vst.msk [vmem:[#allocation2 + $0x90] sm:$0xff] %vm1206_vm3, %v1177_v1 }
 0x3a1   :  { %1926 = vst.msk [vmem:[#allocation2 + $0x88] sm:$0xff] %vm1336_vm5, %v1887_v59  ;;  %v896_v59 = vmul.f32 %v2957_v28, %v3615_v29 }
 0x3a2   :  { %1828 = vrot.lane.b32.xlu2 %v1036_v63, %s2981_s8  ;;  %1635 = vrot.lane.b32.xlu1 %v1035_v14, %s2976_s10 }
 0x3a3   :  { %1182 = vrot.lane.b32.xlu0 %v1037_v7, %s2972_s4 }
 0x3a4   :  { %v1307_v31 = vpop.permute.xlu2 %1306  ;;  %v1951_v12 = vpop.permute.xlu1 %1950 }
 0x3a5   :  { %1990 = vst.msk [vmem:[#allocation2 + $0x88] sm:$0xff] %vm1401_vm6, %v1951_v12  ;;  %v1372_v44 = vpop.permute.xlu0 %1371 }
 0x3a6   :  { %2054 = vst.msk [vmem:[#allocation2 + $0x88] sm:$0xff] %vm1466_vm7, %v2015_v48 }
 0x3aa   :  { %2020 = vrot.lane.b32.xlu2 %v1036_v63, %s2983_s15  ;;  %1737 = vrot.lane.b32.xlu1 %v1035_v14, %s2980_s21  ;;  %v1007_v14 = vadd.f32 %v3732_v38, %v895_v27 }
 0x3ab   :  { %1377 = vrot.lane.b32.xlu0 %v1037_v7, %s2975_s7 }
 0x3ac   :  { %v1502_v60 = vpop.permute.xlu2 %1501  ;;  %v1242_v18 = vpop.permute.xlu1 %1241  ;;  %v1039_v58 = vmax.f32 %v1007_v14, 0.0 }
 0x3ad   :  { %1281 = vst.msk [vmem:[#allocation2 + $0x90] sm:$0xff] %vm1271_vm4, %v1242_v18  ;;  %v1567_v49 = vpop.permute.xlu0 %1566 }
 0x3ae   :  { %1346 = vst.msk [vmem:[#allocation2 + $0x90] sm:$0xff] %vm1336_vm5, %v1307_v31 }
 0x3af   :  { %1411 = vst.msk [vmem:[#allocation2 + $0x90] sm:$0xff] %vm1401_vm6, %v1372_v44 }
 0x3b0   :  { %1606 = vst.msk [vmem:[#allocation2 + $0x98] sm:$0xff] %vm1596_vm9, %v1567_v49 }
 0x3b2   :  { %1117 = vrot.lane.b32.xlu2 %v1037_v7, %s2971_s30  ;;  %1892 = vrot.lane.b32.xlu1 %v1036_v63, %s2984_s16  ;;  %v1008_v63 = vadd.f32 %v3732_v38, %v896_v59 }
 0x3b3   :  { %1572 = vrot.lane.b32.xlu0 %v1037_v7, %s2978_s12 }
 0x3b4   :  { %v1953_v35 = vpop.permute.xlu2 %1952  ;;  %v1437_v20 = vpop.permute.xlu1 %1436  ;;  %v1040_v4 = vmax.f32 %v1008_v63, 0.0 }
 0x3b5   :  { %1476 = vst.msk [vmem:[#allocation2 + $0x90] sm:$0xff] %vm1466_vm7, %v1437_v20  ;;  %v1632_v24 = vpop.permute.xlu0 %1631 }
 0x3b6   :  { %1541 = vst.msk [vmem:[#allocation2 + $0x90] sm:$0xff] %vm1531_vm8, %v1502_v60 }
 0x3b7   :  { %1670 = vst.msk [vmem:[#allocation2 + $0x98] sm:$0xff] %vm1141_vm2, %v1632_v24 }
 0x3ba   :  { %1312 = vrot.lane.b32.xlu2 %v1037_v7, %s2974_s6  ;;  %1247 = vrot.lane.b32.xlu1 %v1037_v7, %s2970_s29 }
 0x3bb   :  { %1741 = vrot.lane.b32.xlu0 %v1037_v7, %s2980_s21 }
 0x3bc   :  { %v1244_v37 = vpop.permute.xlu2 %1243  ;;  %v1732_v46 = vpop.permute.xlu1 %1731 }
 0x3bd   :  { %v1730_v32 = vpop.permute.xlu0 %1729 }
 0x3be   :  { %v1767_v5 = vsel %vm1757_vm10, %v1730_v32, %v1732_v46  ;;  %v2959_v46 = vld [vmem:[%s4698_s0 + $0xe8] sm:$0xff] }
 0x3bf   :  { %1799 = vst.msk [vmem:[#allocation2 + $0x98] sm:$0xff] %vm1206_vm3, %v1767_v5  ;;  %v898_v26 = vmul.f32 %v2959_v46, %v3632_v36  ;;  %v2963_v46 = vld [vmem:[%s4698_s0 + $0x38] sm:$0xff] }
 0x3c2   :  { %1507 = vrot.lane.b32.xlu2 %v1037_v7, %s2977_s11  ;;  %1442 = vrot.lane.b32.xlu1 %v1037_v7, %s2973_s5 }
 0x3c3   :  { %1958 = vrot.lane.b32.xlu0 %v1038_v41, %s2982_s14 }
 0x3c4   :  { %v1439_v3 = vpop.permute.xlu2 %1438  ;;  %v1825_v30 = vpop.permute.xlu1 %1824 }
 0x3c5   :  { %1863 = vst.msk [vmem:[#allocation2 + $0x98] sm:$0xff] %vm1271_vm4, %v1825_v30  ;;  %v1889_v50 = vpop.permute.xlu0 %1888 }
 0x3c6   :  { %1927 = vst.msk [vmem:[#allocation2 + $0x98] sm:$0xff] %vm1336_vm5, %v1889_v50 }
 0x3c7   :  { %1991 = vst.msk [vmem:[#allocation2 + $0x98] sm:$0xff] %vm1401_vm6, %v1953_v35 }
 0x3ca   :  { %1830 = vrot.lane.b32.xlu2 %v1038_v41, %s2981_s8  ;;  %1637 = vrot.lane.b32.xlu1 %v1037_v7, %s2976_s10  ;;  %v2958_v7 = vld [vmem:[%s4698_s0 + $0xe0] sm:$0xff] }
 0x3cb   :  { %1119 = vrot.lane.b32.xlu0 %v1039_v58, %s2971_s30  ;;  %v897_v31 = vmul.f32 %v2958_v7, %v3632_v36 }
 0x3cc   :  { %v1734_v45 = vpop.permute.xlu2 %1733  ;;  %v2017_v55 = vpop.permute.xlu1 %2016 }
 0x3cd   :  { %2055 = vst.msk [vmem:[#allocation2 + $0x98] sm:$0xff] %vm1466_vm7, %v2017_v55  ;;  %v1114_v16 = vpop.permute.xlu0 %1113  ;;  %v1009_v60 = vadd.f32 %v3759_v43, %v897_v31 }
 0x3ce   :  { %1152 = vst.msk [vmem:[#allocation2 + $0xa0] sm:$0xff] %vm1141_vm2, %v1114_v16 }
 0x3cf   :  { %v1041_v49 = vmax.f32 %v1009_v60, 0.0 }
 0x3d2   :  { %2022 = vrot.lane.b32.xlu2 %v1038_v41, %s2983_s15  ;;  %1743 = vrot.lane.b32.xlu1 %v1038_v41, %s2980_s21 }
 0x3d3   :  { %1314 = vrot.lane.b32.xlu0 %v1039_v58, %s2974_s6 }
 0x3d4   :  { %v1955_v25 = vpop.permute.xlu2 %1954  ;;  %v1179_v9 = vpop.permute.xlu1 %1178 }
 0x3d5   :  { %1217 = vst.msk [vmem:[#allocation2 + $0xa0] sm:$0xff] %vm1206_vm3, %v1179_v9  ;;  %v1309_v21 = vpop.permute.xlu0 %1308 }
 0x3d6   :  { %1282 = vst.msk [vmem:[#allocation2 + $0xa0] sm:$0xff] %vm1271_vm4, %v1244_v37 }
 0x3d7   :  { %1347 = vst.msk [vmem:[#allocation2 + $0xa0] sm:$0xff] %vm1336_vm5, %v1309_v21 }
 0x3da   :  { %1249 = vrot.lane.b32.xlu2 %v1039_v58, %s2970_s29  ;;  %1894 = vrot.lane.b32.xlu1 %v1038_v41, %s2984_s16  ;;  %v1010_v41 = vadd.f32 %v3759_v43, %v898_v26  ;;  %v2960_v43 = vld [vmem:[%s4698_s0 + $0xf0] sm:$0xff]  ;;  %v876_v26 = vmul.f32 %v2963_v46, %v3584_v2  ;;  %v2074_v46 = vld [vmem:[#allocation2 + $0x60] sm:$0xff] }
 0x3db   :  { %1509 = vrot.lane.b32.xlu0 %v1039_v58, %s2977_s11  ;;  %v899_v14 = vmul.f32 %v2960_v43, %v3660_v56 }
 0x3dc   :  { %v1374_v61 = vpop.permute.xlu1 %1373  ;;  %v1181_v48 = vpop.permute.xlu2 %1180  ;;  %v1042_v27 = vmax.f32 %v1010_v41, 0.0 }
 0x3dd   :  { %1412 = vst.msk [vmem:[#allocation2 + $0xa0] sm:$0xff] %vm1401_vm6, %v1374_v61  ;;  %v1504_v0 = vpop.permute.xlu0 %1503  ;;  %v1011_v50 = vadd.f32 %v3803_v10, %v899_v14 }
 0x3de   :  { %1477 = vst.msk [vmem:[#allocation2 + $0xa0] sm:$0xff] %vm1466_vm7, %v1439_v3 }
 0x3df   :  { %1542 = vst.msk [vmem:[#allocation2 + $0xa0] sm:$0xff] %vm1531_vm8, %v1504_v0 }
 0x3e2   :  { %1444 = vrot.lane.b32.xlu2 %v1039_v58, %s2973_s5  ;;  %1184 = vrot.lane.b32.xlu1 %v1039_v58, %s2972_s4 }
 0x3e3   :  { %1747 = vrot.lane.b32.xlu0 %v1040_v4, %s2980_s21 }
 0x3e4   :  { %v1569_v29 = vpop.permute.xlu1 %1568  ;;  %v1376_v22 = vpop.permute.xlu2 %1375 }
 0x3e5   :  { %1607 = vst.msk [vmem:[#allocation2 + $0xa8] sm:$0xff] %vm1596_vm9, %v1569_v29  ;;  %v1634_v17 = vpop.permute.xlu0 %1633  ;;  %v2961_v29 = vld [vmem:[%s4698_s0 + $0xf8] sm:$0xff] }
 0x3e6   :  { %1671 = vst.msk [vmem:[#allocation2 + $0xa8] sm:$0xff] %vm1141_vm2, %v1634_v17 }
 0x3ea   :  { %1639 = vrot.lane.b32.xlu2 %v1039_v58, %s2976_s10  ;;  %1379 = vrot.lane.b32.xlu1 %v1039_v58, %s2975_s7 }
 0x3eb   :  { %1832 = vrot.lane.b32.xlu0 %v1040_v4, %s2981_s8 }
 0x3ec   :  { %v1827_v38 = vpop.permute.xlu1 %1826  ;;  %v1571_v11 = vpop.permute.xlu2 %1570 }
 0x3ed   :  { %1608 = vst.msk [vmem:[#allocation2 + $0xb8] sm:$0xff] %vm1596_vm9, %v1571_v11  ;;  %v1736_v52 = vpop.permute.xlu0 %1735 }
 0x3ee   :  { %v1768_v1 = vsel %vm1757_vm10, %v1734_v45, %v1736_v52 }
 0x3ef   :  { %1800 = vst.msk [vmem:[#allocation2 + $0xa8] sm:$0xff] %vm1206_vm3, %v1768_v1 }
 0x3f0   :  { %1864 = vst.msk [vmem:[#allocation2 + $0xa8] sm:$0xff] %vm1271_vm4, %v1827_v38 }
 0x3f2   :  { %1745 = vrot.lane.b32.xlu2 %v1039_v58, %s2980_s21  ;;  %1574 = vrot.lane.b32.xlu1 %v1039_v58, %s2978_s12 }
 0x3f3   :  { %2024 = vrot.lane.b32.xlu0 %v1040_v4, %s2983_s15 }
 0x3f4   :  { %v2019_v12 = vpop.permute.xlu1 %2018  ;;  %v1740_v44 = vpop.permute.xlu2 %1739 }
 0x3f5   :  { %v1891_v18 = vpop.permute.xlu0 %1890 }
 0x3f6   :  { %1928 = vst.msk [vmem:[#allocation2 + $0xa8] sm:$0xff] %vm1336_vm5, %v1891_v18 }
 0x3f7   :  { %1992 = vst.msk [vmem:[#allocation2 + $0xa8] sm:$0xff] %vm1401_vm6, %v1955_v25  ;;  %v1043_v25 = vmax.f32 %v1011_v50, 0.0 }
 0x3f8   :  { %2056 = vst.msk [vmem:[#allocation2 + $0xa8] sm:$0xff] %vm1466_vm7, %v2019_v12 }
 0x3fa   :  { %1896 = vrot.lane.b32.xlu2 %v1040_v4, %s2984_s16  ;;  %1960 = vrot.lane.b32.xlu1 %v1040_v4, %s2982_s14 }
 0x3fb   :  { %1251 = vrot.lane.b32.xlu0 %v1041_v49, %s2970_s29 }
 0x3fc   :  { %v1829_v35 = vpop.permute.xlu2 %1828  ;;  %v1116_v20 = vpop.permute.xlu1 %1115 }
 0x3fd   :  { %1153 = vst.msk [vmem:[#allocation2 + $0xb0] sm:$0xff] %vm1141_vm2, %v1116_v20  ;;  %v1246_v24 = vpop.permute.xlu0 %1245 }
 0x3fe   :  { %1218 = vst.msk [vmem:[#allocation2 + $0xb0] sm:$0xff] %vm1206_vm3, %v1181_v48 }
 0x3ff   :  { %1283 = vst.msk [vmem:[#allocation2 + $0xb0] sm:$0xff] %vm1271_vm4, %v1246_v24 }
 0x402   :  { %1186 = vrot.lane.b32.xlu2 %v1041_v49, %s2972_s4  ;;  %1121 = vrot.lane.b32.xlu1 %v1041_v49, %s2971_s30 }
 0x403   :  { %1446 = vrot.lane.b32.xlu0 %v1041_v49, %s2973_s5 }
 0x404   :  { %v2021_v33 = vpop.permute.xlu2 %2020  ;;  %v1311_v39 = vpop.permute.xlu1 %1310 }
 0x405   :  { %1348 = vst.msk [vmem:[#allocation2 + $0xb0] sm:$0xff] %vm1336_vm5, %v1311_v39  ;;  %v1441_v37 = vpop.permute.xlu0 %1440 }
 0x406   :  { %1413 = vst.msk [vmem:[#allocation2 + $0xb0] sm:$0xff] %vm1401_vm6, %v1376_v22  ;;  %v900_v22 = vmul.f32 %v2961_v29, %v3660_v56 }
 0x407   :  { %1478 = vst.msk [vmem:[#allocation2 + $0xb0] sm:$0xff] %vm1466_vm7, %v1441_v37 }
 0x408   :  { %v1012_v17 = vadd.f32 %v3803_v10, %v900_v22 }
 0x40a   :  { %1381 = vrot.lane.b32.xlu2 %v1041_v49, %s2975_s7  ;;  %1316 = vrot.lane.b32.xlu1 %v1041_v49, %s2974_s6  ;;  %v1044_v1 = vmax.f32 %v1012_v17, 0.0 }
 0x40b   :  { %1641 = vrot.lane.b32.xlu0 %v1041_v49, %s2976_s10 }
 0x40c   :  { %v1118_v32 = vpop.permute.xlu2 %1117  ;;  %v1506_v5 = vpop.permute.xlu1 %1505 }
 0x40d   :  { %1154 = vst.msk [vmem:[#allocation2 + $0xc0] sm:$0xff] %vm1141_vm2, %v1118_v32  ;;  %v1957_v34 = vpop.permute.xlu0 %1956 }
 0x40e   :  { %1543 = vst.msk [vmem:[#allocation2 + $0xb0] sm:$0xff] %vm1531_vm8, %v1506_v5 }
 0x412   :  { %1576 = vrot.lane.b32.xlu2 %v1041_v49, %s2978_s12  ;;  %1511 = vrot.lane.b32.xlu1 %v1041_v49, %s2977_s11 }
 0x413   :  { %1751 = vrot.lane.b32.xlu0 %v1042_v27, %s2980_s21 }
 0x414   :  { %v1313_v3 = vpop.permute.xlu2 %1312  ;;  %v1636_v36 = vpop.permute.xlu1 %1635 }
 0x415   :  { %1672 = vst.msk [vmem:[#allocation2 + $0xb8] sm:$0xff] %vm1141_vm2, %v1636_v36  ;;  %v1183_v30 = vpop.permute.xlu0 %1182 }
 0x416   :  { %1219 = vst.msk [vmem:[#allocation2 + $0xc0] sm:$0xff] %vm1206_vm3, %v1183_v30  ;;  %v2964_v30 = vld [vmem:[%s4698_s0 + $0x8] sm:$0xff] }
 0x41a   :  { %1749 = vrot.lane.b32.xlu2 %v1041_v49, %s2980_s21  ;;  %1962 = vrot.lane.b32.xlu1 %v1042_v27, %s2982_s14 }
 0x41b   :  { %1834 = vrot.lane.b32.xlu0 %v1042_v27, %s2981_s8 }
 0x41c   :  { %v1508_v58 = vpop.permute.xlu2 %1507  ;;  %v1738_v45 = vpop.permute.xlu1 %1737 }
 0x41d   :  { %v1769_v55 = vsel %vm1757_vm10, %v1738_v45, %v1740_v44  ;;  %v1378_v16 = vpop.permute.xlu0 %1377 }
 0x41e   :  { %1801 = vst.msk [vmem:[#allocation2 + $0xb8] sm:$0xff] %vm1206_vm3, %v1769_v55 }
 0x41f   :  { %1865 = vst.msk [vmem:[#allocation2 + $0xb8] sm:$0xff] %vm1271_vm4, %v1829_v35  ;;  %v2962_v35 = vld [vmem:[%s4698_s0 + $0x28] sm:$0xff] }
 0x420   :  { %v874_v20 = vmul.f32 %v2962_v35, %v3590_v19  ;;  %v2080_v35 = vld [vmem:[#allocation2 + $0x90] sm:$0xff] }
 0x422   :  { %1898 = vrot.lane.b32.xlu2 %v1042_v27, %s2984_s16  ;;  %1253 = vrot.lane.b32.xlu1 %v1043_v25, %s2970_s29  ;;  %v986_v24 = vadd.f32 %v3668_v42, %v874_v20  ;;  %v988_v42 = vadd.f32 %v3689_v8, %v876_v26  ;;  %v2078_v20 = vld [vmem:[#allocation2 + $0x80] sm:$0xff] }
 0x423   :  { %2026 = vrot.lane.b32.xlu0 %v1042_v27, %s2983_s15 }
 0x424   :  { %v1831_v9 = vpop.permute.xlu2 %1830  ;;  %v1893_v21 = vpop.permute.xlu1 %1892  ;;  %v4239_v19 = vmax.f32 %v986_v24, 0.0  ;;  %v1020_v2 = vmax.f32 %v988_v42, 0.0  ;;  %v2072_v42 = vld [vmem:[#allocation2 + $0x50] sm:$0xff] }
 0x425   :  { %1929 = vst.msk [vmem:[#allocation2 + $0xb8] sm:$0xff] %vm1336_vm5, %v1893_v21  ;;  %v1573_v28 = vpop.permute.xlu0 %1572 }
 0x426   :  { %1993 = vst.msk [vmem:[#allocation2 + $0xb8] sm:$0xff] %vm1401_vm6, %v1957_v34 }
 0x427   :  { %2057 = vst.msk [vmem:[#allocation2 + $0xb8] sm:$0xff] %vm1466_vm7, %v2021_v33 }
 0x428   :  { %1609 = vst.msk [vmem:[#allocation2 + $0xc8] sm:$0xff] %vm1596_vm9, %v1573_v28 }
 0x42a   :  { %1123 = vrot.lane.b32.xlu2 %v1043_v25, %s2971_s30  ;;  %1448 = vrot.lane.b32.xlu1 %v1043_v25, %s2973_s5  ;;  %s2985_s30 = smov 127  }
 0x42b   :  { %1188 = vrot.lane.b32.xlu0 %v1043_v25, %s2972_s4 }
 0x42c   :  { %v2023_v59 = vpop.permute.xlu2 %2022  ;;  %v1248_v61 = vpop.permute.xlu1 %1247 }
 0x42d   :  { %1284 = vst.msk [vmem:[#allocation2 + $0xc0] sm:$0xff] %vm1271_vm4, %v1248_v61  ;;  %v1742_v48 = vpop.permute.xlu0 %1741 }
 0x42e   :  { %1349 = vst.msk [vmem:[#allocation2 + $0xc0] sm:$0xff] %vm1336_vm5, %v1313_v3 }
 0x42f   :  { %1414 = vst.msk [vmem:[#allocation2 + $0xc0] sm:$0xff] %vm1401_vm6, %v1378_v16 }
 0x432   :  { %1318 = vrot.lane.b32.xlu2 %v1043_v25, %s2974_s6  ;;  %1643 = vrot.lane.b32.xlu1 %v1043_v25, %s2976_s10 }
 0x433   :  { %1383 = vrot.lane.b32.xlu0 %v1043_v25, %s2975_s7 }
 0x434   :  { %v1250_v63 = vpop.permute.xlu2 %1249  ;;  %v1443_v0 = vpop.permute.xlu1 %1442 }
 0x435   :  { %1479 = vst.msk [vmem:[#allocation2 + $0xc0] sm:$0xff] %vm1466_vm7, %v1443_v0  ;;  %v1959_v4 = vpop.permute.xlu0 %1958 }
 0x436   :  { %1544 = vst.msk [vmem:[#allocation2 + $0xc0] sm:$0xff] %vm1531_vm8, %v1508_v58 }
 0x43a   :  { %1513 = vrot.lane.b32.xlu2 %v1043_v25, %s2977_s11  ;;  %1753 = vrot.lane.b32.xlu1 %v1043_v25, %s2980_s21 }
 0x43b   :  { %1578 = vrot.lane.b32.xlu0 %v1043_v25, %s2978_s12 }
 0x43c   :  { %v1445_v38 = vpop.permute.xlu2 %1444  ;;  %v1638_v11 = vpop.permute.xlu1 %1637 }
 0x43d   :  { %1673 = vst.msk [vmem:[#allocation2 + $0xc8] sm:$0xff] %vm1141_vm2, %v1638_v11  ;;  %v1120_v52 = vpop.permute.xlu0 %1119 }
 0x43e   :  { %1155 = vst.msk [vmem:[#allocation2 + $0xd0] sm:$0xff] %vm1141_vm2, %v1120_v52 }
 0x442   :  { %1755 = vrot.lane.b32.xlu2 %v1044_v1, %s2980_s21  ;;  %1836 = vrot.lane.b32.xlu1 %v1044_v1, %s2981_s8 }
 0x443   :  { %1900 = vrot.lane.b32.xlu0 %v1044_v1, %s2984_s16 }
 0x444   :  { %v1640_v56 = vpop.permute.xlu2 %1639  ;;  %v1744_v7 = vpop.permute.xlu1 %1743 }
 0x445   :  { %v1770_v31 = vsel %vm1757_vm10, %v1742_v48, %v1744_v7  ;;  %v1315_v12 = vpop.permute.xlu0 %1314 }
 0x446   :  { %1802 = vst.msk [vmem:[#allocation2 + $0xc8] sm:$0xff] %vm1206_vm3, %v1770_v31  ;;  %v2086_v31 = vld [vmem:[#allocation2 + $0xc0] sm:$0xff] }
 0x447   :  { %1866 = vst.msk [vmem:[#allocation2 + $0xc8] sm:$0xff] %vm1271_vm4, %v1831_v9 }
 0x44a   :  { %1964 = vrot.lane.b32.xlu2 %v1044_v1, %s2982_s14  ;;  %2028 = vrot.lane.b32.xlu1 %v1044_v1, %s2983_s15 }
 0x44b   :  { %2012 = vrot.lane.b32.xlu0 %v3874_v40, %s2983_s15 }
 0x44c   :  { %v1746_v10 = vpop.permute.xlu2 %1745  ;;  %v1895_v44 = vpop.permute.xlu1 %1894 }
 0x44d   :  { %1930 = vst.msk [vmem:[#allocation2 + $0xc8] sm:$0xff] %vm1336_vm5, %v1895_v44  ;;  %v1510_v60 = vpop.permute.xlu0 %1509 }
 0x44e   :  { %1994 = vst.msk [vmem:[#allocation2 + $0xc8] sm:$0xff] %vm1401_vm6, %v1959_v4 }
 0x44f   :  { %2058 = vst.msk [vmem:[#allocation2 + $0xc8] sm:$0xff] %vm1466_vm7, %v2023_v59 }
 0x452   :  { %1816 = vrot.lane.b32.xlu2 %v3807_v53, %s2981_s8  ;;  %1814 = vrot.lane.b32.xlu1 %v3777_v54, %s2981_s8 }
 0x453   :  { %1878 = vrot.lane.b32.xlu0 %v3777_v54, %s2984_s16 }
 0x454   :  { %v1897_v18 = vpop.permute.xlu2 %1896  ;;  %v1185_v40 = vpop.permute.xlu1 %1184 }
 0x455   :  { %1220 = vst.msk [vmem:[#allocation2 + $0xd0] sm:$0xff] %vm1206_vm3, %v1185_v40  ;;  %v1748_v49 = vpop.permute.xlu0 %1747  ;;  %v2082_v40 = vld [vmem:[#allocation2 + $0xa0] sm:$0xff] }
 0x456   :  { %1285 = vst.msk [vmem:[#allocation2 + $0xd0] sm:$0xff] %vm1271_vm4, %v1250_v63  ;;  %v1771_v34 = vsel %vm1757_vm10, %v1746_v10, %v1748_v49 }
 0x457   :  { %1350 = vst.msk [vmem:[#allocation2 + $0xd0] sm:$0xff] %vm1336_vm5, %v1315_v12 }
 0x45a   :  { %1617 = vrot.lane.b32.xlu2 %v3681_v6, %s2976_s10  ;;  %1880 = vrot.lane.b32.xlu1 %v3807_v53, %s2984_s16 }
 0x45b   :  { %1619 = vrot.lane.b32.xlu0 %v3704_v13, %s2976_s10 }
 0x45c   :  { %v1380_v33 = vpop.permute.xlu1 %1379  ;;  %v1187_v39 = vpop.permute.xlu2 %1186 }
 0x45d   :  { %1415 = vst.msk [vmem:[#allocation2 + $0xd0] sm:$0xff] %vm1401_vm6, %v1380_v33  ;;  %v1833_v37 = vpop.permute.xlu0 %1832 }
 0x45e   :  { %1480 = vst.msk [vmem:[#allocation2 + $0xd0] sm:$0xff] %vm1466_vm7, %v1445_v38 }
 0x45f   :  { %1545 = vst.msk [vmem:[#allocation2 + $0xd0] sm:$0xff] %vm1531_vm8, %v1510_v60 }
 0x462   :  { %1703 = vrot.lane.b32.xlu2 %v4239_v19, %s2980_s21  ;;  %1701 = vrot.lane.b32.xlu1 %v3681_v6, %s2980_s21 }
 0x463   :  { %1705 = vrot.lane.b32.xlu0 %v3704_v13, %s2980_s21 }
 0x464   :  { %v1575_v32 = vpop.permute.xlu1 %1574  ;;  %v1382_v5 = vpop.permute.xlu2 %1381 }
 0x465   :  { %1610 = vst.msk [vmem:[#allocation2 + $0xd8] sm:$0xff] %vm1596_vm9, %v1575_v32  ;;  %v2025_v41 = vpop.permute.xlu0 %2024  ;;  %v2070_v32 = vld [vmem:[#allocation2 + $0x40] sm:$0xff] }
 0x466   :  { %1674 = vst.msk [vmem:[#allocation2 + $0xd8] sm:$0xff] %vm1141_vm2, %v1640_v56  ;;  %v2088_v7 = vld [vmem:[#allocation2 + $0xd0] sm:$0xff] }
 0x467   :  { %1803 = vst.msk [vmem:[#allocation2 + $0xd8] sm:$0xff] %vm1206_vm3, %v1771_v34  ;;  %v2106_v44 = vpack.c.bf16 %v2088_v7, %v2086_v31  ;;  %v2098_v34 = vpack.c.bf16 %v2072_v42, %v2070_v32  ;;  %v2836_v7 = vld [vmem:[%s4700_s2 + $0x8] sm:$0xff] }
 0x468   :  { %1867 = vst.msk [vmem:[#allocation2 + $0xd8] sm:$0xff] %vm1271_vm4, %v1833_v37 }
 0x469   :  { %1931 = vst.msk [vmem:[#allocation2 + $0xd8] sm:$0xff] %vm1336_vm5, %v1897_v18  ;;  %v2084_v18 = vld [vmem:[#allocation2 + $0xb0] sm:$0xff] }
 0x46a   :  { %1942 = vrot.lane.b32.xlu2 %v3777_v54, %s2982_s14  ;;  %1707 = vrot.lane.b32.xlu1 %v1020_v2, %s2980_s21  ;;  %v2104_v49 = vpack.c.bf16 %v2084_v18, %v2082_v40 }
 0x46b   :  { %1944 = vrot.lane.b32.xlu0 %v3807_v53, %s2982_s14 }
 0x46c   :  { %v1961_v6 = vpop.permute.xlu1 %1960  ;;  %v1577_v8 = vpop.permute.xlu2 %1576 }
 0x46d   :  { %1995 = vst.msk [vmem:[#allocation2 + $0xd8] sm:$0xff] %vm1401_vm6, %v1961_v6  ;;  %v1252_v13 = vpop.permute.xlu0 %1251 }
 0x46e   :  { %2059 = vst.msk [vmem:[#allocation2 + $0xd8] sm:$0xff] %vm1466_vm7, %v2025_v41 }
 0x46f   :  { %1611 = vst.msk [vmem:[#allocation2 + $0xe8] sm:$0xff] %vm1596_vm9, %v1577_v8 }
 0x472   :  { %2008 = vrot.lane.b32.xlu2 %v3807_v53, %s2983_s15  ;;  %2006 = vrot.lane.b32.xlu1 %v3777_v54, %s2983_s15  ;;  %v870_v53 = vmul.f32 %v2964_v30, %v3577_v15  ;;  %v2965_v15 = vld [vmem:[%s4698_s0 + $0x18] sm:$0xff] }
 0x473   :  { %1810 = vrot.lane.b32.xlu0 %v4239_v19, %s2981_s8  ;;  %v872_v45 = vmul.f32 %v2965_v15, %v3565_v47 }
 0x474   :  { %v1750_v27 = vpop.permute.xlu2 %1749  ;;  %v1122_v3 = vpop.permute.xlu1 %1121  ;;  %v982_v54 = vadd.f32 %v3621_v51, %v870_v53  ;;  %v2087_v53 = vld [vmem:[#allocation2 + $0xc8] sm:$0xff] }
 0x475   :  { %1156 = vst.msk [vmem:[#allocation2 + $0xe0] sm:$0xff] %vm1141_vm2, %v1122_v3  ;;  %v1447_v36 = vpop.permute.xlu0 %1446  ;;  %v984_v51 = vadd.f32 %v3640_v62, %v872_v45  ;;  %v2089_v3 = vld [vmem:[#allocation2 + $0xd8] sm:$0xff] }
 0x476   :  { %1221 = vst.msk [vmem:[#allocation2 + $0xe0] sm:$0xff] %vm1206_vm3, %v1187_v39  ;;  %v1014_v58 = vmax.f32 %v982_v54, 0.0  ;;  %v2102_v39 = vpack.c.bf16 %v2080_v35, %v2078_v20  ;;  %v2107_v54 = vpack.c.bf16 %v2089_v3, %v2087_v53  ;;  %v2842_v3 = vld [vmem:[%s4700_s2 + $0x38] sm:$0xff] }
 0x477   :  { %1286 = vst.msk [vmem:[#allocation2 + $0xe0] sm:$0xff] %vm1271_vm4, %v1252_v13  ;;  %v1016_v47 = vmax.f32 %v984_v51, 0.0  ;;  %v2083_v51 = vld [vmem:[#allocation2 + $0xa8] sm:$0xff] }
 0x47a   :  { %1874 = vrot.lane.b32.xlu2 %v4239_v19, %s2984_s16  ;;  %1812 = vrot.lane.b32.xlu1 %v1020_v2, %s2981_s8 }
 0x47b   :  { %1876 = vrot.lane.b32.xlu0 %v1020_v2, %s2984_s16 }
 0x47c   :  { %v1899_v43 = vpop.permute.xlu2 %1898  ;;  %v1317_v14 = vpop.permute.xlu1 %1316 }
 0x47d   :  { %1351 = vst.msk [vmem:[#allocation2 + $0xe0] sm:$0xff] %vm1336_vm5, %v1317_v14  ;;  %v1642_v50 = vpop.permute.xlu0 %1641  ;;  %v2085_v14 = vld [vmem:[#allocation2 + $0xb8] sm:$0xff] }
 0x47e   :  { %1416 = vst.msk [vmem:[#allocation2 + $0xe0] sm:$0xff] %vm1401_vm6, %v1382_v5 }
 0x47f   :  { %1481 = vst.msk [vmem:[#allocation2 + $0xe0] sm:$0xff] %vm1466_vm7, %v1447_v36  ;;  %v2066_v36 = vld [vmem:[#allocation2 + $0x20] sm:$0xff] }
 0x480   :  { %1675 = vst.msk [vmem:[#allocation2 + $0xe8] sm:$0xff] %vm1141_vm2, %v1642_v50  ;;  %v2062_v50 = vld [vmem:[#allocation2] sm:$0xff] }
 0x482   :  { %1695 = vrot.lane.b32.xlu2 %v1014_v58, %s2980_s21  ;;  %1693 = vrot.lane.b32.xlu1 %v3624_v57, %s2980_s21 }
 0x483   :  { %1697 = vrot.lane.b32.xlu0 %v3653_v23, %s2980_s21 }
 0x484   :  { %v1124_v55 = vpop.permute.xlu2 %1123  ;;  %v1512_v16 = vpop.permute.xlu1 %1511 }
 0x485   :  { %1157 = vst.msk [vmem:[#allocation2 + $0xf0] sm:$0xff] %vm1141_vm2, %v1124_v55  ;;  %v1752_v25 = vpop.permute.xlu0 %1751 }
 0x486   :  { %1546 = vst.msk [vmem:[#allocation2 + $0xe0] sm:$0xff] %vm1531_vm8, %v1512_v16  ;;  %v1772_v9 = vsel %vm1757_vm10, %v1750_v27, %v1752_v25  ;;  %v2068_v27 = vld [vmem:[#allocation2 + $0x30] sm:$0xff]  ;;  %v2105_v16 = vpack.c.bf16 %v2085_v14, %v2083_v51  ;;  %v2081_v25 = vld [vmem:[#allocation2 + $0x98] sm:$0xff] }
 0x487   :  { %1804 = vst.msk [vmem:[#allocation2 + $0xe8] sm:$0xff] %vm1206_vm3, %v1772_v9  ;;  %v2096_v30 = vpack.c.bf16 %v2068_v27, %v2066_v36  ;;  %v2079_v9 = vld [vmem:[#allocation2 + $0x88] sm:$0xff]  ;;  %v2841_v27 = vld [vmem:[%s4700_s2 + $0x30] sm:$0xff]  ;;  %v2843_v36 = vld [vmem:[%s4700_s2 + $0x40] sm:$0xff] }
 0x48a   :  { %1938 = vrot.lane.b32.xlu2 %v4239_v19, %s2982_s14  ;;  %1699 = vrot.lane.b32.xlu1 %v1016_v47, %s2980_s21 }
 0x48b   :  { %1940 = vrot.lane.b32.xlu0 %v1020_v2, %s2982_s14 }
 0x48c   :  { %v1319_v57 = vpop.permute.xlu2 %1318  ;;  %v1963_v62 = vpop.permute.xlu1 %1962 }
 0x48d   :  { %v1835_v23 = vpop.permute.xlu0 %1834  ;;  %v2090_v52 = vld [vmem:[#allocation2 + $0xe0] sm:$0xff] }
 0x48e   :  { %1868 = vst.msk [vmem:[#allocation2 + $0xe8] sm:$0xff] %vm1271_vm4, %v1835_v23 }
 0x48f   :  { %1932 = vst.msk [vmem:[#allocation2 + $0xe8] sm:$0xff] %vm1336_vm5, %v1899_v43  ;;  %v2064_v43 = vld [vmem:[#allocation2 + $0x10] sm:$0xff] }
 0x490   :  { %1996 = vst.msk [vmem:[#allocation2 + $0xe8] sm:$0xff] %vm1401_vm6, %v1963_v62  ;;  %v2094_v45 = vpack.c.bf16 %v2064_v43, %v2062_v50  ;;  %v2845_v43 = vld [vmem:[%s4700_s2 + $0x50] sm:$0xff] }
 0x492   :  { %2004 = vrot.lane.b32.xlu2 %v1020_v2, %s2983_s15  ;;  %2002 = vrot.lane.b32.xlu1 %v4239_v19, %s2983_s15  ;;  %v2076_v19 = vld [vmem:[#allocation2 + $0x70] sm:$0xff] }
 0x493   :  { %1806 = vrot.lane.b32.xlu0 %v1014_v58, %s2981_s8  ;;  %v2100_v26 = vpack.c.bf16 %v2076_v19, %v2074_v46 }
 0x494   :  { %v1514_v21 = vpop.permute.xlu2 %1513  ;;  %v1254_v28 = vpop.permute.xlu1 %1253 }
 0x495   :  { %v2027_v59 = vpop.permute.xlu0 %2026 }
 0x496   :  { %2060 = vst.msk [vmem:[#allocation2 + $0xe8] sm:$0xff] %vm1466_vm7, %v2027_v59 }
 0x49a   :  { %1870 = vrot.lane.b32.xlu2 %v1014_v58, %s2984_s16  ;;  %1808 = vrot.lane.b32.xlu1 %v1016_v47, %s2981_s8 }
 0x49b   :  { %1872 = vrot.lane.b32.xlu0 %v1016_v47, %s2984_s16 }
 0x49c   :  { %v1756_v61 = vpop.permute.xlu2 %1755  ;;  %v1449_v48 = vpop.permute.xlu1 %1448 }
 0x49d   :  { %v1189_v63 = vpop.permute.xlu0 %1188  ;;  %v2091_v2 = vld [vmem:[#allocation2 + $0xe8] sm:$0xff] }
 0x49e   :  { %1222 = vst.msk [vmem:[#allocation2 + $0xf0] sm:$0xff] %vm1206_vm3, %v1189_v63 }
 0x49f   :  { %1287 = vst.msk [vmem:[#allocation2 + $0xf0] sm:$0xff] %vm1271_vm4, %v1254_v28 }
 0x4a0   :  { %1352 = vst.msk [vmem:[#allocation2 + $0xf0] sm:$0xff] %vm1336_vm5, %v1319_v57 }
 0x4a2   :  { %1936 = vrot.lane.b32.xlu2 %v1016_v47, %s2982_s14  ;;  %1934 = vrot.lane.b32.xlu1 %v1014_v58, %s2982_s14 }
 0x4a3   :  { %1998 = vrot.lane.b32.xlu0 %v1014_v58, %s2983_s15 }
 0x4a4   :  { %v1965_v0 = vpop.permute.xlu2 %1964  ;;  %v1644_v4 = vpop.permute.xlu1 %1643 }
 0x4a5   :  { %v1384_v29 = vpop.permute.xlu0 %1383 }
 0x4a6   :  { %1417 = vst.msk [vmem:[#allocation2 + $0xf0] sm:$0xff] %vm1401_vm6, %v1384_v29 }
 0x4a7   :  { %1482 = vst.msk [vmem:[#allocation2 + $0xf0] sm:$0xff] %vm1466_vm7, %v1449_v48 }
 0x4a8   :  { %1547 = vst.msk [vmem:[#allocation2 + $0xf0] sm:$0xff] %vm1531_vm8, %v1514_v21  ;;  %v2075_v21 = vld [vmem:[#allocation2 + $0x68] sm:$0xff] }
 0x4aa   :  { %2000 = vrot.lane.b32.xlu1 %v1016_v47, %s2983_s15  ;;  %v2103_v47 = vpack.c.bf16 %v2081_v25, %v2079_v9  ;;  %s2986_s15 = smov 126  }
 0x4ac   :  { %v1817_v22 = vpop.permute.xlu2 %1816  ;;  %v1754_v17 = vpop.permute.xlu1 %1753 }
 0x4ad   :  { %1859 = vst.msk [vmem:[#allocation2 + $0x58] sm:$0xff] %vm1271_vm4, %v1817_v22  ;;  %v1773_v38 = vsel %vm1757_vm10, %v1754_v17, %v1756_v61  ;;  %v1579_v11 = vpop.permute.xlu0 %1578 }
 0x4ae   :  { %1612 = vst.msk [vmem:[#allocation2 + $0xf8] sm:$0xff] %vm1596_vm9, %v1579_v11 }
 0x4af   :  { %1676 = vst.msk [vmem:[#allocation2 + $0xf8] sm:$0xff] %vm1141_vm2, %v1644_v4  ;;  %v2092_v1 = vld [vmem:[#allocation2 + $0xf0] sm:$0xff] }
 0x4b0   :  { %1805 = vst.msk [vmem:[#allocation2 + $0xf8] sm:$0xff] %vm1206_vm3, %v1773_v38  ;;  %v2108_v56 = vpack.c.bf16 %v2092_v1, %v2090_v52 }
 0x4b2   :  { %2254 = vmatpush.bf16.msrb.mxu1 %v2108_v56  ;;  %2853 = vmatpush.bf16.msra.mxu2 %v2108_v56 }
 0x4b4   :  { %v1618_v12 = vpop.permute.xlu2 %1617  ;;  %v1837_v10 = vpop.permute.xlu1 %1836 }
 0x4b5   :  { %1663 = vst.msk [vmem:[#allocation2 + $0x28] sm:$0xff] %vm1141_vm2, %v1618_v12  ;;  %v1901_v60 = vpop.permute.xlu0 %1900 }
 0x4b6   :  { %1869 = vst.msk [vmem:[#allocation2 + $0xf8] sm:$0xff] %vm1271_vm4, %v1837_v10  ;;  %2255 = vmatpush.bf16.msrb.mxu1 %v2106_v44  ;;  %2854 = vmatpush.bf16.msra.mxu2 %v2106_v44 }
 0x4b7   :  { %1933 = vst.msk [vmem:[#allocation2 + $0xf8] sm:$0xff] %vm1336_vm5, %v1901_v60 }
 0x4b8   :  { %1997 = vst.msk [vmem:[#allocation2 + $0xf8] sm:$0xff] %vm1401_vm6, %v1965_v0 }
 0x4ba   :  { %2256 = vmatpush.bf16.msrb.mxu1 %v2104_v49  ;;  %2855 = vmatpush.bf16.msra.mxu2 %v2104_v49  ;;  %v2837_v49 = vld [vmem:[%s4700_s2 + $0x10] sm:$0xff] }
 0x4bc   :  { %v4336_v24 = vpop.permute.xlu2 %1703  ;;  %v2029_v33 = vpop.permute.xlu1 %2028 }
 0x4bd   :  { %2061 = vst.msk [vmem:[#allocation2 + $0xf8] sm:$0xff] %vm1466_vm7, %v2029_v33  ;;  %v2013_v37 = vpop.permute.xlu0 %2012 }
 0x4be   :  { %2053 = vst.msk [vmem:[#allocation2 + $0x78] sm:$0xff] %vm1466_vm7, %v2013_v37  ;;  %2257 = vmatpush.bf16.msrb.mxu1 %v2102_v39  ;;  %2856 = vmatpush.bf16.msra.mxu2 %v2102_v39 }
 0x4c2   :  { %2258 = vmatpush.bf16.msrb.mxu1 %v2100_v26  ;;  %2857 = vmatpush.bf16.msra.mxu2 %v2100_v26  ;;  %v2838_v26 = vld [vmem:[%s4700_s2 + $0x18] sm:$0xff] }
 0x4c4   :  { %v1943_v5 = vpop.permute.xlu2 %1942  ;;  %v1815_v41 = vpop.permute.xlu1 %1814  ;;  %v2093_v6 = vld [vmem:[#allocation2 + $0xf8] sm:$0xff] }
 0x4c5   :  { %1858 = vst.msk [vmem:[#allocation2 + $0x48] sm:$0xff] %vm1271_vm4, %v1815_v41  ;;  %v1879_v8 = vpop.permute.xlu0 %1878  ;;  %v2109_v13 = vpack.c.bf16 %v2093_v6, %v2091_v2  ;;  %v2077_v57 = vld [vmem:[#allocation2 + $0x78] sm:$0xff] }
 0x4c6   :  { %1922 = vst.msk [vmem:[#allocation2 + $0x48] sm:$0xff] %vm1336_vm5, %v1879_v8  ;;  %2259 = vmatpush.bf16.msrb.mxu1 %v2098_v34  ;;  %2858 = vmatpush.bf16.msra.mxu2 %v2098_v34  ;;  %v2101_v61 = vpack.c.bf16 %v2077_v57, %v2075_v21  ;;  %v2839_v34 = vld [vmem:[%s4700_s2 + $0x20] sm:$0xff] }
 0x4c7   :  { %1986 = vst.msk [vmem:[#allocation2 + $0x48] sm:$0xff] %vm1401_vm6, %v1943_v5  ;;  %2353 = vmatpush.bf16.msrb.mxu0 %v2109_v13  ;;  %2861 = vmatpush.bf16.msra.mxu3 %v2109_v13  ;;  %v2840_v13 = vld [vmem:[%s4700_s2 + $0x28] sm:$0xff] }
 0x4ca   :  { %2260 = vmatpush.bf16.msrb.mxu1 %v2096_v30  ;;  %2859 = vmatpush.bf16.msra.mxu2 %v2096_v30  ;;  %v2844_v30 = vld [vmem:[%s4700_s2 + $0x48] sm:$0xff] }
 0x4cb   :  { %2354 = vmatpush.bf16.msrb.mxu0 %v2107_v54  ;;  %2862 = vmatpush.bf16.msra.mxu3 %v2107_v54 }
 0x4cc   :  { %v2009_v58 = vpop.permute.xlu2 %2008  ;;  %v1881_v15 = vpop.permute.xlu1 %1880 }
 0x4cd   :  { %1923 = vst.msk [vmem:[#allocation2 + $0x58] sm:$0xff] %vm1336_vm5, %v1881_v15  ;;  %v1620_v55 = vpop.permute.xlu0 %1619  ;;  %v2835_v15 = vld [vmem:[%s4700_s2] sm:$0xff] }
 0x4ce   :  { %1664 = vst.msk [vmem:[#allocation2 + $0x38] sm:$0xff] %vm1141_vm2, %v1620_v55  ;;  %2261 = vmatpush.bf16.msrb.mxu1 %v2094_v45  ;;  %2860 = vmatpush.bf16.msra.mxu2 %v2094_v45  ;;  %v2847_v55 = vld [vmem:[%s4700_s2 + $0x60] sm:$0xff] }
 0x4cf   :  { %2355 = vmatpush.bf16.msrb.mxu0 %v2105_v16  ;;  %2863 = vmatpush.bf16.msra.mxu3 %v2105_v16 }
 0x4d1   :  { %2267 = vmatmul.bf16.vlgmr.msra.gmra.mxu2 %v2836_v7  ;;  %2262 = vmatmul.bf16.vlgmr.msrb.gmra.mxu1 %v2835_v15 }
 0x4d3   :  { %2356 = vmatpush.bf16.msrb.mxu0 %v2103_v47  ;;  %2864 = vmatpush.bf16.msra.mxu3 %v2103_v47  ;;  %v2848_v47 = vld [vmem:[%s4700_s2 + $0x68] sm:$0xff] }
 0x4d4   :  { %v1875_v62 = vpop.permute.xlu2 %1874  ;;  %v1702_v23 = vpop.permute.xlu1 %1701 }
 0x4d5   :  { %v1760_v28 = vsel %vm1757_vm10, %v1702_v23, %v4336_v24  ;;  %v1706_v59 = vpop.permute.xlu0 %1705 }
 0x4d6   :  { %1792 = vst.msk [vmem:[#allocation2 + $0x28] sm:$0xff] %vm1206_vm3, %v1760_v28  ;;  %v2849_v28 = vld [vmem:[%s4700_s2 + $0x70] sm:$0xff] }
 0x4d7   :  { %2357 = vmatpush.bf16.msrb.mxu0 %v2101_v61  ;;  %2865 = vmatpush.bf16.msra.mxu3 %v2101_v61 }
 0x4dc   :  { %v1708_v48 = vpop.permute.xlu1 %1707  ;;  %v1696_v63 = vpop.permute.xlu2 %1695 }
 0x4dd   :  { %v1761_v0 = vsel %vm1757_vm10, %v1706_v59, %v1708_v48  ;;  %v1945_v4 = vpop.permute.xlu0 %1944 }
 0x4de   :  { %1793 = vst.msk [vmem:[#allocation2 + $0x38] sm:$0xff] %vm1206_vm3, %v1761_v0  ;;  %v2850_v0 = vld [vmem:[%s4700_s2 + $0x78] sm:$0xff] }
 0x4df   :  { %1987 = vst.msk [vmem:[#allocation2 + $0x58] sm:$0xff] %vm1401_vm6, %v1945_v4 }
 0x4e0   :  { %2051 = vst.msk [vmem:[#allocation2 + $0x58] sm:$0xff] %vm1466_vm7, %v2009_v58  ;;  %v2846_v58 = vld [vmem:[%s4700_s2 + $0x58] sm:$0xff] }
 0x4e1   :  { %2272 = vmatmul.bf16.gmra.mxu2 %v2837_v49 }
 0x4e4   :  { %v2007_v29 = vpop.permute.xlu1 %2006  ;;  %v1939_v17 = vpop.permute.xlu2 %1938 }
 0x4e5   :  { %2050 = vst.msk [vmem:[#allocation2 + $0x48] sm:$0xff] %vm1466_vm7, %v2007_v29  ;;  %v1811_v22 = vpop.permute.xlu0 %1810 }
 0x4e6   :  { %1856 = vst.msk [vmem:[#allocation2 + $0x28] sm:$0xff] %vm1271_vm4, %v1811_v22 }
 0x4e7   :  { %1920 = vst.msk [vmem:[#allocation2 + $0x28] sm:$0xff] %vm1336_vm5, %v1875_v62  ;;  %v2073_v52 = vld [vmem:[#allocation2 + $0x58] sm:$0xff] }
 0x4e8   :  { %1984 = vst.msk [vmem:[#allocation2 + $0x28] sm:$0xff] %vm1401_vm6, %v1939_v17 }
 0x4ec   :  { %v1813_v38 = vpop.permute.xlu1 %1812  ;;  %v2071_v11 = vld [vmem:[#allocation2 + $0x48] sm:$0xff]  ;;  %v2005_v44 = vpop.permute.xlu2 %2004 }
 0x4ed   :  { %1857 = vst.msk [vmem:[#allocation2 + $0x38] sm:$0xff] %vm1271_vm4, %v1813_v38  ;;  %v1877_v1 = vpop.permute.xlu0 %1876  ;;  %v2099_v56 = vpack.c.bf16 %v2073_v52, %v2071_v11  ;;  %v2851_v38 = vld [vmem:[%s4700_s2 + $0x80] sm:$0xff] }
 0x4ee   :  { %1921 = vst.msk [vmem:[#allocation2 + $0x38] sm:$0xff] %vm1336_vm5, %v1877_v1 }
 0x4ef   :  { %2358 = vmatpush.bf16.msrb.mxu0 %v2099_v56  ;;  %2866 = vmatpush.bf16.msra.mxu3 %v2099_v56 }
 0x4f1   :  { %2277 = vmatmul.bf16.gmra.mxu2 %v2838_v26 }
 0x4f4   :  { %v1694_v31 = vpop.permute.xlu1 %1693  ;;  %v1871_v35 = vpop.permute.xlu2 %1870 }
 0x4f5   :  { %v1758_v12 = vsel %vm1757_vm10, %v1694_v31, %v1696_v63  ;;  %v1698_v10 = vpop.permute.xlu0 %1697 }
 0x4f6   :  { %1790 = vst.msk [vmem:[#allocation2 + $0x8] sm:$0xff] %vm1206_vm3, %v1758_v12 }
 0x4fc   :  { %v1700_v60 = vpop.permute.xlu1 %1699  ;;  %v1937_v42 = vpop.permute.xlu2 %1936 }
 0x4fd   :  { %v1759_v18 = vsel %vm1757_vm10, %v1698_v10, %v1700_v60  ;;  %v1941_v40 = vpop.permute.xlu0 %1940 }
 0x4fe   :  { %1791 = vst.msk [vmem:[#allocation2 + $0x18] sm:$0xff] %vm1206_vm3, %v1759_v18 }
 0x4ff   :  { %1985 = vst.msk [vmem:[#allocation2 + $0x38] sm:$0xff] %vm1401_vm6, %v1941_v40 }
 0x500   :  { %2049 = vst.msk [vmem:[#allocation2 + $0x38] sm:$0xff] %vm1466_vm7, %v2005_v44 }
 0x501   :  { %2282 = vmatmul.bf16.gmra.mxu2 %v2839_v34 }
 0x504   :  { %v2003_v20 = vpop.permute.xlu1 %2002 }
 0x505   :  { %2048 = vst.msk [vmem:[#allocation2 + $0x28] sm:$0xff] %vm1466_vm7, %v2003_v20  ;;  %v1807_v24 = vpop.permute.xlu0 %1806 }
 0x506   :  { %1854 = vst.msk [vmem:[#allocation2 + $0x8] sm:$0xff] %vm1271_vm4, %v1807_v24 }
 0x507   :  { %1918 = vst.msk [vmem:[#allocation2 + $0x8] sm:$0xff] %vm1336_vm5, %v1871_v35  ;;  %v2069_v37 = vld [vmem:[#allocation2 + $0x38] sm:$0xff] }
 0x50c   :  { %v1809_v33 = vpop.permute.xlu1 %1808  ;;  %v2067_v39 = vld [vmem:[#allocation2 + $0x28] sm:$0xff] }
 0x50d   :  { %1855 = vst.msk [vmem:[#allocation2 + $0x18] sm:$0xff] %vm1271_vm4, %v1809_v33  ;;  %v1873_v19 = vpop.permute.xlu0 %1872  ;;  %v2097_v46 = vpack.c.bf16 %v2069_v37, %v2067_v39  ;;  %v2468_v37 = vlaneseq }
 0x50e   :  { %1919 = vst.msk [vmem:[#allocation2 + $0x18] sm:$0xff] %vm1336_vm5, %v1873_v19 }
 0x50f   :  { %1983 = vst.msk [vmem:[#allocation2 + $0x18] sm:$0xff] %vm1401_vm6, %v1937_v42  ;;  %2359 = vmatpush.bf16.msrb.mxu0 %v2097_v46  ;;  %2867 = vmatpush.bf16.msra.mxu3 %v2097_v46  ;;  %v4443_v19 = vand.u32 127, %v2468_v37 }
 0x511   :  { %2287 = vmatmul.bf16.gmra.mxu2 %v2840_v13  ;;  %vm2470_vm11 = vcmp.lt.s32.totalorder %v4443_v19, 127  ;;  %vm2495_vm12 = vcmp.lt.s32.totalorder %v4443_v19, 126  ;;  %vm2520_vm13 = vcmp.lt.s32.totalorder %v4443_v19, 112  ;;  %vm2545_vm14 = vcmp.lt.s32.totalorder %v4443_v19, 111 }
 0x512   :  { %vm2570_vm15 = vcmp.lt.s32.totalorder %v4443_v19, 110  ;;  %vm2595_vm0 = vcmp.lt.s32.totalorder %v4443_v19, 96  ;;  %vm2620_vm1 = vcmp.lt.s32.totalorder %v4443_v19, 95  ;;  %vm2645_vm2 = vcmp.lt.s32.totalorder %v4443_v19, 94 }
 0x514   :  { %v1935_v32 = vpop.permute.xlu1 %1934 }
 0x515   :  { %1982 = vst.msk [vmem:[#allocation2 + $0x8] sm:$0xff] %vm1401_vm6, %v1935_v32  ;;  %v1999_v5 = vpop.permute.xlu0 %1998 }
 0x516   :  { %2046 = vst.msk [vmem:[#allocation2 + $0x8] sm:$0xff] %vm1466_vm7, %v1999_v5 }
 0x51c   :  { %v2001_v41 = vpop.permute.xlu1 %2000 }
 0x51d   :  { %2047 = vst.msk [vmem:[#allocation2 + $0x18] sm:$0xff] %vm1466_vm7, %v2001_v41  ;;  %v2063_v2 = vld [vmem:[#allocation2 + $0x8] sm:$0xff] }
 0x521   :  { %2292 = vmatmul.bf16.gmra.mxu2 %v2841_v27 }
 0x524   :  { %v2065_v6 = vld [vmem:[#allocation2 + $0x18] sm:$0xff] }
 0x525   :  { %v2095_v8 = vpack.c.bf16 %v2065_v6, %v2063_v2 }
 0x527   :  { %2360 = vmatpush.bf16.msrb.mxu0 %v2095_v8  ;;  %2868 = vmatpush.bf16.msra.mxu3 %v2095_v8 }
 0x52a   :  { %2366 = vmatmul.bf16.vlgmr.msra.gmra.mxu3 %v2836_v7  ;;  %2361 = vmatmul.bf16.vlgmr.msrb.gmra.mxu0 %v2835_v15  ;;  %v2852_v7 = vld [vmem:[%s4700_s2 + $0x88] sm:$0xff]  ;;  %s2988_s2 = smov 111  }
 0x531   :  { %2297 = vmatmul.bf16.gmra.mxu2 %v2842_v3 }
 0x53a   :  { %2371 = vmatmul.bf16.gmra.mxu3 %v2837_v49 }
 0x541   :  { %2302 = vmatmul.bf16.gmra.mxu2 %v2843_v36 }
 0x54a   :  { %2376 = vmatmul.bf16.gmra.mxu3 %v2838_v26 }
 0x551   :  { %2307 = vmatmul.bf16.gmra.mxu2 %v2844_v30 }
 0x554   :  { %v4400_v53 = vpop.f32.mrf.mxu2 }
 0x55a   :  { %2381 = vmatmul.bf16.gmra.mxu3 %v2839_v34 }
 0x55c   :  { %v4402_v54 = vpop.f32.mrf.mxu2 }
 0x561   :  { %2312 = vmatmul.bf16.gmra.mxu2 %v2845_v43 }
 0x564   :  { %v2273_v14 = vpop.f32.mrf.mxu2 }
 0x565   :  { %2452 = vrot.lane.b32.xlu2 %v2273_v14, %s2985_s30 }
 0x56a   :  { %2386 = vmatmul.bf16.gmra.mxu3 %v2840_v13 }
 0x56c   :  { %v2275_v50 = vpop.f32.mrf.mxu2 }
 0x571   :  { %2317 = vmatmul.bf16.gmra.mxu2 %v2846_v58 }
 0x574   :  { %v2278_v45 = vpop.f32.mrf.mxu2 }
 0x57a   :  { %2391 = vmatmul.bf16.gmra.mxu3 %v2841_v27 }
 0x57c   :  { %v2280_v51 = vpop.f32.mrf.mxu2 }
 0x581   :  { %2322 = vmatmul.bf16.gmra.mxu2 %v2847_v55 }
 0x584   :  { %v2283_v16 = vpop.f32.mrf.mxu2 }
 0x58a   :  { %2396 = vmatmul.bf16.gmra.mxu3 %v2842_v3 }
 0x58c   :  { %v2285_v25 = vpop.f32.mrf.mxu2 }
 0x591   :  { %2327 = vmatmul.bf16.gmra.mxu2 %v2848_v47 }
 0x594   :  { %v2288_v57 = vpop.f32.mrf.mxu2 }
 0x59a   :  { %2401 = vmatmul.bf16.gmra.mxu3 %v2843_v36 }
 0x59c   :  { %v2290_v23 = vpop.f32.mrf.mxu2 }
 0x5a1   :  { %2332 = vmatmul.bf16.gmra.mxu2 %v2849_v28 }
 0x5a4   :  { %v2293_v59 = vpop.f32.mrf.mxu2 }
 0x5aa   :  { %2406 = vmatmul.bf16.gmra.mxu3 %v2844_v30 }
 0x5ac   :  { %v2295_v48 = vpop.f32.mrf.mxu2 }
 0x5ad   :  { %v4417_v9 = vpop.f32.mrf.mxu3 }
 0x5b1   :  { %2337 = vmatmul.bf16.gmra.mxu2 %v2850_v0 }
 0x5b4   :  { %v2298_v4 = vpop.f32.mrf.mxu2 }
 0x5b5   :  { %v4422_v62 = vpop.f32.mrf.mxu3 }
 0x5ba   :  { %2411 = vmatmul.bf16.gmra.mxu3 %v2845_v43 }
 0x5bc   :  { %v2300_v22 = vpop.f32.mrf.mxu2 }
 0x5bd   :  { %v2372_v21 = vpop.f32.mrf.mxu3 }
 0x5be   :  { %2460 = vrot.lane.b32.xlu0 %v2372_v21, %s2985_s30 }
 0x5bf   :  { %v2453_v46 = vpop.permute.xlu2 %2452 }
 0x5c1   :  { %2342 = vmatmul.bf16.gmra.mxu2 %v2851_v38 }
 0x5c4   :  { %v2303_v11 = vpop.f32.mrf.mxu2 }
 0x5c5   :  { %v2374_v61 = vpop.f32.mrf.mxu3 }
 0x5c6   :  { %2454 = vrot.lane.b32.xlu0 %v2275_v50, %s2985_s30  ;;  %2462 = vrot.lane.b32.xlu1 %v2374_v61, %s2985_s30 }
 0x5ca   :  { %2416 = vmatmul.bf16.gmra.mxu3 %v2846_v58 }
 0x5cc   :  { %v2305_v1 = vpop.f32.mrf.mxu2 }
 0x5cd   :  { %v2377_v63 = vpop.f32.mrf.mxu3 }
 0x5ce   :  { %2456 = vrot.lane.b32.xlu1 %v2278_v45, %s2985_s30  ;;  %2464 = vrot.lane.b32.xlu2 %v2377_v63, %s2985_s30 }
 0x5d1   :  { %2347 = vmatmul.bf16.gmra.mxu2 %v2852_v7 }
 0x5d4   :  { %v2308_v31 = vpop.f32.mrf.mxu2 }
 0x5d5   :  { %v2379_v29 = vpop.f32.mrf.mxu3 }
 0x5d6   :  { %2479 = vrot.lane.b32.xlu1 %v2283_v16, %s2986_s15  ;;  %2458 = vrot.lane.b32.xlu2 %v2280_v51, %s2985_s30 }
 0x5d7   :  { %2466 = vrot.lane.b32.xlu0 %v2379_v29, %s2985_s30 }
 0x5da   :  { %2421 = vmatmul.bf16.gmra.mxu3 %v2847_v55 }
 0x5dc   :  { %v2310_v10 = vpop.f32.mrf.mxu2 }
 0x5dd   :  { %v2382_v17 = vpop.f32.mrf.mxu3 }
 0x5de   :  { %2487 = vrot.lane.b32.xlu2 %v2382_v17, %s2986_s15 }
 0x5e4   :  { %v2313_v18 = vpop.f32.mrf.mxu2 }
 0x5e5   :  { %v2384_v52 = vpop.f32.mrf.mxu3 }
 0x5e6   :  { %2481 = vrot.lane.b32.xlu2 %v2285_v25, %s2986_s15  ;;  %2489 = vrot.lane.b32.xlu0 %v2384_v52, %s2986_s15 }
 0x5ea   :  { %2426 = vmatmul.bf16.gmra.mxu3 %v2848_v47 }
 0x5ec   :  { %v2315_v49 = vpop.f32.mrf.mxu2 }
 0x5ed   :  { %v2387_v56 = vpop.f32.mrf.mxu3 }
 0x5ee   :  { %2483 = vrot.lane.b32.xlu0 %v2288_v57, %s2986_s15  ;;  %2491 = vrot.lane.b32.xlu1 %v2387_v56, %s2986_s15 }
 0x5f4   :  { %v2318_v20 = vpop.f32.mrf.mxu2 }
 0x5f5   :  { %v2389_v12 = vpop.f32.mrf.mxu3 }
 0x5f6   :  { %2504 = vrot.lane.b32.xlu0 %v2293_v59, %s2987_s27  ;;  %2485 = vrot.lane.b32.xlu1 %v2290_v23, %s2986_s15 }
 0x5f7   :  { %2493 = vrot.lane.b32.xlu2 %v2389_v12, %s2986_s15 }
 0x5fa   :  { %2431 = vmatmul.bf16.gmra.mxu3 %v2849_v28 }
 0x5fc   :  { %v2320_v33 = vpop.f32.mrf.mxu2 }
 0x5fd   :  { %v2392_v44 = vpop.f32.mrf.mxu3 }
 0x5fe   :  { %2512 = vrot.lane.b32.xlu1 %v2392_v44, %s2987_s27  ;;  %v2362_v44 = vpop.f32.mrf.mxu0 }
 0x604   :  { %v2323_v42 = vpop.f32.mrf.mxu2 }
 0x605   :  { %v2394_v60 = vpop.f32.mrf.mxu3 }
 0x606   :  { %2506 = vrot.lane.b32.xlu1 %v2295_v48, %s2987_s27  ;;  %2514 = vrot.lane.b32.xlu2 %v2394_v60, %s2987_s27 }
 0x60a   :  { %2436 = vmatmul.bf16.gmra.mxu3 %v2850_v0 }
 0x60c   :  { %v2325_v6 = vpop.f32.mrf.mxu2 }
 0x60d   :  { %v2397_v40 = vpop.f32.mrf.mxu3 }
 0x60e   :  { %2508 = vrot.lane.b32.xlu2 %v2298_v4, %s2987_s27  ;;  %2516 = vrot.lane.b32.xlu0 %v2397_v40, %s2987_s27 }
 0x614   :  { %v2328_v58 = vpop.f32.mrf.mxu2 }
 0x615   :  { %v2399_v35 = vpop.f32.mrf.mxu3 }
 0x616   :  { %2529 = vrot.lane.b32.xlu2 %v2303_v11, %s2988_s2  ;;  %2510 = vrot.lane.b32.xlu0 %v2300_v22, %s2987_s27 }
 0x617   :  { %2518 = vrot.lane.b32.xlu1 %v2399_v35, %s2987_s27 }
 0x61a   :  { %2441 = vmatmul.bf16.gmra.mxu3 %v2851_v38 }
 0x61c   :  { %v2330_v23 = vpop.f32.mrf.mxu2 }
 0x61d   :  { %v2402_v24 = vpop.f32.mrf.mxu3 }
 0x61e   :  { %2537 = vrot.lane.b32.xlu0 %v2402_v24, %s2988_s2 }
 0x624   :  { %v2333_v59 = vpop.f32.mrf.mxu2 }
 0x625   :  { %v2404_v39 = vpop.f32.mrf.mxu3 }
 0x626   :  { %2531 = vrot.lane.b32.xlu0 %v2305_v1, %s2988_s2  ;;  %2539 = vrot.lane.b32.xlu1 %v2404_v39, %s2988_s2 }
 0x628   :  { %v2465_v34 = vpop.permute.xlu2 %2464 }
 0x62a   :  { %2446 = vmatmul.bf16.gmra.mxu3 %v2852_v7 }
 0x62c   :  { %v2335_v29 = vpop.f32.mrf.mxu2 }
 0x62d   :  { %v2407_v26 = vpop.f32.mrf.mxu3 }
 0x62e   :  { %2533 = vrot.lane.b32.xlu1 %v2308_v31, %s2988_s2  ;;  %2541 = vrot.lane.b32.xlu2 %v2407_v26, %s2988_s2 }
 0x630   :  { %v2461_v32 = vpop.permute.xlu0 %2460  ;;  %v2459_v30 = vpop.permute.xlu2 %2458 }
 0x631   :  { %v4448_v5 = vsel %vm2470_vm11, %v2453_v46, %v2461_v32  ;;  %v4452_v41 = vsel %vm2470_vm11, %v2461_v32, %v2453_v46 }
 0x632   :  { %v2655_v24 = vadd.f32 %v4452_v41, %v2362_v44 }
 0x634   :  { %v4507_v12 = vpop.f32.mrf.mxu2 }
 0x635   :  { %v2409_v2 = vpop.f32.mrf.mxu3 }
 0x636   :  { %2554 = vrot.lane.b32.xlu1 %v2313_v18, %s2989_s28  ;;  %2535 = vrot.lane.b32.xlu2 %v2310_v10, %s2988_s2  ;;  %v2263_v10 = vpop.f32.mrf.mxu1 }
 0x637   :  { %2543 = vrot.lane.b32.xlu0 %v2409_v2, %s2988_s2  ;;  %v2364_v2 = vpop.f32.mrf.mxu0 }
 0x638   :  { %v2455_v8 = vpop.permute.xlu0 %2454  ;;  %v2463_v13 = vpop.permute.xlu1 %2462 }
 0x639   :  { %v4457_v27 = vsel %vm2470_vm11, %v2455_v8, %v2463_v13  ;;  %v4461_v3 = vsel %vm2470_vm11, %v2463_v13, %v2455_v8  ;;  %v2488_v45 = vpop.permute.xlu2 %2487 }
 0x63a   :  { %v2657_v13 = vadd.f32 %v4461_v3, %v2364_v2 }
 0x63c   :  { %v2340_v37 = vpop.f32.mrf.mxu2 }
 0x63d   :  { %v2412_v36 = vpop.f32.mrf.mxu3 }
 0x63e   :  { %2562 = vrot.lane.b32.xlu2 %v2412_v36, %s2989_s28 }
 0x640   :  { %v2457_v43 = vpop.permute.xlu1 %2456 }
 0x641   :  { %v4466_v14 = vsel %vm2470_vm11, %v2457_v43, %v2465_v34  ;;  %v4470_v50 = vsel %vm2470_vm11, %v2465_v34, %v2457_v43  ;;  %v2482_v61 = vpop.permute.xlu2 %2481  ;;  %v2265_v34 = vpop.f32.mrf.mxu1 }
 0x642   :  { %v2656_v8 = vadd.f32 %v4457_v27, %v2265_v34  ;;  %v2658_v3 = vadd.f32 %v4466_v14, %v4400_v53 }
 0x645   :  { %v2414_v15 = vpop.f32.mrf.mxu3 }
 0x646   :  { %2556 = vrot.lane.b32.xlu2 %v2315_v49, %s2989_s28  ;;  %2564 = vrot.lane.b32.xlu0 %v2414_v15, %s2989_s28 }
 0x648   :  { %v2480_v51 = vpop.permute.xlu1 %2479 }
 0x649   :  { %v2496_v55 = vsel %vm2495_vm12, %v2480_v51, %v2488_v45  ;;  %v2500_v16 = vsel %vm2495_vm12, %v2488_v45, %v2480_v51  ;;  %v2467_v25 = vpop.permute.xlu0 %2466  ;;  %v2343_v45 = vpop.f32.mrf.mxu2 }
 0x64a   :  { %v4481_v47 = vsel %vm2470_vm11, %v2459_v30, %v2467_v25  ;;  %v4485_v57 = vsel %vm2470_vm11, %v2467_v25, %v2459_v30  ;;  %v2659_v25 = vadd.f32 %v4470_v50, %v4417_v9 }
 0x64b   :  { %v2660_v14 = vadd.f32 %v4481_v47, %v4402_v54  ;;  %v2661_v50 = vadd.f32 %v4485_v57, %v4422_v62 }
 0x64d   :  { %v2417_v21 = vpop.f32.mrf.mxu3 }
 0x64e   :  { %2558 = vrot.lane.b32.xlu0 %v2318_v20, %s2989_s28  ;;  %2566 = vrot.lane.b32.xlu1 %v2417_v21, %s2989_s28  ;;  %v2654_v20 = vadd.f32 %v4448_v5, %v2263_v10 }
 0x651   :  { %v2494_v1 = vpop.permute.xlu2 %2493 }
 0x655   :  { %v2419_v28 = vpop.f32.mrf.mxu3 }
 0x656   :  { %2579 = vrot.lane.b32.xlu0 %v2323_v42, %s2990_s1  ;;  %2560 = vrot.lane.b32.xlu1 %v2320_v33, %s2989_s28 }
 0x657   :  { %2568 = vrot.lane.b32.xlu2 %v2419_v28, %s2989_s28 }
 0x658   :  { %v2490_v48 = vpop.permute.xlu0 %2489 }
 0x659   :  { %v2497_v63 = vsel %vm2495_vm12, %v2482_v61, %v2490_v48  ;;  %v2501_v0 = vsel %vm2495_vm12, %v2490_v48, %v2482_v61  ;;  %v2345_v48 = vpop.f32.mrf.mxu2 }
 0x65d   :  { %v2422_v4 = vpop.f32.mrf.mxu3 }
 0x65e   :  { %2587 = vrot.lane.b32.xlu1 %v2422_v4, %s2990_s1 }
 0x660   :  { %v2484_v22 = vpop.permute.xlu0 %2483  ;;  %v2492_v17 = vpop.permute.xlu1 %2491 }
 0x661   :  { %v2498_v38 = vsel %vm2495_vm12, %v2484_v22, %v2492_v17  ;;  %v2502_v11 = vsel %vm2495_vm12, %v2492_v17, %v2484_v22  ;;  %v2515_v32 = vpop.permute.xlu2 %2514  ;;  %v2348_v47 = vpop.f32.mrf.mxu2 }
 0x665   :  { %v2424_v52 = vpop.f32.mrf.mxu3 }
 0x666   :  { %2581 = vrot.lane.b32.xlu1 %v2325_v6, %s2990_s1  ;;  %2589 = vrot.lane.b32.xlu2 %v2424_v52, %s2990_s1 }
 0x668   :  { %v2486_v56 = vpop.permute.xlu1 %2485  ;;  %v2505_v18 = vpop.permute.xlu0 %2504 }
 0x669   :  { %v2499_v7 = vsel %vm2495_vm12, %v2486_v56, %v2494_v1  ;;  %v2503_v31 = vsel %vm2495_vm12, %v2494_v1, %v2486_v56  ;;  %v2509_v51 = vpop.permute.xlu2 %2508  ;;  %v2350_v10 = vpop.f32.mrf.mxu2 }
 0x66d   :  { %v2427_v60 = vpop.f32.mrf.mxu3 }
 0x66e   :  { %2583 = vrot.lane.b32.xlu2 %v2328_v58, %s2990_s1  ;;  %2591 = vrot.lane.b32.xlu0 %v2427_v60, %s2990_s1 }
 0x670   :  { %v2513_v40 = vpop.permute.xlu1 %2512 }
 0x671   :  { %v2521_v49 = vsel %vm2520_vm13, %v2505_v18, %v2513_v40  ;;  %v2525_v35 = vsel %vm2520_vm13, %v2513_v40, %v2505_v18 }
 0x672   :  { %v2662_v33 = vadd.f32 %v2521_v49, %v2496_v55  ;;  %v2663_v39 = vadd.f32 %v2525_v35, %v2500_v16 }
 0x674   :  { %v4518_v46 = vadd.f32 %v2662_v33, %v2654_v20  ;;  %v4520_v26 = vadd.f32 %v2663_v39, %v2655_v24 }
 0x675   :  { %v2429_v42 = vpop.f32.mrf.mxu3 }
 0x676   :  { %2604 = vrot.lane.b32.xlu2 %v2333_v59, %s2991_s24  ;;  %2585 = vrot.lane.b32.xlu0 %v2330_v23, %s2990_s1 }
 0x677   :  { %2593 = vrot.lane.b32.xlu1 %v2429_v42, %s2990_s1 }
 0x678   :  { %v2507_v5 = vpop.permute.xlu1 %2506 }
 0x679   :  { %v2522_v41 = vsel %vm2520_vm13, %v2507_v5, %v2515_v32  ;;  %v2526_v6 = vsel %vm2520_vm13, %v2515_v32, %v2507_v5 }
 0x67a   :  { %v2664_v36 = vadd.f32 %v2522_v41, %v2497_v63  ;;  %v2665_v30 = vadd.f32 %v2526_v6, %v2501_v0 }
 0x67c   :  { %v4531_v43 = vadd.f32 %v2664_v36, %v2656_v8  ;;  %v4533_v58 = vadd.f32 %v2665_v30, %v2657_v13 }
 0x67d   :  { %v2432_v15 = vpop.f32.mrf.mxu3 }
 0x67e   :  { %2612 = vrot.lane.b32.xlu0 %v2432_v15, %s2991_s24 }
 0x680   :  { %v2517_v55 = vpop.permute.xlu0 %2516 }
 0x681   :  { %v2523_v16 = vsel %vm2520_vm13, %v2509_v51, %v2517_v55  ;;  %v2527_v27 = vsel %vm2520_vm13, %v2517_v55, %v2509_v51 }
 0x682   :  { %v2666_v23 = vadd.f32 %v2523_v16, %v2498_v38  ;;  %v2667_v21 = vadd.f32 %v2527_v27, %v2502_v11 }
 0x684   :  { %v4544_v28 = vadd.f32 %v2666_v23, %v2658_v3  ;;  %v4546_v59 = vadd.f32 %v2667_v21, %v2659_v25 }
 0x685   :  { %v2434_v61 = vpop.f32.mrf.mxu3 }
 0x686   :  { %2606 = vrot.lane.b32.xlu0 %v2335_v29, %s2991_s24  ;;  %2614 = vrot.lane.b32.xlu1 %v2434_v61, %s2991_s24  ;;  %v2530_v29 = vpop.permute.xlu2 %2529 }
 0x688   :  { %v2511_v63 = vpop.permute.xlu0 %2510 }
 0x689   :  { %v2519_v0 = vpop.permute.xlu1 %2518 }
 0x68a   :  { %v2524_v53 = vsel %vm2520_vm13, %v2511_v63, %v2519_v0  ;;  %v2528_v9 = vsel %vm2520_vm13, %v2519_v0, %v2511_v63 }
 0x68b   :  { %v2668_v4 = vadd.f32 %v2524_v53, %v2499_v7  ;;  %v2669_v22 = vadd.f32 %v2528_v9, %v2503_v31 }
 0x68d   :  { %v4558_v17 = vadd.f32 %v2668_v4, %v2660_v14  ;;  %v4560_v38 = vadd.f32 %v2669_v22, %v2661_v50  ;;  %v2437_v11 = vpop.f32.mrf.mxu3 }
 0x68e   :  { %2608 = vrot.lane.b32.xlu1 %v4507_v12, %s2991_s24  ;;  %2616 = vrot.lane.b32.xlu2 %v2437_v11, %s2991_s24  ;;  %v2542_v57 = vpop.permute.xlu2 %2541 }
 0x690   :  { %v2538_v52 = vpop.permute.xlu0 %2537 }
 0x691   :  { %v2546_v54 = vsel %vm2545_vm14, %v2530_v29, %v2538_v52  ;;  %v2550_v62 = vsel %vm2545_vm14, %v2538_v52, %v2530_v29 }
 0x695   :  { %v2439_v1 = vpop.f32.mrf.mxu3 }
 0x696   :  { %2629 = vrot.lane.b32.xlu1 %v2343_v45, %s2992_s9  ;;  %2610 = vrot.lane.b32.xlu2 %v2340_v37, %s2991_s24  ;;  %v2536_v60 = vpop.permute.xlu2 %2535 }
 0x697   :  { %2618 = vrot.lane.b32.xlu0 %v2439_v1, %s2991_s24 }
 0x698   :  { %v2532_v56 = vpop.permute.xlu0 %2531  ;;  %v2540_v7 = vpop.permute.xlu1 %2539 }
 0x699   :  { %v2547_v31 = vsel %vm2545_vm14, %v2532_v56, %v2540_v7  ;;  %v2551_v12 = vsel %vm2545_vm14, %v2540_v7, %v2532_v56 }
 0x69d   :  { %v2442_v44 = vpop.f32.mrf.mxu3 }
 0x69e   :  { %2635 = vrot.lane.b32.xlu1 %v2350_v10, %s2992_s9  ;;  %2637 = vrot.lane.b32.xlu2 %v2442_v44, %s2992_s9  ;;  %v2563_v20 = vpop.permute.xlu2 %2562 }
 0x69f   :  { %2633 = vrot.lane.b32.xlu0 %v2348_v47, %s2992_s9 }
 0x6a0   :  { %v2534_v18 = vpop.permute.xlu1 %2533 }
 0x6a1   :  { %v2548_v40 = vsel %vm2545_vm14, %v2534_v18, %v2542_v57  ;;  %v2552_v49 = vsel %vm2545_vm14, %v2542_v57, %v2534_v18 }
 0x6a5   :  { %v2444_v35 = vpop.f32.mrf.mxu3 }
 0x6a6   :  { %2631 = vrot.lane.b32.xlu2 %v2345_v48, %s2992_s9  ;;  %v2557_v6 = vpop.permute.xlu2 %2556 }
 0x6a7   :  { %2639 = vrot.lane.b32.xlu0 %v2444_v35, %s2992_s9 }
 0x6a8   :  { %v2555_v24 = vpop.permute.xlu1 %2554 }
 0x6a9   :  { %v2571_v33 = vsel %vm2570_vm15, %v2555_v24, %v2563_v20  ;;  %v2575_v39 = vsel %vm2570_vm15, %v2563_v20, %v2555_v24  ;;  %v2544_v37 = vpop.permute.xlu0 %2543 }
 0x6aa   :  { %v2670_v42 = vadd.f32 %v2571_v33, %v2546_v54  ;;  %v2671_v32 = vadd.f32 %v2575_v39, %v2550_v62  ;;  %v4593_v34 = vsel %vm2545_vm14, %v2536_v60, %v2544_v37  ;;  %v4597_v2 = vsel %vm2545_vm14, %v2544_v37, %v2536_v60 }
 0x6ad   :  { %v2447_v5 = vpop.f32.mrf.mxu3 }
 0x6ae   :  { %2641 = vrot.lane.b32.xlu1 %v2447_v5, %s2992_s9 }
 0x6b1   :  { %v2569_v25 = vpop.permute.xlu2 %2568 }
 0x6b5   :  { %v2449_v41 = vpop.f32.mrf.mxu3 }
 0x6b6   :  { %2643 = vrot.lane.b32.xlu2 %v2449_v41, %s2992_s9 }
 0x6b8   :  { %v2565_v8 = vpop.permute.xlu0 %2564 }
 0x6b9   :  { %v2572_v13 = vsel %vm2570_vm15, %v2557_v6, %v2565_v8  ;;  %v2576_v36 = vsel %vm2570_vm15, %v2565_v8, %v2557_v6 }
 0x6ba   :  { %v2672_v30 = vadd.f32 %v2572_v13, %v2547_v31  ;;  %v2673_v15 = vadd.f32 %v2576_v36, %v2551_v12 }
 0x6c0   :  { %v2559_v45 = vpop.permute.xlu0 %2558  ;;  %v2567_v51 = vpop.permute.xlu1 %2566 }
 0x6c1   :  { %v2573_v55 = vsel %vm2570_vm15, %v2559_v45, %v2567_v51  ;;  %v2577_v16 = vsel %vm2570_vm15, %v2567_v51, %v2559_v45  ;;  %v2590_v23 = vpop.permute.xlu2 %2589 }
 0x6c2   :  { %v2674_v27 = vadd.f32 %v2573_v55, %v2548_v40  ;;  %v2675_v3 = vadd.f32 %v2577_v16, %v2552_v49 }
 0x6c8   :  { %v2561_v21 = vpop.permute.xlu1 %2560  ;;  %v2580_v61 = vpop.permute.xlu0 %2579 }
 0x6c9   :  { %v2584_v48 = vpop.permute.xlu2 %2583  ;;  %v2574_v36 = vsel %vm2570_vm15, %v2561_v21, %v2569_v25 }
 0x6d0   :  { %v2588_v63 = vpop.permute.xlu1 %2587 }
 0x6d1   :  { %v2605_v53 = vpop.permute.xlu2 %2604  ;;  %v2596_v29 = vsel %vm2595_vm0, %v2580_v61, %v2588_v63  ;;  %v2600_v11 = vsel %vm2595_vm0, %v2588_v63, %v2580_v61 }
 0x6d8   :  { %v2582_v9 = vpop.permute.xlu1 %2581 }
 0x6d9   :  { %v2597_v44 = vsel %vm2595_vm0, %v2582_v9, %v2590_v23  ;;  %v2601_v60 = vsel %vm2595_vm0, %v2590_v23, %v2582_v9 }
 0x6e0   :  { %v2592_v0 = vpop.permute.xlu0 %2591 }
 0x6e1   :  { %v2598_v37 = vsel %vm2595_vm0, %v2584_v48, %v2592_v0 }
 0x6e8   :  { %v2586_v14 = vpop.permute.xlu0 %2585  ;;  %v2617_v50 = vpop.permute.xlu2 %2616 }
 0x6e9   :  { %v2594_v4 = vpop.permute.xlu1 %2593 }
 0x6ea   :  { %v2599_v51 = vsel %vm2595_vm0, %v2586_v14, %v2594_v4  ;;  %v2603_v55 = vsel %vm2595_vm0, %v2594_v4, %v2586_v14 }
 0x6f0   :  { %v2613_v22 = vpop.permute.xlu0 %2612  ;;  %v2611_v56 = vpop.permute.xlu2 %2610 }
 0x6f1   :  { %v2621_v52 = vsel %vm2620_vm1, %v2605_v53, %v2613_v22  ;;  %v2625_v54 = vsel %vm2620_vm1, %v2613_v22, %v2605_v53 }
 0x6f2   :  { %v2678_v62 = vadd.f32 %v2621_v52, %v2596_v29  ;;  %v2679_v47 = vadd.f32 %v2625_v54, %v2600_v11 }
 0x6f4   :  { %v2694_v57 = vadd.f32 %v2678_v62, %v2670_v42  ;;  %v2695_v1 = vadd.f32 %v2679_v47, %v2671_v32  ;;  %v2602_v42 = vsel %vm2595_vm0, %v2592_v0, %v2584_v48 }
 0x6f6   :  { %v2702_v7 = vadd.f32 %v2694_v57, %v4518_v46  ;;  %v2703_v31 = vadd.f32 %v2695_v1, %v4520_v26 }
 0x6f8   :  { %v2607_v12 = vpop.permute.xlu0 %2606  ;;  %v2615_v10 = vpop.permute.xlu1 %2614 }
 0x6f9   :  { %v2622_v18 = vsel %vm2620_vm1, %v2607_v12, %v2615_v10  ;;  %v2626_v40 = vsel %vm2620_vm1, %v2615_v10, %v2607_v12  ;;  %v2638_v24 = vpop.permute.xlu2 %2637 }
 0x6fa   :  { %v2680_v49 = vadd.f32 %v2622_v18, %v2597_v44  ;;  %v2681_v35 = vadd.f32 %v2626_v40, %v2601_v60 }
 0x6fc   :  { %v2696_v20 = vadd.f32 %v2680_v49, %v2672_v30  ;;  %v2697_v46 = vadd.f32 %v2681_v35, %v2673_v15  ;;  %v2578_v30 = vsel %vm2570_vm15, %v2569_v25, %v2561_v21  ;;  %v2676_v21 = vadd.f32 %v2574_v36, %v4593_v34 }
 0x6fd   :  { %v2677_v61 = vadd.f32 %v2578_v30, %v4597_v2 }
 0x6fe   :  { %v2704_v26 = vadd.f32 %v2696_v20, %v4531_v43  ;;  %v2705_v33 = vadd.f32 %v2697_v46, %v4533_v58 }
 0x700   :  { %v2609_v39 = vpop.permute.xlu1 %2608 }
 0x701   :  { %v2623_v32 = vsel %vm2620_vm1, %v2609_v39, %v2617_v50  ;;  %v2627_v5 = vsel %vm2620_vm1, %v2617_v50, %v2609_v39  ;;  %v2632_v15 = vpop.permute.xlu2 %2631 }
 0x702   :  { %v2682_v41 = vadd.f32 %v2623_v32, %v2598_v37  ;;  %v2683_v6 = vadd.f32 %v2627_v5, %v2602_v42 }
 0x704   :  { %v2698_v8 = vadd.f32 %v2682_v41, %v2674_v27  ;;  %v2699_v13 = vadd.f32 %v2683_v6, %v2675_v3 }
 0x706   :  { %v2706_v43 = vadd.f32 %v2698_v8, %v4544_v28  ;;  %v2707_v58 = vadd.f32 %v2699_v13, %v4546_v59 }
 0x708   :  { %v2630_v45 = vpop.permute.xlu1 %2629 }
 0x709   :  { %v2646_v16 = vsel %vm2645_vm2, %v2630_v45, %v2638_v24  ;;  %v2650_v28 = vsel %vm2645_vm2, %v2638_v24, %v2630_v45  ;;  %v2619_v59 = vpop.permute.xlu0 %2618 }
 0x70a   :  { %v2710_v27 = vadd.f32 %v2702_v7, %v2646_v16  ;;  %v2711_v3 = vadd.f32 %v2703_v31, %v2650_v28  ;;  %v2624_v25 = vsel %vm2620_vm1, %v2611_v56, %v2619_v59  ;;  %v2628_v23 = vsel %vm2620_vm1, %v2619_v59, %v2611_v56 }
 0x70b   :  { %v2684_v48 = vadd.f32 %v2624_v25, %v2599_v51  ;;  %v2685_v63 = vadd.f32 %v2628_v23, %v2603_v55 }
 0x70c   :  { %2718 = vst [vmem:[%s4701_s3] sm:$0xff] %v2710_v27 }
 0x70d   :  { %2719 = vst [vmem:[%s4701_s3 + $0x8] sm:$0xff] %v2711_v3  ;;  %v2700_v0 = vadd.f32 %v2684_v48, %v2676_v21  ;;  %v2701_v53 = vadd.f32 %v2685_v63, %v2677_v61 }
 0x70f   :  { %v2708_v9 = vadd.f32 %v2700_v0, %v4558_v17  ;;  %v2709_v14 = vadd.f32 %v2701_v53, %v4560_v38 }
 0x710   :  { %v2636_v50 = vpop.permute.xlu1 %2635  ;;  %v2644_v34 = vpop.permute.xlu2 %2643 }
 0x711   :  { %v2634_v4 = vpop.permute.xlu0 %2633  ;;  %v2649_v2 = vsel %vm2645_vm2, %v2636_v50, %v2644_v34  ;;  %v2653_v22 = vsel %vm2645_vm2, %v2644_v34, %v2636_v50 }
 0x712   :  { %v2716_v29 = vadd.f32 %v2708_v9, %v2649_v2  ;;  %v2717_v11 = vadd.f32 %v2709_v14, %v2653_v22 }
 0x714   :  { %2724 = vst [vmem:[%s4701_s3 + $0x30] sm:$0xff] %v2716_v29 }
 0x715   :  { %2725 = vst [vmem:[%s4701_s3 + $0x38] sm:$0xff] %v2717_v11 }
 0x719   :  { %v2640_v17 = vpop.permute.xlu0 %2639 }
 0x71a   :  { %v2647_v38 = vsel %vm2645_vm2, %v2632_v15, %v2640_v17  ;;  %v2651_v52 = vsel %vm2645_vm2, %v2640_v17, %v2632_v15 }
 0x71b   :  { %v2712_v54 = vadd.f32 %v2704_v26, %v2647_v38  ;;  %v2713_v62 = vadd.f32 %v2705_v33, %v2651_v52 }
 0x71d   :  { %2720 = vst [vmem:[%s4701_s3 + $0x10] sm:$0xff] %v2712_v54 }
 0x71e   :  { %2721 = vst [vmem:[%s4701_s3 + $0x18] sm:$0xff] %v2713_v62 }
 0x720   :  { %v2642_v47 = vpop.permute.xlu1 %2641 }
 0x721   :  { %v2648_v57 = vsel %vm2645_vm2, %v2634_v4, %v2642_v47  ;;  %v2652_v1 = vsel %vm2645_vm2, %v2642_v47, %v2634_v4 }
 0x722   :  { %v2714_v56 = vadd.f32 %v2706_v43, %v2648_v57  ;;  %v2715_v7 = vadd.f32 %v2707_v58, %v2652_v1 }
 0x724   :  { %2722 = vst [vmem:[%s4701_s3 + $0x20] sm:$0xff] %v2714_v56 }
 0x725   :  { %2723 = vst [vmem:[%s4701_s3 + $0x28] sm:$0xff] %v2715_v7 }

</bundles_post_ra>
